<compile_context>
chip_gen: v7x
topology: tpu7x:2x2x1
jax: 0.10.0
libtpu: 0.0.40
codegen_flags: <defaults>
</compile_context>

<pallas_src>
import functools

import jax
import jax.numpy as jnp
from jax import lax
from jax.experimental import pallas as pl
from jax.experimental.pallas import tpu as pltpu

PAD_LANES = 128                      # conv-output channels / head width padded to a full lane tile
_MAX_TILE_M = 1024                   # upper bound on the M tile of the conv GEMMs

C1, C2, C3 = 32, 64, 32              # conv output channels of the reference architecture
FSPAT = 7 * 7                        # conv3 spatial output for 84x84 inputs


def _vmem_limit_bytes():
    """Generation-aware scoped-VMEM limit: half of physical VMEM, capped at 64 MiB."""
    try:
        cap = int(getattr(pltpu.get_tpu_info(), "vmem_capacity_bytes", 128 * 1024 * 1024))
    except Exception:
        cap = 128 * 1024 * 1024
    return int(min(max(cap // 2, 16 * 1024 * 1024), 64 * 1024 * 1024))


_VMEM_LIMIT = _vmem_limit_bytes()


def _pick_tile(m, max_tile=_MAX_TILE_M):
    """M tile (multiple of 8) that keeps >=2 grid steps whenever M >= 16, so the
    'parallel' grid axis can shard across both TensorCores on v7x, capped at max_tile
    so double-buffered blocks stay comfortably inside VMEM on every generation."""
    if m <= 16:
        return m                                   # single full block (block dim == array dim)
    half = pl.cdiv(m, 2)
    return int(min(max_tile, ((half + 7) // 8) * 8))


# ---------------------------------------------------------------------------
# Pallas kernels
# ---------------------------------------------------------------------------
def _matmul_bias_relu_kernel(x_ref, w_ref, b_ref, o_ref):
    """o = relu(x @ w + b).  bf16 MXU operands, f32 accumulation, lane-dense store."""
    acc = jnp.dot(x_ref[...], w_ref[...], preferred_element_type=jnp.float32)
    o_ref[...] = jnp.maximum(acc + b_ref[...], 0.0).astype(o_ref.dtype)


def _fc_heads_kernel(x_ref, wfc_ref, bfc_ref, wh_ref, bh_ref, head_ref):
    """heads = relu(x @ Wfc + bfc) @ Whead + bhead  (col 0 = value, 1.. = logits).
    The FC hidden is NOT written back: it is dead in the act() path."""
    h = jnp.dot(x_ref[...], wfc_ref[...], preferred_element_type=jnp.float32)
    h = jnp.maximum(h + bfc_ref[...], 0.0)
    hv = jnp.dot(h.astype(wh_ref.dtype), wh_ref[...], preferred_element_type=jnp.float32)
    head_ref[...] = (hv + bh_ref[...]).astype(head_ref.dtype)


# ---------------------------------------------------------------------------
# Pallas-call wrappers
# ---------------------------------------------------------------------------
def conv_matmul(x, w, b, *, out_dtype=jnp.bfloat16, max_tile=_MAX_TILE_M):
    """(M, K) @ (K, 128) + b, ReLU.  M-tiled ('parallel'), K and N kept whole in VMEM."""
    M, K = x.shape
    K2, N = w.shape
    assert K == K2 and b.shape == (1, N)
    tm = _pick_tile(M, max_tile)
    grid_m = pl.cdiv(M, tm)
    cost = pl.CostEstimate(
        flops=2 * M * K * N, transcendentals=0,
        bytes_accessed=(M * K * x.dtype.itemsize + K * N * w.dtype.itemsize
                        + N * 4 + M * N * jnp.dtype(out_dtype).itemsize))
    return pl.pallas_call(
        _matmul_bias_relu_kernel,
        out_shape=jax.ShapeDtypeStruct((M, N), out_dtype),
        grid=(grid_m,),
        in_specs=[pl.BlockSpec((tm, K), lambda i: (i, 0)),
                  pl.BlockSpec((K, N), lambda i: (0, 0)),
                  pl.BlockSpec((1, N), lambda i: (0, 0))],
        out_specs=pl.BlockSpec((tm, N), lambda i: (i, 0)),
        compiler_params=pltpu.CompilerParams(
            dimension_semantics=("parallel",), vmem_limit_bytes=_VMEM_LIMIT),
        cost_estimate=cost,
    )(x, w, b)


def fused_fc_heads(x, wfc, bfc, wh, bh, *, max_tile=256):
    """Fused FC(1568->512)+ReLU and critic/dist heads, B-tiled, heads-only output."""
    B, K = x.shape
    H = wfc.shape[1]
    Nh = wh.shape[1]
    tb = _pick_tile(B, max_tile)
    grid_b = pl.cdiv(B, tb)
    cost = pl.CostEstimate(
        flops=2 * B * K * H + 2 * B * H * Nh, transcendentals=0,
        bytes_accessed=(B * K * x.dtype.itemsize + K * H * wfc.dtype.itemsize
                        + H * Nh * wh.dtype.itemsize + (H + Nh) * 4 + B * Nh * 4))
    return pl.pallas_call(
        _fc_heads_kernel,
        out_shape=jax.ShapeDtypeStruct((B, Nh), jnp.float32),
        grid=(grid_b,),
        in_specs=[pl.BlockSpec((tb, K), lambda i: (i, 0)),
                  pl.BlockSpec((K, H), lambda i: (0, 0)),
                  pl.BlockSpec((1, H), lambda i: (0, 0)),
                  pl.BlockSpec((H, Nh), lambda i: (0, 0)),
                  pl.BlockSpec((1, Nh), lambda i: (0, 0))],
        out_specs=pl.BlockSpec((tb, Nh), lambda i: (i, 0)),
        compiler_params=pltpu.CompilerParams(
            dimension_semantics=("parallel",), vmem_limit_bytes=_VMEM_LIMIT),
        cost_estimate=cost,
    )(x, wfc, bfc, wh, bh)


def extract_patches(x_nhwc, k, stride):
    """im2col as ONE fused XLA op; output features ordered (c, kh, kw), matching the
    PyTorch Conv2d weight flatten.  Rows come out in (b, oh, ow) order.
    TODO(synk): fold into the conv kernel as an implicit GEMM to avoid the k^2-amplified
    HBM round trip."""
    p = lax.conv_general_dilated_patches(
        x_nhwc, filter_shape=(k, k), window_strides=(stride, stride),
        padding="VALID", dimension_numbers=("NHWC", "OIHW", "NHWC"))
    B, OH, OW, F = p.shape
    return p.reshape(B * OH * OW, F), OH, OW


# ---------------------------------------------------------------------------
# Pure-XLA reference of the identical bf16/f32 math (runtime self-check)
# ---------------------------------------------------------------------------
def reference_forward(params, inputs, num_inputs=4, num_actions=6):
    def conv_ref(x, wp, cin, cout, k, s):
        w = wp.reshape(cin, k, k, PAD_LANES)[..., :cout].transpose(1, 2, 0, 3)   # HWIO
        y = lax.conv_general_dilated(
            x, w, (s, s), "VALID", dimension_numbers=("NHWC", "HWIO", "NHWC"),
            preferred_element_type=jnp.float32)
        return jnp.maximum(y, 0.0).astype(jnp.bfloat16)

    x = inputs.astype(jnp.bfloat16).transpose(0, 2, 3, 1)
    a = conv_ref(x, params["w1"], num_inputs, C1, 8, 4)
    a = conv_ref(a, params["w2"], C1, C2, 4, 2)
    a = conv_ref(a, params["w3"], C2, C3, 3, 1)
    flat = a.reshape(a.shape[0], -1)                        # NHWC (oh, ow, c) flatten
    h = jnp.maximum(jnp.dot(flat, params["wfc"], preferred_element_type=jnp.float32)
                    + params["bfc"], 0.0)
    head = jnp.dot(h.astype(jnp.bfloat16), params["whead"],
                   preferred_element_type=jnp.float32) + params["bhead"]
    return head[:, 0:1], head[:, 1:1 + num_actions]


# ---------------------------------------------------------------------------
# Policy (CNNBase, non-recurrent, Discrete)
# ---------------------------------------------------------------------------
def make_policy(num_inputs=4, num_actions=6, hidden_size=512):
    """Returns (init_params, act, forward).  Observations are NCHW with 84x84 spatial
    size (fixed by the Linear(32*7*7, hidden) layer of the reference module)."""
    assert 1 + num_actions <= PAD_LANES

    # ---- parameter init (mirrors orthogonal/zero init), then a ONE-TIME TPU re-layout ----
    def init_params(key):
        ks = jax.random.split(key, 6)
        relu_gain = float(2.0 ** 0.5)            # nn.init.calculate_gain('relu')

        def orth(k, shape, gain):
            return jax.nn.initializers.orthogonal(scale=gain)(k, shape, jnp.float32)

        # PyTorch-layout weights (conv kernels flattened per out-channel as (c, kh, kw),
        # exactly the feature ordering lax.conv_general_dilated_patches produces).
        c1 = orth(ks[0], (C1, num_inputs * 8 * 8), relu_gain)
        c2 = orth(ks[1], (C2, C1 * 4 * 4), relu_gain)
        c3 = orth(ks[2], (C3, C2 * 3 * 3), relu_gain)
        fc = orth(ks[3], (hidden_size, C3 * FSPAT), relu_gain)
        cr = orth(ks[4], (1, hidden_size), 1.0)
        ds = orth(ks[5], (num_actions, hidden_size), 0.01)
        # All biases are zero (nn.init.constant_(b, 0)).

        # conv1: fold 1/255 normalisation into the weights; pad OutC -> 128 lanes so every
        # Pallas store is lane-dense.  K stays at the REAL 4*8*8 = 256.
        w1 = jnp.zeros((num_inputs * 64, PAD_LANES), jnp.float32).at[:, :C1].set(c1.T / 255.0)
        # conv2/conv3 consume the DE-PADDED activations -> K = real_Cin * kh * kw.
        w2 = jnp.zeros((C1 * 16, PAD_LANES), jnp.float32).at[:, :C2].set(c2.T)
        w3 = jnp.zeros((C2 * 9, PAD_LANES), jnp.float32).at[:, :C3].set(c3.T)
        # FC: permute rows from PyTorch's NCHW flatten (c, oh, ow) to the NHWC (oh, ow, c)
        # flatten used here.
        wfc = fc.reshape(hidden_size, C3, 7, 7).transpose(2, 3, 1, 0)
        wfc = wfc.reshape(C3 * FSPAT, hidden_size)
        # critic + Categorical-logits heads fused into ONE lane-dense (hidden, 128) matrix.
        wh = jnp.zeros((hidden_size, PAD_LANES), jnp.float32)
        wh = wh.at[:, 0].set(cr[0]).at[:, 1:1 + num_actions].set(ds.T)

        return {
            "w1": w1.astype(jnp.bfloat16), "b1": jnp.zeros((1, PAD_LANES), jnp.float32),
            "w2": w2.astype(jnp.bfloat16), "b2": jnp.zeros((1, PAD_LANES), jnp.float32),
            "w3": w3.astype(jnp.bfloat16), "b3": jnp.zeros((1, PAD_LANES), jnp.float32),
            "wfc": wfc.astype(jnp.bfloat16), "bfc": jnp.zeros((1, hidden_size), jnp.float32),
            "whead": wh.astype(jnp.bfloat16), "bhead": jnp.zeros((1, PAD_LANES), jnp.float32),
        }

    # ---- CNNBase.forward (recurrent=False) + both heads ----
    def forward(params, inputs):
        B = inputs.shape[0]
        # One NCHW f32 -> NHWC bf16 conversion; /255 is folded into w1 (pixel ints are
        # exact in bf16).
        x = inputs.astype(jnp.bfloat16).transpose(0, 2, 3, 1)
        p, oh, ow = extract_patches(x, 8, 4)                                        # (B*400, 256)
        a = conv_matmul(p, params["w1"], params["b1"])                              # (B*400, 128)
        p, oh, ow = extract_patches(a.reshape(B, oh, ow, PAD_LANES)[..., :C1], 4, 2)  # (B*81, 512)
        a = conv_matmul(p, params["w2"], params["b2"])                              # (B*81, 128)
        p, oh, ow = extract_patches(a.reshape(B, oh, ow, PAD_LANES)[..., :C2], 3, 1)  # (B*49, 576)
        a = conv_matmul(p, params["w3"], params["b3"])                              # (B*49, 128)
        # Flatten in NHWC (oh, ow, c) order; the FC weight rows were permuted to match.
        flat = a.reshape(B, oh * ow, PAD_LANES)[..., :C3].reshape(B, oh * ow * C3)
        head = fused_fc_heads(flat, params["wfc"], params["bfc"],
                              params["whead"], params["bhead"])
        value = head[:, 0:1]
        logits = head[:, 1:1 + num_actions]
        # TODO(synk): recurrent GRU branch (_forward_gru) not implemented (recurrent=False).
        return value, logits

    # ---- Policy.act ----
    @functools.partial(jax.jit, static_argnames=("deterministic",))
    def act(params, inputs, rnn_hxs, masks, deterministic=True):
        del masks                                  # only used by the recurrent branch
        value, logits = forward(params, inputs)
        if not deterministic:
            # TODO(synk): stochastic dist.sample() branch not implemented (needs a PRNG key).
            raise NotImplementedError("only deterministic=True (dist.mode) is implemented")
        log_probs = jax.nn.log_softmax(logits, axis=-1)
        action = jnp.argmax(logits, axis=-1, keepdims=True)           # dist.mode()
        action_log_probs = jnp.take_along_axis(log_probs, action, axis=-1)
        return value, action, action_log_probs, rnn_hxs

    return init_params, act, jax.jit(forward)


if __name__ == "__main__":
    key = jax.random.PRNGKey(0)
    pkey, ikey = jax.random.split(key)

    B, C, H, W = 2, 4, 84, 84        # 84x84 spatial is fixed by Linear(32*7*7, 512)
    NUM_ACTIONS = 6

    init_params, act, forward = make_policy(num_inputs=C, num_actions=NUM_ACTIONS,
                                            hidden_size=512)
    params = init_params(pkey)

    inputs = jnp.clip(
        jnp.floor(jax.random.uniform(ikey, (B, C, H, W), jnp.float32, 0.0, 256.0)),
        0.0, 255.0)
    rnn_hxs = jnp.zeros((B, 1), jnp.float32)   # non-recurrent: hidden-state size 1
    masks = jnp.ones((B, 1), jnp.float32)

    value, action, action_log_probs, rnn_hxs_out = act(params, inputs, rnn_hxs, masks)
    jax.block_until_ready((value, action, action_log_probs, rnn_hxs_out))

    assert value.shape == (B, 1)
    assert action.shape == (B, 1)
    assert action_log_probs.shape == (B, 1)
    assert rnn_hxs_out.shape == (B, 1)

    # Numerical self-check: Pallas path vs a pure-XLA reference of the same bf16/f32 math
    # (validates the patch feature ordering and the one-time weight re-layout).
    v_k, l_k = forward(params, inputs)
    v_r, l_r = reference_forward(params, inputs, num_inputs=C, num_actions=NUM_ACTIONS)
    jax.block_until_ready((v_k, l_k, v_r, l_r))
    assert bool(jnp.allclose(v_k, v_r, atol=5e-2, rtol=5e-2)), "value mismatch vs reference"
    assert bool(jnp.allclose(l_k, l_r, atol=5e-2, rtol=5e-2)), "logits mismatch vs reference"

    print("KERNEL_OK")
</pallas_src>

<mosaic_0001>
module attributes {stable_mosaic.version = 11 : i64} {
  func.func @_matmul_bias_relu_kernel(%arg0: i32, %arg1: memref<400x256xbf16, #tpu.memory_space<vmem>>, %arg2: memref<256x128xbf16, #tpu.memory_space<vmem>>, %arg3: memref<1x128xf32, #tpu.memory_space<vmem>>, %arg4: memref<400x128xbf16, #tpu.memory_space<vmem>>) attributes {dimension_semantics = [#tpu.dimension_semantics<parallel>], iteration_bounds = array<i64: 2>, scalar_prefetch = 0 : i64, scratch_operands = 0 : i64, tpu.core_type = #tpu.core_type<tc>, window_params = [{transform_indices = @transform_0, window_bounds = array<i64: 400, 256>}, {pipeline_mode = #tpu.pipeline_mode<synchronous>, transform_indices = @transform_1, window_bounds = array<i64: 256, 128>}, {pipeline_mode = #tpu.pipeline_mode<synchronous>, transform_indices = @transform_2, window_bounds = array<i64: 1, 128>}, {transform_indices = @transform_3, window_bounds = array<i64: 400, 128>}]} {
    %c0 = arith.constant 0 : index
    %c0_0 = arith.constant 0 : index
    %0 = vector.load %arg1[%c0, %c0_0] : memref<400x256xbf16, #tpu.memory_space<vmem>>, vector<400x256xbf16>
    %c0_1 = arith.constant 0 : index
    %c0_2 = arith.constant 0 : index
    %1 = vector.load %arg2[%c0_1, %c0_2] : memref<256x128xbf16, #tpu.memory_space<vmem>>, vector<256x128xbf16>
    %cst = arith.constant dense<0.000000e+00> : vector<400x128xf32>
    %2 = tpu.matmul %0, %1, %cst {dimension_numbers = #tpu.dot_dimension_numbers<[1], [0], [0], [1], [0, 0, 1, 1], [], []>} : vector<400x256xbf16>, vector<256x128xbf16>, vector<400x128xf32> -> vector<400x128xf32>
    %c0_3 = arith.constant 0 : index
    %c0_4 = arith.constant 0 : index
    %3 = vector.load %arg3[%c0_3, %c0_4] : memref<1x128xf32, #tpu.memory_space<vmem>>, vector<1x128xf32>
    %4 = vector.broadcast %3 : vector<1x128xf32> to vector<400x128xf32>
    %5 = arith.addf %2, %4 : vector<400x128xf32>
    %cst_5 = arith.constant 0.000000e+00 : f32
    %6 = vector.broadcast %cst_5 : f32 to vector<400x128xf32>
    %7 = arith.maximumf %5, %6 : vector<400x128xf32>
    %8 = arith.truncf %7 : vector<400x128xf32> to vector<400x128xbf16>
    %c0_6 = arith.constant 0 : index
    %c0_7 = arith.constant 0 : index
    %9 = vector.load %arg4[%c0_6, %c0_7] : memref<400x128xbf16, #tpu.memory_space<vmem>>, vector<400x128xbf16>
    tpu.vector_store %arg4[%c0_6, %c0_7], %8 {strides = array<i32>} : memref<400x128xbf16, #tpu.memory_space<vmem>>, vector<400x128xbf16>,
    return
  }
  func.func @transform_0(%arg0: i32) -> (i32, i32) {
    %c0_i32 = arith.constant 0 : i32
    %c0_i32_0 = arith.constant 0 : i32
    return %arg0, %c0_i32 : i32, i32
  }
  func.func @transform_1(%arg0: i32) -> (i32, i32) {
    %c0_i32 = arith.constant 0 : i32
    %c0_i32_0 = arith.constant 0 : i32
    %c0_i32_1 = arith.constant 0 : i32
    return %c0_i32, %c0_i32_0 : i32, i32
  }
  func.func @transform_2(%arg0: i32) -> (i32, i32) {
    %c0_i32 = arith.constant 0 : i32
    %c0_i32_0 = arith.constant 0 : i32
    %c0_i32_1 = arith.constant 0 : i32
    return %c0_i32, %c0_i32_0 : i32, i32
  }
  func.func @transform_3(%arg0: i32) -> (i32, i32) {
    %c0_i32 = arith.constant 0 : i32
    %c0_i32_0 = arith.constant 0 : i32
    return %arg0, %c0_i32 : i32, i32
  }
}

module attributes {stable_mosaic.version = 11 : i64} {
  func.func @_matmul_bias_relu_kernel(%arg0: i32, %arg1: memref<88x512xbf16, #tpu.memory_space<vmem>>, %arg2: memref<512x128xbf16, #tpu.memory_space<vmem>>, %arg3: memref<1x128xf32, #tpu.memory_space<vmem>>, %arg4: memref<88x128xbf16, #tpu.memory_space<vmem>>) attributes {dimension_semantics = [#tpu.dimension_semantics<parallel>], iteration_bounds = array<i64: 2>, scalar_prefetch = 0 : i64, scratch_operands = 0 : i64, tpu.core_type = #tpu.core_type<tc>, window_params = [{transform_indices = @transform_0, window_bounds = array<i64: 88, 512>}, {pipeline_mode = #tpu.pipeline_mode<synchronous>, transform_indices = @transform_1, window_bounds = array<i64: 512, 128>}, {pipeline_mode = #tpu.pipeline_mode<synchronous>, transform_indices = @transform_2, window_bounds = array<i64: 1, 128>}, {transform_indices = @transform_3, window_bounds = array<i64: 88, 128>}]} {
    %c0 = arith.constant 0 : index
    %c0_0 = arith.constant 0 : index
    %0 = vector.load %arg1[%c0, %c0_0] : memref<88x512xbf16, #tpu.memory_space<vmem>>, vector<88x512xbf16>
    %c0_1 = arith.constant 0 : index
    %c0_2 = arith.constant 0 : index
    %1 = vector.load %arg2[%c0_1, %c0_2] : memref<512x128xbf16, #tpu.memory_space<vmem>>, vector<512x128xbf16>
    %cst = arith.constant dense<0.000000e+00> : vector<88x128xf32>
    %2 = tpu.matmul %0, %1, %cst {dimension_numbers = #tpu.dot_dimension_numbers<[1], [0], [0], [1], [0, 0, 1, 1], [], []>} : vector<88x512xbf16>, vector<512x128xbf16>, vector<88x128xf32> -> vector<88x128xf32>
    %c0_3 = arith.constant 0 : index
    %c0_4 = arith.constant 0 : index
    %3 = vector.load %arg3[%c0_3, %c0_4] : memref<1x128xf32, #tpu.memory_space<vmem>>, vector<1x128xf32>
    %4 = vector.broadcast %3 : vector<1x128xf32> to vector<88x128xf32>
    %5 = arith.addf %2, %4 : vector<88x128xf32>
    %cst_5 = arith.constant 0.000000e+00 : f32
    %6 = vector.broadcast %cst_5 : f32 to vector<88x128xf32>
    %7 = arith.maximumf %5, %6 : vector<88x128xf32>
    %8 = arith.truncf %7 : vector<88x128xf32> to vector<88x128xbf16>
    %c0_6 = arith.constant 0 : index
    %c0_7 = arith.constant 0 : index
    %9 = vector.load %arg4[%c0_6, %c0_7] : memref<88x128xbf16, #tpu.memory_space<vmem>>, vector<88x128xbf16>
    tpu.vector_store %arg4[%c0_6, %c0_7], %8 {strides = array<i32>} : memref<88x128xbf16, #tpu.memory_space<vmem>>, vector<88x128xbf16>,
    return
  }
  func.func @transform_0(%arg0: i32) -> (i32, i32) {
    %c0_i32 = arith.constant 0 : i32
    %c0_i32_0 = arith.constant 0 : i32
    return %arg0, %c0_i32 : i32, i32
  }
  func.func @transform_1(%arg0: i32) -> (i32, i32) {
    %c0_i32 = arith.constant 0 : i32
    %c0_i32_0 = arith.constant 0 : i32
    %c0_i32_1 = arith.constant 0 : i32
    return %c0_i32, %c0_i32_0 : i32, i32
  }
  func.func @transform_2(%arg0: i32) -> (i32, i32) {
    %c0_i32 = arith.constant 0 : i32
    %c0_i32_0 = arith.constant 0 : i32
    %c0_i32_1 = arith.constant 0 : i32
    return %c0_i32, %c0_i32_0 : i32, i32
  }
  func.func @transform_3(%arg0: i32) -> (i32, i32) {
    %c0_i32 = arith.constant 0 : i32
    %c0_i32_0 = arith.constant 0 : i32
    return %arg0, %c0_i32 : i32, i32
  }
}

module attributes {stable_mosaic.version = 11 : i64} {
  func.func @_matmul_bias_relu_kernel(%arg0: i32, %arg1: memref<56x576xbf16, #tpu.memory_space<vmem>>, %arg2: memref<576x128xbf16, #tpu.memory_space<vmem>>, %arg3: memref<1x128xf32, #tpu.memory_space<vmem>>, %arg4: memref<56x128xbf16, #tpu.memory_space<vmem>>) attributes {dimension_semantics = [#tpu.dimension_semantics<parallel>], iteration_bounds = array<i64: 2>, scalar_prefetch = 0 : i64, scratch_operands = 0 : i64, tpu.core_type = #tpu.core_type<tc>, window_params = [{transform_indices = @transform_0, window_bounds = array<i64: 56, 576>}, {pipeline_mode = #tpu.pipeline_mode<synchronous>, transform_indices = @transform_1, window_bounds = array<i64: 576, 128>}, {pipeline_mode = #tpu.pipeline_mode<synchronous>, transform_indices = @transform_2, window_bounds = array<i64: 1, 128>}, {transform_indices = @transform_3, window_bounds = array<i64: 56, 128>}]} {
    %c0 = arith.constant 0 : index
    %c0_0 = arith.constant 0 : index
    %0 = vector.load %arg1[%c0, %c0_0] : memref<56x576xbf16, #tpu.memory_space<vmem>>, vector<56x576xbf16>
    %c0_1 = arith.constant 0 : index
    %c0_2 = arith.constant 0 : index
    %1 = vector.load %arg2[%c0_1, %c0_2] : memref<576x128xbf16, #tpu.memory_space<vmem>>, vector<576x128xbf16>
    %cst = arith.constant dense<0.000000e+00> : vector<56x128xf32>
    %2 = tpu.matmul %0, %1, %cst {dimension_numbers = #tpu.dot_dimension_numbers<[1], [0], [0], [1], [0, 0, 1, 1], [], []>} : vector<56x576xbf16>, vector<576x128xbf16>, vector<56x128xf32> -> vector<56x128xf32>
    %c0_3 = arith.constant 0 : index
    %c0_4 = arith.constant 0 : index
    %3 = vector.load %arg3[%c0_3, %c0_4] : memref<1x128xf32, #tpu.memory_space<vmem>>, vector<1x128xf32>
    %4 = vector.broadcast %3 : vector<1x128xf32> to vector<56x128xf32>
    %5 = arith.addf %2, %4 : vector<56x128xf32>
    %cst_5 = arith.constant 0.000000e+00 : f32
    %6 = vector.broadcast %cst_5 : f32 to vector<56x128xf32>
    %7 = arith.maximumf %5, %6 : vector<56x128xf32>
    %8 = arith.truncf %7 : vector<56x128xf32> to vector<56x128xbf16>
    %c0_6 = arith.constant 0 : index
    %c0_7 = arith.constant 0 : index
    %9 = vector.load %arg4[%c0_6, %c0_7] : memref<56x128xbf16, #tpu.memory_space<vmem>>, vector<56x128xbf16>
    tpu.vector_store %arg4[%c0_6, %c0_7], %8 {strides = array<i32>} : memref<56x128xbf16, #tpu.memory_space<vmem>>, vector<56x128xbf16>,
    return
  }
  func.func @transform_0(%arg0: i32) -> (i32, i32) {
    %c0_i32 = arith.constant 0 : i32
    %c0_i32_0 = arith.constant 0 : i32
    return %arg0, %c0_i32 : i32, i32
  }
  func.func @transform_1(%arg0: i32) -> (i32, i32) {
    %c0_i32 = arith.constant 0 : i32
    %c0_i32_0 = arith.constant 0 : i32
    %c0_i32_1 = arith.constant 0 : i32
    return %c0_i32, %c0_i32_0 : i32, i32
  }
  func.func @transform_2(%arg0: i32) -> (i32, i32) {
    %c0_i32 = arith.constant 0 : i32
    %c0_i32_0 = arith.constant 0 : i32
    %c0_i32_1 = arith.constant 0 : i32
    return %c0_i32, %c0_i32_0 : i32, i32
  }
  func.func @transform_3(%arg0: i32) -> (i32, i32) {
    %c0_i32 = arith.constant 0 : i32
    %c0_i32_0 = arith.constant 0 : i32
    return %arg0, %c0_i32 : i32, i32
  }
}

module attributes {stable_mosaic.version = 11 : i64} {
  func.func @_fc_heads_kernel(%arg0: i32, %arg1: memref<2x1568xbf16, #tpu.memory_space<vmem>>, %arg2: memref<1568x512xbf16, #tpu.memory_space<vmem>>, %arg3: memref<1x512xf32, #tpu.memory_space<vmem>>, %arg4: memref<512x128xbf16, #tpu.memory_space<vmem>>, %arg5: memref<1x128xf32, #tpu.memory_space<vmem>>, %arg6: memref<2x128xf32, #tpu.memory_space<vmem>>) attributes {dimension_semantics = [#tpu.dimension_semantics<parallel>], iteration_bounds = array<i64: 1>, scalar_prefetch = 0 : i64, scratch_operands = 0 : i64, tpu.core_type = #tpu.core_type<tc>, window_params = [{transform_indices = @transform_0, window_bounds = array<i64: 2, 1568>}, {pipeline_mode = #tpu.pipeline_mode<synchronous>, transform_indices = @transform_1, window_bounds = array<i64: 1568, 512>}, {pipeline_mode = #tpu.pipeline_mode<synchronous>, transform_indices = @transform_2, window_bounds = array<i64: 1, 512>}, {pipeline_mode = #tpu.pipeline_mode<synchronous>, transform_indices = @transform_3, window_bounds = array<i64: 512, 128>}, {pipeline_mode = #tpu.pipeline_mode<synchronous>, transform_indices = @transform_4, window_bounds = array<i64: 1, 128>}, {transform_indices = @transform_5, window_bounds = array<i64: 2, 128>}]} {
    %c0 = arith.constant 0 : index
    %c0_0 = arith.constant 0 : index
    %0 = vector.load %arg1[%c0, %c0_0] : memref<2x1568xbf16, #tpu.memory_space<vmem>>, vector<2x1568xbf16>
    %c0_1 = arith.constant 0 : index
    %c0_2 = arith.constant 0 : index
    %1 = vector.load %arg2[%c0_1, %c0_2] : memref<1568x512xbf16, #tpu.memory_space<vmem>>, vector<1568x512xbf16>
    %cst = arith.constant dense<0.000000e+00> : vector<2x512xf32>
    %2 = tpu.matmul %0, %1, %cst {dimension_numbers = #tpu.dot_dimension_numbers<[1], [0], [0], [1], [0, 0, 1, 1], [], []>} : vector<2x1568xbf16>, vector<1568x512xbf16>, vector<2x512xf32> -> vector<2x512xf32>
    %c0_3 = arith.constant 0 : index
    %c0_4 = arith.constant 0 : index
    %3 = vector.load %arg3[%c0_3, %c0_4] : memref<1x512xf32, #tpu.memory_space<vmem>>, vector<1x512xf32>
    %4 = vector.broadcast %3 : vector<1x512xf32> to vector<2x512xf32>
    %5 = arith.addf %2, %4 : vector<2x512xf32>
    %cst_5 = arith.constant 0.000000e+00 : f32
    %6 = vector.broadcast %cst_5 : f32 to vector<2x512xf32>
    %7 = arith.maximumf %5, %6 : vector<2x512xf32>
    %8 = arith.truncf %7 : vector<2x512xf32> to vector<2x512xbf16>
    %c0_6 = arith.constant 0 : index
    %c0_7 = arith.constant 0 : index
    %9 = vector.load %arg4[%c0_6, %c0_7] : memref<512x128xbf16, #tpu.memory_space<vmem>>, vector<512x128xbf16>
    %cst_8 = arith.constant dense<0.000000e+00> : vector<2x128xf32>
    %10 = tpu.matmul %8, %9, %cst_8 {dimension_numbers = #tpu.dot_dimension_numbers<[1], [0], [0], [1], [0, 0, 1, 1], [], []>} : vector<2x512xbf16>, vector<512x128xbf16>, vector<2x128xf32> -> vector<2x128xf32>
    %c0_9 = arith.constant 0 : index
    %c0_10 = arith.constant 0 : index
    %11 = vector.load %arg5[%c0_9, %c0_10] : memref<1x128xf32, #tpu.memory_space<vmem>>, vector<1x128xf32>
    %12 = vector.broadcast %11 : vector<1x128xf32> to vector<2x128xf32>
    %13 = arith.addf %10, %12 : vector<2x128xf32>
    %c0_11 = arith.constant 0 : index
    %c0_12 = arith.constant 0 : index
    %14 = vector.load %arg6[%c0_11, %c0_12] : memref<2x128xf32, #tpu.memory_space<vmem>>, vector<2x128xf32>
    tpu.vector_store %arg6[%c0_11, %c0_12], %13 {strides = array<i32>} : memref<2x128xf32, #tpu.memory_space<vmem>>, vector<2x128xf32>,
    return
  }
  func.func @transform_0(%arg0: i32) -> (i32, i32) {
    %c0_i32 = arith.constant 0 : i32
    %c0_i32_0 = arith.constant 0 : i32
    return %arg0, %c0_i32 : i32, i32
  }
  func.func @transform_1(%arg0: i32) -> (i32, i32) {
    %c0_i32 = arith.constant 0 : i32
    %c0_i32_0 = arith.constant 0 : i32
    %c0_i32_1 = arith.constant 0 : i32
    return %c0_i32, %c0_i32_0 : i32, i32
  }
  func.func @transform_2(%arg0: i32) -> (i32, i32) {
    %c0_i32 = arith.constant 0 : i32
    %c0_i32_0 = arith.constant 0 : i32
    %c0_i32_1 = arith.constant 0 : i32
    return %c0_i32, %c0_i32_0 : i32, i32
  }
  func.func @transform_3(%arg0: i32) -> (i32, i32) {
    %c0_i32 = arith.constant 0 : i32
    %c0_i32_0 = arith.constant 0 : i32
    %c0_i32_1 = arith.constant 0 : i32
    return %c0_i32, %c0_i32_0 : i32, i32
  }
  func.func @transform_4(%arg0: i32) -> (i32, i32) {
    %c0_i32 = arith.constant 0 : i32
    %c0_i32_0 = arith.constant 0 : i32
    %c0_i32_1 = arith.constant 0 : i32
    return %c0_i32, %c0_i32_0 : i32, i32
  }
  func.func @transform_5(%arg0: i32) -> (i32, i32) {
    %c0_i32 = arith.constant 0 : i32
    %c0_i32_0 = arith.constant 0 : i32
    return %arg0, %c0_i32 : i32, i32
  }
}

</mosaic_0001>

<bundles_post_ra>
// kernel: act.4
= control target key start
LH: loop header
LB: loop body
LE: loop exit
PB: predicated region body
PF: predicated region fallthrough
CT: control target
= control target key end

     0   :  { %8 = vsyncpa [#allocation3], 0  ;;  %s2416_s0 = inlined_call_operand.hbm [shape: bf16[800,256], index: 0, kind: input, shape index: {}]   ;;  %s2417_s1 = inlined_call_operand.hbm [shape: bf16[256,128], index: 1, kind: input, shape index: {}]   ;;  %s2418_s2 = inlined_call_operand.hbm [shape: f32[1,128], index: 2, kind: input, shape index: {}]   ;;  %s2419_s3 = inlined_call_operand.hbm [shape: bf16[800,128], index: 3, kind: output, shape index: {}]  }
   0x1   :  { %10 = vsyncpa [#allocation3 + $0x1], 0 }
   0x2   :  { %11 = vsyncpa [#allocation6], 0 }
   0x3   :  { %12 = vsyncpa [#allocation4], 0 }
   0x4   :  { %14 = vsyncpa [#allocation4 + $0x1], 0  ;;  %s2016_s12 = smov 0   ;;  %s2018_s13 = smov 0  }
   0x5   :  { %s2020_s14 = smov 0   ;;  %s2022_s15 = smov 0  }
   0x6 LB: > { %s2037_s16 = sadd.s32 4294967295, %s1983_s15   ;;  %s1294_s17 = sadd.s32 4294967294, %s1983_s15   ;;  %s1983_s15 = sphi %s2022_s15, %s2439_s15   ;;  %s1979_s14 = sphi %s2020_s14, %s2438_s14   ;;  %s1975_s13 = sphi %s2018_s13, %s2437_s13   ;;  %s1971_s12 = sphi %s2016_s12, %s2436_s12  }
   0x7   : > { %p40_p0 = scmp.ne.s32.totalorder %s1975_s13, %s1971_s12  ;;  %p2420_p1 = scmp.eq.s32.totalorder %s2037_s16, 0 }
   0x8   : > { %p112_p3 = scmp.eq.s32.totalorder %s1294_s17, 1  ;;  %p1295_p5 = scmp.ge.s32.totalorder %s1983_s15, 1 }
   0x9   : > { %p2046_p4 = por %p2420_p1, %p40_p0  ;;  %p119_p7 = scmp.lt.s32.totalorder %s1983_s15, 3 }
   0xa   : > { %p2051_p6 = por %p112_p3, %p40_p0  ;;  %s1985_s21 = smov [#allocation5]  }
   0xb   : > { %s2423_s18 = scalar_select %p2046_p4, 1, 0 }
   0xc   : > { %s2424_s19 = scalar_select %p2051_p6, 1, 0 }
   0xd   : > { %p2056_p8 = pnand %p1295_p5, %p119_p7  ;;  %s131_s22 = sshll.u32 %s1985_s21, 4  ;;  %s2060_s22 = int_to_ptr.vmem [resolvable:$true] %s131_s22 }
   0xe   : > { %s1986_s24 = smov [#allocation7]   ;;  %s1827_s28 = scalar_lea.hbm %s2417_s1, 2048 }
   0xf   : > { %p1674_p9 = pneg %p2056_p8  ;;  %s145_s25 = sshll.u32 %s1986_s24, 4  ;;  %s2071_s25 = int_to_ptr.vmem [resolvable:$true] %s145_s25 }
  0x10   : > { %p1828_p12 = scmp.ne.s32.totalorder %s2417_s1, %s1827_s28  ;;  %p1834_p5 = scmp.lt.u32.totalorder %s1827_s28, %s2417_s1 }
  0x11   : > { %p2067_p11 = pnand %p1674_p9, %p2420_p1 }
  0x13   : > { %p1829_p13 = pneg %p2067_p11 }
  0x15   : > { %p1830_p0 = pnand %p1829_p13, %p1828_p12 }
  0x17   : > { %p1831_p3 = pneg %p1830_p0 }
  0x19   : > { %p1836_p7 = pnand %p1834_p5, %p1831_p3 }
  0x1b   : > { %1839 = shalt.err (!%p1836_p7)
}
  0x1c   : > { %s1840_s6 = scalar_lea.vmem %s2060_s22, 2048  ;;  %p1848_p2 = scmp.lt.s32.totalorder %s2060_s22, %s2060_s22 }
  0x1d   : > { %p1841_p9 = scmp.ne.s32.totalorder %s2060_s22, %s1840_s6  ;;  %p1849_p12 = scmp.lt.s32.totalorder %s1840_s6, %s1840_s6 }
  0x1f   : > { %p1843_p10 = pnand %p1841_p9, %p1829_p13  ;;  %p1850_p0 = por %p1849_p12, %p1848_p2 }
  0x21   : > { %p1844_p1 = pneg %p1843_p10 }
  0x23   : > { %p1851_p6 = pnand %p1850_p0, %p1844_p1 }
  0x25   : > { %1854 = shalt.err (!%p1851_p6)
}
  0x26   : > { %s1987_s7 = smov 64   ;;  %s1988_s8 = smov 4  }
  0x27   : > { %1677 = dma.hbm_to_vmem [thread:$0]  (!%p2067_p11), %s2417_s1, 2048, %s2060_s22, [#allocation6], %s1987_s7, %s1987_s7, %s1988_s8  }
  0x28   : > { %s1855_s21 = scalar_lea.hbm %s2418_s2, 16 }
  0x29   : > { %p1856_p2 = scmp.ne.s32.totalorder %s2418_s2, %s1855_s21  ;;  %p1862_p10 = scmp.lt.u32.totalorder %s1855_s21, %s2418_s2 }
  0x2b   : > { %p1858_p1 = pnand %p1856_p2, %p1829_p13 }
  0x2d   : > { %p1859_p6 = pneg %p1858_p1 }
  0x2f   : > { %p1864_p3 = pnand %p1862_p10, %p1859_p6 }
  0x31   : > { %1867 = shalt.err (!%p1864_p3)
}
  0x32   : > { %s1868_s22 = scalar_lea.vmem %s2071_s25, 16  ;;  %s1875_s29 = scalar_lea.vmem %s2071_s25, 32 }
  0x33   : > { %p1869_p5 = scmp.ne.s32.totalorder %s2071_s25, %s1868_s22  ;;  %p1876_p12 = scmp.lt.s32.totalorder %s2071_s25, %s2071_s25 }
  0x34   : > { %p1877_p0 = scmp.lt.s32.totalorder %s1875_s29, %s1868_s22 }
  0x35   : > { %p1871_p7 = pnand %p1869_p5, %p1829_p13 }
  0x36   : > { %p1878_p2 = por %p1877_p0, %p1876_p12 }
  0x37   : > { %p1872_p9 = pneg %p1871_p7 }
  0x39   : > { %p1879_p1 = pnand %p1878_p2, %p1872_p9 }
  0x3b   : > { %1882 = shalt.err (!%p1879_p1)
}
  0x3c   : > { %1680 = dma.hbm_to_vmem [thread:$0]  (!%p2067_p11), %s2418_s2, 16, %s2071_s25, [#allocation6]  }
  0x3d   : > { %s2127_s5 = sadd.s32 1, %s1983_s15   ;;  %s27_s23 = sadd.s32 1, %s1979_s14 }
  0x3e   : > { %s24_s6 = ssub.s32 %s1983_s15, %s2127_s5  ;;  %p34_p13 = scmp.ne.s32.totalorder %s1979_s14, %s1975_s13 }
  0x3f   : > { %p25_p6 = scmp.eq.s32.totalorder %s24_s6, 0  ;;  %p35_p10 = scmp.eq.s32.totalorder %s1983_s15, 0 }
  0x40   : > { %p2427_p3 = scmp.eq.s32.totalorder %s2037_s16, 1  ;;  %p1691_p7 = scmp.lt.s32.totalorder %s1983_s15, 2 }
  0x41   : > { %s2143_s8 = scalar_select %p25_p6, %s1979_s14, %s27_s23  }
  0x42   : > { %p2137_p5 = por %p2427_p3, %p34_p13  ;;  %p36_p9 = por %p35_p10, %p34_p13 }
  0x43   : > { %s156_s9 = sand.u32 1, %s1979_s14   ;;  %s1602_s25 = smul.u32 6400, %s1983_s15 }
  0x44   : > { %s2428_s7 = scalar_select %p2137_p5, 1, 0 }
  0x45   : > { %s1659_s10 = smul.u32 400, %s156_s9  ;;  %p2147_p11 = pnand %p1691_p7, %p36_p9 }
  0x46   : > { %s2154_s24 = scalar_lea.hbm %s2416_s0, %s1602_s25  ;;  %s2158_s28 = scalar_lea.sflag [#allocation3], %s156_s9 }
  0x47   : > { %s160_s26 = scalar_lea.vmem [#allocation2], %s1659_s10  ;;  %s1883_s22 = scalar_lea.hbm %s2154_s24, 6400 }
  0x48   : > { %s168_s27 = sshll.u32 %s160_s26, 4  ;;  %p1884_p12 = scmp.ne.s32.totalorder %s2154_s24, %s1883_s22  ;;  %s2156_s27 = int_to_ptr.vmem [resolvable:$true] %s168_s27 }
  0x49   : > { %p1885_p0 = pneg %p2147_p11  ;;  %s1888_s4 = scalar_lea.hbm %s2416_s0, 12800 }
  0x4a   : > { %p1889_p13 = scmp.lt.u32.totalorder %s2154_s24, %s2416_s0  ;;  %p1890_p6 = scmp.lt.u32.totalorder %s1888_s4, %s1883_s22 }
  0x4b   : > { %p1886_p2 = pnand %p1885_p0, %p1884_p12  ;;  %p1892_p3 = scmp.lt.u32.totalorder %s1883_s22, %s2154_s24 }
  0x4c   : > { %p1891_p10 = por %p1890_p6, %p1889_p13 }
  0x4d   : > { %p1887_p1 = pneg %p1886_p2 }
  0x4e   : > { %p1893_p7 = por %p1892_p3, %p1891_p10 }
  0x50   : > { %p1894_p9 = pnand %p1893_p7, %p1887_p1 }
  0x52   : > { %1897 = shalt.err (!%p1894_p9)
}
  0x53   : > { %s1898_s9 = scalar_lea.vmem %s2156_s27, 6400  ;;  %s1989_s10 = smov [#allocation2]  }
  0x54   : > { %p1899_p12 = scmp.ne.s32.totalorder %s2156_s27, %s1898_s9  ;;  %s1903_s25 = sshll.u32 %s1989_s10, 4  ;;  %s1904_s25 = int_to_ptr.vmem [resolvable:$false] %s1903_s25 }
  0x55   : > { %s1905_s17 = scalar_lea.vmem %s1904_s25, 12800  ;;  %p1906_p4 = scmp.lt.s32.totalorder %s2156_s27, %s1904_s25 }
  0x56   : > { %p1901_p2 = pnand %p1899_p12, %p1885_p0  ;;  %p1907_p13 = scmp.lt.s32.totalorder %s1905_s17, %s1898_s9 }
  0x58   : > { %p1902_p5 = pneg %p1901_p2  ;;  %p1908_p6 = por %p1907_p13, %p1906_p4 }
  0x5a   : > { %p1909_p10 = pnand %p1908_p6, %p1902_p5 }
  0x5c   : > { %1912 = shalt.err (!%p1909_p10)
}
  0x5d   : > { %s1990_s21 = smov 128   ;;  %s1991_s26 = smov 8  }
  0x5e   : > { %1684 = dma.hbm_to_vmem [thread:$0]  (!%p2147_p11), %s2154_s24, 6400, %s2156_s27, %s2158_s28, %s1990_s21, %s1990_s21, %s1991_s26  }
  0x5f   : > { %180 = sbr.rel (%p2056_p8) target bundleno = 502 (0x1f6), region = 32  ;;  %s2189_s22 = sand.u32 (!%p2056_p8), 1, %s1975_s13  }
  0x60   : > { %s1660_s29 = smul.u32 (!%p2056_p8), 400, %s2189_s22  ;;  %s183_s30 = scalar_lea.sflag (!%p2056_p8), [#allocation3], %s2189_s22 }
  0x61   : > { %p2430_p4 = scmp.ne.s32.totalorder (!%p2056_p8), %s2423_s18, 0 }
  0x62   : > { %s2193_s4 = scalar_lea.vmem (!%p2056_p8), [#allocation2], %s1660_s29 }
  0x66   : > { %1958 = dma.done.wait (%p2430_p4), %s183_s30, 6400  }
  0x67   : > { %1960 = vsyncadd (%p2430_p4), %s183_s30, 4294960896  ;;  %p2431_p5 = scmp.eq.s32.totalorder %s2037_s16, 0 }
  0x69   : > { %1962 = dma.done.wait (%p2431_p5), [#allocation6], 2064   ;;  %p2432_p8 = pmov %p2431_p5 }
  0x6a   : > { %v1992_v0 = vmov 0   ;;  %v1736_v1 = vld [vmem:[#allocation5] sm:$0xff]   ;;  %v1737_v2 = vld [vmem:[#allocation5 + $0x8] sm:$0xff]   ;;  %v1738_v3 = vld [vmem:[#allocation5 + $0x10] sm:$0xff]   ;;  %s1661_s18 = smul.u32 200, %s2189_s22  ;;  %s1189_s6 = scalar_lea.sflag [#allocation4], %s2189_s22 }
  0x6b   : > { %1964 = vsyncadd (%p2432_p8), [#allocation6], 4294965232  ;;  %655 = vmatprep.subr.bf16.mxu0 %v1992_v0  ;;  %1627 = vmatprep.subr.bf16.mxu1 %v1992_v0  ;;  %v1739_v4 = vld [vmem:[#allocation5 + $0x18] sm:$0xff]   ;;  %v1740_v5 = vld [vmem:[#allocation5 + $0x20] sm:$0xff]   ;;  %s1476_s11 = smul.u32 3200, %s2037_s16  ;;  %p2433_p0 = scmp.ne.s32.totalorder %s2428_s7, 0 }
  0x6c   : > { %656 = vmatpush1.bf16.msra.mxu0 %v1736_v1  ;;  %1643 = vmatpush1.bf16.msra.mxu1 %v1736_v1  ;;  %v1754_v6 = vld [vmem:[%s2193_s4 + $0x4] ss:$8 sps:$4 sm:$0xff]   ;;  %v1757_v8 = vld [vmem:[%s2193_s4 + $0xd4] ss:$8 sps:$4 sm:$0xff]   ;;  %v1752_v19 = vld [vmem:[%s2193_s4] ss:$8 sps:$4 sm:$0xff]  }
  0x6d   : > { %657 = vmatprep.subr.bf16.mxu0 %v1992_v0  ;;  %1628 = vmatprep.subr.bf16.mxu1 %v1992_v0  ;;  %v1741_v7 = vld [vmem:[#allocation5 + $0x28] sm:$0xff]   ;;  %v1742_v9 = vld [vmem:[#allocation5 + $0x30] sm:$0xff]   ;;  %v1743_v10 = vld [vmem:[#allocation5 + $0x38] sm:$0xff]   ;;  %s2292_s20 = scalar_lea.vmem [#allocation8], %s1661_s18  ;;  %s2369_s23 = scalar_lea.hbm %s2419_s3, %s1476_s11 }
  0x6e   : > { %687 = vmatprep.mubr.bf16.mxu0 %v1754_v6  ;;  %791 = vmatprep.mubr.bf16.mxu1 %v1757_v8  ;;  %v1744_v11 = vld [vmem:[#allocation5 + $0x40] sm:$0xff]   ;;  %v1745_v12 = vld [vmem:[#allocation5 + $0x48] sm:$0xff]   ;;  %v1746_v13 = vld [vmem:[#allocation5 + $0x50] sm:$0xff]   ;;  %s1202_s24 = sshll.u32 %s2292_s20, 4  ;;  %s1993_s9 = smov [#allocation8]   ;;  %s2371_s24 = int_to_ptr.vmem [resolvable:$true] %s1202_s24 }
  0x6f   : > { %v1747_v14 = vld [vmem:[#allocation5 + $0x58] sm:$0xff]   ;;  %v1748_v15 = vld [vmem:[#allocation5 + $0x60] sm:$0xff]   ;;  %v1749_v16 = vld [vmem:[#allocation5 + $0x68] sm:$0xff]   ;;  %s1913_s16 = scalar_lea.vmem %s2371_s24, 3200  ;;  %s1917_s10 = sshll.u32 %s1993_s9, 4  ;;  %s1918_s10 = int_to_ptr.vmem [resolvable:$false] %s1917_s10 }
  0x70   : > { %658 = vmatpush1.bf16.msra.mxu0 %v1737_v2  ;;  %1644 = vmatpush1.bf16.msra.mxu1 %v1737_v2  ;;  %v1750_v17 = vld [vmem:[#allocation5 + $0x70] sm:$0xff]   ;;  %v1751_v18 = vld [vmem:[#allocation5 + $0x78] sm:$0xff]   ;;  %p1914_p11 = scmp.ne.s32.totalorder %s2371_s24, %s1913_s16  ;;  %s1919_s25 = scalar_lea.vmem %s1918_s10, 6400 }
  0x71   : > { %659 = vmatprep.subr.bf16.mxu0 %v1992_v0  ;;  %1629 = vmatprep.subr.bf16.mxu1 %v1992_v0  ;;  %v1755_v20 = vld [vmem:[%s2193_s4 + $0xd0] ss:$8 sps:$4 sm:$0xff]   ;;  %v1758_v21 = vld [vmem:[%s2193_s4 + $0x14] ss:$8 sps:$4 sm:$0xff]   ;;  %v1761_v22 = vld [vmem:[%s2193_s4 + $0xe4] ss:$8 sps:$4 sm:$0xff]   ;;  %p1920_p7 = scmp.lt.s32.totalorder %s2371_s24, %s1918_s10  ;;  %p1921_p9 = scmp.lt.s32.totalorder %s1919_s25, %s1913_s16 }
  0x72   : > { %v1760_v23 = vld [vmem:[%s2193_s4 + $0x10] ss:$8 sps:$4 sm:$0xff]   ;;  %v1763_v24 = vld [vmem:[%s2193_s4 + $0xe0] ss:$8 sps:$4 sm:$0xff]   ;;  %v1764_v25 = vld [vmem:[%s2193_s4 + $0x24] ss:$8 sps:$4 sm:$0xff]   ;;  %p1915_p1 = pnand %p1914_p11, %p2433_p0 }
  0x73   : > { %v1767_v26 = vld [vmem:[%s2193_s4 + $0xf4] ss:$8 sps:$4 sm:$0xff]   ;;  %v1766_v27 = vld [vmem:[%s2193_s4 + $0x20] ss:$8 sps:$4 sm:$0xff]   ;;  %v1769_v28 = vld [vmem:[%s2193_s4 + $0xf0] ss:$8 sps:$4 sm:$0xff]   ;;  %p1922_p12 = por %p1921_p9, %p1920_p7 }
  0x74   : > { %660 = vmatpush1.bf16.msra.mxu0 %v1738_v3  ;;  %1645 = vmatpush1.bf16.msra.mxu1 %v1738_v3  ;;  %v1770_v29 = vld [vmem:[%s2193_s4 + $0x34] ss:$8 sps:$4 sm:$0xff]   ;;  %v1773_v30 = vld [vmem:[%s2193_s4 + $0x104] ss:$8 sps:$4 sm:$0xff]   ;;  %v1772_v31 = vld [vmem:[%s2193_s4 + $0x30] ss:$8 sps:$4 sm:$0xff]   ;;  %p1916_p3 = pneg %p1915_p1 }
  0x75   : > { %661 = vmatprep.subr.bf16.mxu0 %v1992_v0  ;;  %1630 = vmatprep.subr.bf16.mxu1 %v1992_v0  ;;  %v1775_v32 = vld [vmem:[%s2193_s4 + $0x100] ss:$8 sps:$4 sm:$0xff]   ;;  %v1776_v33 = vld [vmem:[%s2193_s4 + $0x44] ss:$8 sps:$4 sm:$0xff]   ;;  %v1779_v34 = vld [vmem:[%s2193_s4 + $0x114] ss:$8 sps:$4 sm:$0xff]  }
  0x76   : > { %v1778_v35 = vld [vmem:[%s2193_s4 + $0x40] ss:$8 sps:$4 sm:$0xff]   ;;  %v1781_v36 = vld [vmem:[%s2193_s4 + $0x110] ss:$8 sps:$4 sm:$0xff]   ;;  %v1782_v37 = vld [vmem:[%s2193_s4 + $0x54] ss:$8 sps:$4 sm:$0xff]   ;;  %p1923_p2 = pnand %p1922_p12, %p1916_p3 }
  0x77   : > { %v1785_v38 = vld [vmem:[%s2193_s4 + $0x124] ss:$8 sps:$4 sm:$0xff]   ;;  %v1784_v39 = vld [vmem:[%s2193_s4 + $0x50] ss:$8 sps:$4 sm:$0xff]   ;;  %v1787_v40 = vld [vmem:[%s2193_s4 + $0x120] ss:$8 sps:$4 sm:$0xff]  }
  0x78   : > { %662 = vmatpush1.bf16.msra.mxu0 %v1739_v4  ;;  %1646 = vmatpush1.bf16.msra.mxu1 %v1739_v4  ;;  %v1788_v41 = vld [vmem:[%s2193_s4 + $0x64] ss:$8 sps:$4 sm:$0xff]   ;;  %v1791_v42 = vld [vmem:[%s2193_s4 + $0x134] ss:$8 sps:$4 sm:$0xff]   ;;  %v1790_v43 = vld [vmem:[%s2193_s4 + $0x60] ss:$8 sps:$4 sm:$0xff]  }
  0x79   : > { %663 = vmatprep.subr.bf16.mxu0 %v1992_v0  ;;  %1631 = vmatprep.subr.bf16.mxu1 %v1992_v0  ;;  %v1793_v44 = vld [vmem:[%s2193_s4 + $0x130] ss:$8 sps:$4 sm:$0xff]   ;;  %v1794_v45 = vld [vmem:[%s2193_s4 + $0x74] ss:$8 sps:$4 sm:$0xff]   ;;  %v1797_v46 = vld [vmem:[%s2193_s4 + $0x144] ss:$8 sps:$4 sm:$0xff]  }
  0x7a   : > { %v1796_v47 = vld [vmem:[%s2193_s4 + $0x70] ss:$8 sps:$4 sm:$0xff]   ;;  %v1799_v48 = vld [vmem:[%s2193_s4 + $0x140] ss:$8 sps:$4 sm:$0xff]   ;;  %v1800_v49 = vld [vmem:[%s2193_s4 + $0x84] ss:$8 sps:$4 sm:$0xff]  }
  0x7b   : > { %v1803_v50 = vld [vmem:[%s2193_s4 + $0x154] ss:$8 sps:$4 sm:$0xff]   ;;  %v1802_v51 = vld [vmem:[%s2193_s4 + $0x80] ss:$8 sps:$4 sm:$0xff]   ;;  %v1805_v52 = vld [vmem:[%s2193_s4 + $0x150] ss:$8 sps:$4 sm:$0xff]  }
  0x7c   : > { %664 = vmatpush1.bf16.msra.mxu0 %v1740_v5  ;;  %1647 = vmatpush1.bf16.msra.mxu1 %v1740_v5  ;;  %v1806_v53 = vld [vmem:[%s2193_s4 + $0x94] ss:$8 sps:$4 sm:$0xff]   ;;  %v1809_v54 = vld [vmem:[%s2193_s4 + $0x164] ss:$8 sps:$4 sm:$0xff]   ;;  %v1808_v55 = vld [vmem:[%s2193_s4 + $0x90] ss:$8 sps:$4 sm:$0xff]  }
  0x7d   : > { %665 = vmatprep.subr.bf16.mxu0 %v1992_v0  ;;  %1632 = vmatprep.subr.bf16.mxu1 %v1992_v0  ;;  %v1811_v56 = vld [vmem:[%s2193_s4 + $0x160] ss:$8 sps:$4 sm:$0xff]   ;;  %v1812_v57 = vld [vmem:[%s2193_s4 + $0xa4] ss:$8 sps:$4 sm:$0xff]   ;;  %v1815_v58 = vld [vmem:[%s2193_s4 + $0x174] ss:$8 sps:$4 sm:$0xff]  }
  0x7e   : > { %v1814_v59 = vld [vmem:[%s2193_s4 + $0xa0] ss:$8 sps:$4 sm:$0xff]   ;;  %v1817_v60 = vld [vmem:[%s2193_s4 + $0x170] ss:$8 sps:$4 sm:$0xff]   ;;  %v1818_v61 = vld [vmem:[%s2193_s4 + $0xb4] ss:$8 sps:$4 sm:$0xff]  }
  0x7f   : > { %v1821_v62 = vld [vmem:[%s2193_s4 + $0x184] ss:$8 sps:$4 sm:$0xff]   ;;  %v1820_v63 = vld [vmem:[%s2193_s4 + $0xb0] ss:$8 sps:$4 sm:$0xff]   ;;  %v1826_v2 = vld [vmem:[%s2193_s4 + $0xc0] ss:$8 sps:$4 sm:$0xff]  }
  0x80   : > { %666 = vmatpush1.bf16.msra.mxu0 %v1741_v7  ;;  %1648 = vmatpush1.bf16.msra.mxu1 %v1741_v7  ;;  %v1824_v1 = vld [vmem:[%s2193_s4 + $0xc4] ss:$8 sps:$4 sm:$0xff]   ;;  %v2285_v3 = vld [vmem:[#allocation7] ss:$0 sm:$0xff] }
  0x81   : > { %667 = vmatprep.subr.bf16.mxu0 %v1992_v0  ;;  %1633 = vmatprep.subr.bf16.mxu1 %v1992_v0 }
  0x84   : > { %668 = vmatpush1.bf16.msra.mxu0 %v1742_v9  ;;  %1649 = vmatpush1.bf16.msra.mxu1 %v1742_v9 }
  0x85   : > { %669 = vmatprep.subr.bf16.mxu0 %v1992_v0  ;;  %1634 = vmatprep.subr.bf16.mxu1 %v1992_v0 }
  0x88   : > { %670 = vmatpush1.bf16.msra.mxu0 %v1743_v10  ;;  %1650 = vmatpush1.bf16.msra.mxu1 %v1743_v10 }
  0x89   : > { %671 = vmatprep.subr.bf16.mxu0 %v1992_v0  ;;  %1635 = vmatprep.subr.bf16.mxu1 %v1992_v0 }
  0x8c   : > { %672 = vmatpush1.bf16.msra.mxu0 %v1744_v11  ;;  %1651 = vmatpush1.bf16.msra.mxu1 %v1744_v11 }
  0x8d   : > { %673 = vmatprep.subr.bf16.mxu0 %v1992_v0  ;;  %1636 = vmatprep.subr.bf16.mxu1 %v1992_v0 }
  0x90   : > { %674 = vmatpush1.bf16.msra.mxu0 %v1745_v12  ;;  %1652 = vmatpush1.bf16.msra.mxu1 %v1745_v12 }
  0x91   : > { %675 = vmatprep.subr.bf16.mxu0 %v1992_v0  ;;  %1637 = vmatprep.subr.bf16.mxu1 %v1992_v0 }
  0x94   : > { %676 = vmatpush1.bf16.msra.mxu0 %v1746_v13  ;;  %1653 = vmatpush1.bf16.msra.mxu1 %v1746_v13 }
  0x95   : > { %677 = vmatprep.subr.bf16.mxu0 %v1992_v0  ;;  %1638 = vmatprep.subr.bf16.mxu1 %v1992_v0 }
  0x98   : > { %678 = vmatpush1.bf16.msra.mxu0 %v1747_v14  ;;  %1654 = vmatpush1.bf16.msra.mxu1 %v1747_v14 }
  0x99   : > { %679 = vmatprep.subr.bf16.mxu0 %v1992_v0  ;;  %1639 = vmatprep.subr.bf16.mxu1 %v1992_v0 }
  0x9c   : > { %680 = vmatpush1.bf16.msra.mxu0 %v1748_v15  ;;  %1655 = vmatpush1.bf16.msra.mxu1 %v1748_v15 }
  0x9d   : > { %681 = vmatprep.subr.bf16.mxu0 %v1992_v0  ;;  %1640 = vmatprep.subr.bf16.mxu1 %v1992_v0 }
  0xa0   : > { %682 = vmatpush1.bf16.msra.mxu0 %v1749_v16  ;;  %1656 = vmatpush1.bf16.msra.mxu1 %v1749_v16 }
  0xa1   : > { %683 = vmatprep.subr.bf16.mxu0 %v1992_v0  ;;  %1641 = vmatprep.subr.bf16.mxu1 %v1992_v0 }
  0xa4   : > { %684 = vmatpush1.bf16.msra.mxu0 %v1750_v17  ;;  %1657 = vmatpush1.bf16.msra.mxu1 %v1750_v17 }
  0xa5   : > { %685 = vmatprep.subr.bf16.mxu0 %v1992_v0  ;;  %1642 = vmatprep.subr.bf16.mxu1 %v1992_v0  ;;  %v1823_v0 = vld [vmem:[%s2193_s4 + $0x180] ss:$8 sps:$4 sm:$0xff]  }
  0xa8   : > { %686 = vmatpush1.bf16.msra.mxu0 %v1751_v18  ;;  %1658 = vmatpush1.bf16.msra.mxu1 %v1751_v18 }
  0xab   : > { %688 = vmatmul.mubr.bf16.vlgmr.msra.gmra.mrb[0].mxu0 %v1752_v19  ;;  %792 = vmatmul.mubr.bf16.vlgmr.msra.gmra.mrb[0].mxu1 %v1755_v20 }
  0xac   : > { %695 = vmatprep.mubr.bf16.mxu0 %v1758_v21  ;;  %799 = vmatprep.mubr.bf16.mxu1 %v1761_v22 }
  0xb3   : > { %696 = vmatmul.mubr.bf16.gmra.mrb[4].mxu0 %v1760_v23  ;;  %800 = vmatmul.mubr.bf16.gmra.mrb[4].mxu1 %v1763_v24 }
  0xb4   : > { %703 = vmatprep.mubr.bf16.mxu0 %v1764_v25  ;;  %807 = vmatprep.mubr.bf16.mxu1 %v1767_v26 }
  0xbb   : > { %704 = vmatmul.mubr.bf16.gmra.mrb[8].mxu0 %v1766_v27  ;;  %808 = vmatmul.mubr.bf16.gmra.mrb[8].mxu1 %v1769_v28 }
  0xbc   : > { %711 = vmatprep.mubr.bf16.mxu0 %v1770_v29  ;;  %815 = vmatprep.mubr.bf16.mxu1 %v1773_v30 }
  0xc3   : > { %712 = vmatmul.mubr.bf16.gmra.mrb[12].mxu0 %v1772_v31  ;;  %816 = vmatmul.mubr.bf16.gmra.mrb[12].mxu1 %v1775_v32 }
  0xc4   : > { %719 = vmatprep.mubr.bf16.mxu0 %v1776_v33  ;;  %823 = vmatprep.mubr.bf16.mxu1 %v1779_v34 }
  0xcb   : > { %720 = vmatmul.mubr.bf16.gmra.mrb[16].mxu0 %v1778_v35  ;;  %824 = vmatmul.mubr.bf16.gmra.mrb[16].mxu1 %v1781_v36 }
  0xcc   : > { %727 = vmatprep.mubr.bf16.mxu0 %v1782_v37  ;;  %831 = vmatprep.mubr.bf16.mxu1 %v1785_v38 }
  0xd3   : > { %728 = vmatmul.mubr.bf16.gmra.mrb[20].mxu0 %v1784_v39  ;;  %832 = vmatmul.mubr.bf16.gmra.mrb[20].mxu1 %v1787_v40 }
  0xd4   : > { %735 = vmatprep.mubr.bf16.mxu0 %v1788_v41  ;;  %839 = vmatprep.mubr.bf16.mxu1 %v1791_v42 }
  0xdb   : > { %736 = vmatmul.mubr.bf16.gmra.mrb[24].mxu0 %v1790_v43  ;;  %840 = vmatmul.mubr.bf16.gmra.mrb[24].mxu1 %v1793_v44 }
  0xdc   : > { %743 = vmatprep.mubr.bf16.mxu0 %v1794_v45  ;;  %847 = vmatprep.mubr.bf16.mxu1 %v1797_v46 }
  0xe3   : > { %744 = vmatmul.mubr.bf16.gmra.mrb[28].mxu0 %v1796_v47  ;;  %848 = vmatmul.mubr.bf16.gmra.mrb[28].mxu1 %v1799_v48 }
  0xe4   : > { %751 = vmatprep.mubr.bf16.mxu0 %v1800_v49  ;;  %855 = vmatprep.mubr.bf16.mxu1 %v1803_v50 }
  0xeb   : > { %752 = vmatmul.mubr.bf16.gmra.mrb[32].mxu0 %v1802_v51  ;;  %856 = vmatmul.mubr.bf16.gmra.mrb[32].mxu1 %v1805_v52 }
  0xec   : > { %759 = vmatprep.mubr.bf16.mxu0 %v1806_v53  ;;  %863 = vmatprep.mubr.bf16.mxu1 %v1809_v54 }
  0xf3   : > { %760 = vmatmul.mubr.bf16.gmra.mrb[36].mxu0 %v1808_v55  ;;  %864 = vmatmul.mubr.bf16.gmra.mrb[36].mxu1 %v1811_v56 }
  0xf4   : > { %767 = vmatprep.mubr.bf16.mxu0 %v1812_v57  ;;  %871 = vmatprep.mubr.bf16.mxu1 %v1815_v58 }
  0xfb   : > { %768 = vmatmul.mubr.bf16.gmra.mrb[40].mxu0 %v1814_v59  ;;  %872 = vmatmul.mubr.bf16.gmra.mrb[40].mxu1 %v1817_v60 }
  0xfc   : > { %775 = vmatprep.mubr.bf16.mxu0 %v1818_v61  ;;  %879 = vmatprep.mubr.bf16.mxu1 %v1821_v62 }
 0x103   : > { %776 = vmatmul.mubr.bf16.gmra.mrb[44].mxu0 %v1820_v63  ;;  %880 = vmatmul.mubr.bf16.gmra.mrb[44].mxu1 %v1823_v0 }
 0x104   : > { %783 = vmatprep.mubr.bf16.mxu0 %v1824_v1 }
 0x10b   : > { %784 = vmatmul.mubr.bf16.gmra.mrb[48].mxu0 %v1826_v2 }
 0x17e   : > { %v689_v4 = vpop.f32.mrb[0].mxu0  ;;  %v793_v5 = vpop.f32.mrb[0].mxu1 }
 0x17f   : > { %v690_v6 = vadd.f32 %v2285_v3, %v689_v4  ;;  %v691_v7 = vpop.f32.mrb[1].mxu0  ;;  %v794_v8 = vadd.f32 %v2285_v3, %v793_v5  ;;  %v795_v9 = vpop.f32.mrb[1].mxu1 }
 0x180   : > { %v692_v10 = vpop.f32.mrb[2].mxu0  ;;  %v796_v11 = vpop.f32.mrb[2].mxu1 }
 0x181   : > { %v693_v12 = vadd.f32 %v2285_v3, %v692_v10  ;;  %v694_v13 = vpop.f32.mrb[3].mxu0  ;;  %v914_v14 = vmax.f32 %v794_v8, 0.0  ;;  %v797_v15 = vadd.f32 %v2285_v3, %v796_v11  ;;  %v798_v16 = vpop.f32.mrb[3].mxu1  ;;  %v888_v17 = vmax.f32 %v690_v6, 0.0 }
 0x183   : > { %v889_v18 = vmax.f32 %v693_v12, 0.0  ;;  %v915_v19 = vmax.f32 %v797_v15, 0.0 }
 0x185   : > { %v1480_v20 = vpack.c.bf16 %v889_v18, %v888_v17  ;;  %v1545_v21 = vpack.c.bf16 %v915_v19, %v914_v14 }
 0x186   : > { %v697_v22 = vpop.f32.mrb[4].mxu0  ;;  %v801_v23 = vpop.f32.mrb[4].mxu1 }
 0x187   : > { %1481 = vst [vmem:[%s2292_s20] sm:$0xff] %v1480_v20   ;;  %1615 = vst [vmem:[%s2292_s20 + $0x68] sm:$0xff] %v1545_v21   ;;  %v698_v24 = vadd.f32 %v2285_v3, %v697_v22  ;;  %v699_v25 = vpop.f32.mrb[5].mxu0  ;;  %v802_v26 = vadd.f32 %v2285_v3, %v801_v23  ;;  %v803_v27 = vpop.f32.mrb[5].mxu1 }
 0x188   : > { %v700_v28 = vpop.f32.mrb[6].mxu0  ;;  %v804_v29 = vpop.f32.mrb[6].mxu1 }
 0x189   : > { %v701_v30 = vadd.f32 %v2285_v3, %v700_v28  ;;  %v702_v31 = vpop.f32.mrb[7].mxu0  ;;  %v916_v32 = vmax.f32 %v802_v26, 0.0  ;;  %v805_v33 = vadd.f32 %v2285_v3, %v804_v29  ;;  %v806_v34 = vpop.f32.mrb[7].mxu1  ;;  %v890_v35 = vmax.f32 %v698_v24, 0.0 }
 0x18b   : > { %v891_v36 = vmax.f32 %v701_v30, 0.0  ;;  %v917_v37 = vmax.f32 %v805_v33, 0.0 }
 0x18d   : > { %v1485_v38 = vpack.c.bf16 %v891_v36, %v890_v35  ;;  %v1550_v39 = vpack.c.bf16 %v917_v37, %v916_v32 }
 0x18e   : > { %v705_v40 = vpop.f32.mrb[8].mxu0  ;;  %v809_v41 = vpop.f32.mrb[8].mxu1 }
 0x18f   : > { %1603 = vst [vmem:[%s2292_s20 + $0x8] sm:$0xff] %v1485_v38   ;;  %1616 = vst [vmem:[%s2292_s20 + $0x70] sm:$0xff] %v1550_v39   ;;  %v706_v42 = vadd.f32 %v2285_v3, %v705_v40  ;;  %v707_v43 = vpop.f32.mrb[9].mxu0  ;;  %v810_v44 = vadd.f32 %v2285_v3, %v809_v41  ;;  %v811_v45 = vpop.f32.mrb[9].mxu1 }
 0x190   : > { %v708_v46 = vpop.f32.mrb[10].mxu0  ;;  %v812_v47 = vpop.f32.mrb[10].mxu1 }
 0x191   : > { %v709_v48 = vadd.f32 %v2285_v3, %v708_v46  ;;  %v710_v49 = vpop.f32.mrb[11].mxu0  ;;  %v918_v50 = vmax.f32 %v810_v44, 0.0  ;;  %v813_v51 = vadd.f32 %v2285_v3, %v812_v47  ;;  %v814_v52 = vpop.f32.mrb[11].mxu1  ;;  %v892_v53 = vmax.f32 %v706_v42, 0.0 }
 0x193   : > { %v893_v54 = vmax.f32 %v709_v48, 0.0  ;;  %v919_v55 = vmax.f32 %v813_v51, 0.0 }
 0x195   : > { %v1490_v56 = vpack.c.bf16 %v893_v54, %v892_v53  ;;  %v1555_v57 = vpack.c.bf16 %v919_v55, %v918_v50 }
 0x196   : > { %v713_v58 = vpop.f32.mrb[12].mxu0  ;;  %v817_v59 = vpop.f32.mrb[12].mxu1 }
 0x197   : > { %1604 = vst [vmem:[%s2292_s20 + $0x10] sm:$0xff] %v1490_v56   ;;  %1617 = vst [vmem:[%s2292_s20 + $0x78] sm:$0xff] %v1555_v57   ;;  %v714_v60 = vadd.f32 %v2285_v3, %v713_v58  ;;  %v715_v61 = vpop.f32.mrb[13].mxu0  ;;  %v818_v62 = vadd.f32 %v2285_v3, %v817_v59  ;;  %v819_v63 = vpop.f32.mrb[13].mxu1 }
 0x198   : > { %v716_v0 = vpop.f32.mrb[14].mxu0  ;;  %v820_v1 = vpop.f32.mrb[14].mxu1 }
 0x199   : > { %v717_v2 = vadd.f32 %v2285_v3, %v716_v0  ;;  %v718_v4 = vpop.f32.mrb[15].mxu0  ;;  %v920_v5 = vmax.f32 %v818_v62, 0.0  ;;  %v821_v6 = vadd.f32 %v2285_v3, %v820_v1  ;;  %v822_v7 = vpop.f32.mrb[15].mxu1  ;;  %v894_v8 = vmax.f32 %v714_v60, 0.0 }
 0x19b   : > { %v895_v9 = vmax.f32 %v717_v2, 0.0  ;;  %v921_v10 = vmax.f32 %v821_v6, 0.0 }
 0x19d   : > { %v1495_v11 = vpack.c.bf16 %v895_v9, %v894_v8  ;;  %v1560_v12 = vpack.c.bf16 %v921_v10, %v920_v5 }
 0x19e   : > { %v721_v13 = vpop.f32.mrb[16].mxu0  ;;  %v825_v14 = vpop.f32.mrb[16].mxu1 }
 0x19f   : > { %1605 = vst [vmem:[%s2292_s20 + $0x18] sm:$0xff] %v1495_v11   ;;  %1618 = vst [vmem:[%s2292_s20 + $0x80] sm:$0xff] %v1560_v12   ;;  %v722_v15 = vadd.f32 %v2285_v3, %v721_v13  ;;  %v723_v16 = vpop.f32.mrb[17].mxu0  ;;  %v826_v17 = vadd.f32 %v2285_v3, %v825_v14  ;;  %v827_v18 = vpop.f32.mrb[17].mxu1 }
 0x1a0   : > { %v724_v19 = vpop.f32.mrb[18].mxu0  ;;  %v828_v20 = vpop.f32.mrb[18].mxu1 }
 0x1a1   : > { %v725_v21 = vadd.f32 %v2285_v3, %v724_v19  ;;  %v726_v22 = vpop.f32.mrb[19].mxu0  ;;  %v922_v23 = vmax.f32 %v826_v17, 0.0  ;;  %v829_v24 = vadd.f32 %v2285_v3, %v828_v20  ;;  %v830_v25 = vpop.f32.mrb[19].mxu1  ;;  %v896_v26 = vmax.f32 %v722_v15, 0.0 }
 0x1a3   : > { %v897_v27 = vmax.f32 %v725_v21, 0.0  ;;  %v923_v28 = vmax.f32 %v829_v24, 0.0 }
 0x1a5   : > { %v1500_v29 = vpack.c.bf16 %v897_v27, %v896_v26  ;;  %v1565_v30 = vpack.c.bf16 %v923_v28, %v922_v23 }
 0x1a6   : > { %v729_v31 = vpop.f32.mrb[20].mxu0  ;;  %v833_v32 = vpop.f32.mrb[20].mxu1 }
 0x1a7   : > { %1606 = vst [vmem:[%s2292_s20 + $0x20] sm:$0xff] %v1500_v29   ;;  %1619 = vst [vmem:[%s2292_s20 + $0x88] sm:$0xff] %v1565_v30   ;;  %v730_v33 = vadd.f32 %v2285_v3, %v729_v31  ;;  %v731_v34 = vpop.f32.mrb[21].mxu0  ;;  %v834_v35 = vadd.f32 %v2285_v3, %v833_v32  ;;  %v835_v36 = vpop.f32.mrb[21].mxu1 }
 0x1a8   : > { %v732_v37 = vpop.f32.mrb[22].mxu0  ;;  %v836_v38 = vpop.f32.mrb[22].mxu1 }
 0x1a9   : > { %v733_v39 = vadd.f32 %v2285_v3, %v732_v37  ;;  %v734_v40 = vpop.f32.mrb[23].mxu0  ;;  %v924_v41 = vmax.f32 %v834_v35, 0.0  ;;  %v837_v42 = vadd.f32 %v2285_v3, %v836_v38  ;;  %v838_v43 = vpop.f32.mrb[23].mxu1  ;;  %v898_v44 = vmax.f32 %v730_v33, 0.0 }
 0x1ab   : > { %v899_v45 = vmax.f32 %v733_v39, 0.0  ;;  %v925_v46 = vmax.f32 %v837_v42, 0.0 }
 0x1ad   : > { %v1505_v47 = vpack.c.bf16 %v899_v45, %v898_v44  ;;  %v1570_v48 = vpack.c.bf16 %v925_v46, %v924_v41 }
 0x1ae   : > { %v737_v49 = vpop.f32.mrb[24].mxu0  ;;  %v841_v50 = vpop.f32.mrb[24].mxu1 }
 0x1af   : > { %1607 = vst [vmem:[%s2292_s20 + $0x28] sm:$0xff] %v1505_v47   ;;  %1620 = vst [vmem:[%s2292_s20 + $0x90] sm:$0xff] %v1570_v48   ;;  %v738_v51 = vadd.f32 %v2285_v3, %v737_v49  ;;  %v739_v52 = vpop.f32.mrb[25].mxu0  ;;  %v842_v53 = vadd.f32 %v2285_v3, %v841_v50  ;;  %v843_v54 = vpop.f32.mrb[25].mxu1 }
 0x1b0   : > { %v740_v55 = vpop.f32.mrb[26].mxu0  ;;  %v844_v56 = vpop.f32.mrb[26].mxu1 }
 0x1b1   : > { %v741_v57 = vadd.f32 %v2285_v3, %v740_v55  ;;  %v742_v58 = vpop.f32.mrb[27].mxu0  ;;  %v926_v59 = vmax.f32 %v842_v53, 0.0  ;;  %v845_v60 = vadd.f32 %v2285_v3, %v844_v56  ;;  %v846_v61 = vpop.f32.mrb[27].mxu1  ;;  %v900_v62 = vmax.f32 %v738_v51, 0.0 }
 0x1b3   : > { %v901_v63 = vmax.f32 %v741_v57, 0.0  ;;  %v927_v0 = vmax.f32 %v845_v60, 0.0 }
 0x1b5   : > { %v1510_v1 = vpack.c.bf16 %v901_v63, %v900_v62  ;;  %v1575_v2 = vpack.c.bf16 %v927_v0, %v926_v59 }
 0x1b6   : > { %v745_v4 = vpop.f32.mrb[28].mxu0  ;;  %v849_v5 = vpop.f32.mrb[28].mxu1 }
 0x1b7   : > { %1608 = vst [vmem:[%s2292_s20 + $0x30] sm:$0xff] %v1510_v1   ;;  %1621 = vst [vmem:[%s2292_s20 + $0x98] sm:$0xff] %v1575_v2   ;;  %v746_v6 = vadd.f32 %v2285_v3, %v745_v4  ;;  %v747_v7 = vpop.f32.mrb[29].mxu0  ;;  %v850_v8 = vadd.f32 %v2285_v3, %v849_v5  ;;  %v851_v9 = vpop.f32.mrb[29].mxu1 }
 0x1b8   : > { %v748_v10 = vpop.f32.mrb[30].mxu0  ;;  %v852_v11 = vpop.f32.mrb[30].mxu1 }
 0x1b9   : > { %v749_v12 = vadd.f32 %v2285_v3, %v748_v10  ;;  %v750_v13 = vpop.f32.mrb[31].mxu0  ;;  %v928_v14 = vmax.f32 %v850_v8, 0.0  ;;  %v853_v15 = vadd.f32 %v2285_v3, %v852_v11  ;;  %v854_v16 = vpop.f32.mrb[31].mxu1  ;;  %v902_v17 = vmax.f32 %v746_v6, 0.0 }
 0x1bb   : > { %v903_v18 = vmax.f32 %v749_v12, 0.0  ;;  %v929_v19 = vmax.f32 %v853_v15, 0.0 }
 0x1bd   : > { %v1515_v20 = vpack.c.bf16 %v903_v18, %v902_v17  ;;  %v1580_v21 = vpack.c.bf16 %v929_v19, %v928_v14 }
 0x1be   : > { %v753_v22 = vpop.f32.mrb[32].mxu0  ;;  %v857_v23 = vpop.f32.mrb[32].mxu1 }
 0x1bf   : > { %1609 = vst [vmem:[%s2292_s20 + $0x38] sm:$0xff] %v1515_v20   ;;  %1622 = vst [vmem:[%s2292_s20 + $0xa0] sm:$0xff] %v1580_v21   ;;  %v754_v24 = vadd.f32 %v2285_v3, %v753_v22  ;;  %v755_v25 = vpop.f32.mrb[33].mxu0  ;;  %v858_v26 = vadd.f32 %v2285_v3, %v857_v23  ;;  %v859_v27 = vpop.f32.mrb[33].mxu1 }
 0x1c0   : > { %v756_v28 = vpop.f32.mrb[34].mxu0  ;;  %v860_v29 = vpop.f32.mrb[34].mxu1 }
 0x1c1   : > { %v757_v30 = vadd.f32 %v2285_v3, %v756_v28  ;;  %v758_v31 = vpop.f32.mrb[35].mxu0  ;;  %v930_v32 = vmax.f32 %v858_v26, 0.0  ;;  %v861_v33 = vadd.f32 %v2285_v3, %v860_v29  ;;  %v862_v34 = vpop.f32.mrb[35].mxu1  ;;  %v904_v35 = vmax.f32 %v754_v24, 0.0 }
 0x1c3   : > { %v905_v36 = vmax.f32 %v757_v30, 0.0  ;;  %v931_v37 = vmax.f32 %v861_v33, 0.0 }
 0x1c5   : > { %v1520_v38 = vpack.c.bf16 %v905_v36, %v904_v35  ;;  %v1585_v39 = vpack.c.bf16 %v931_v37, %v930_v32 }
 0x1c6   : > { %v761_v40 = vpop.f32.mrb[36].mxu0  ;;  %v865_v41 = vpop.f32.mrb[36].mxu1 }
 0x1c7   : > { %1610 = vst [vmem:[%s2292_s20 + $0x40] sm:$0xff] %v1520_v38   ;;  %1623 = vst [vmem:[%s2292_s20 + $0xa8] sm:$0xff] %v1585_v39   ;;  %v762_v42 = vadd.f32 %v2285_v3, %v761_v40  ;;  %v763_v43 = vpop.f32.mrb[37].mxu0  ;;  %v866_v44 = vadd.f32 %v2285_v3, %v865_v41  ;;  %v867_v45 = vpop.f32.mrb[37].mxu1 }
 0x1c8   : > { %v764_v46 = vpop.f32.mrb[38].mxu0  ;;  %v868_v47 = vpop.f32.mrb[38].mxu1 }
 0x1c9   : > { %v765_v48 = vadd.f32 %v2285_v3, %v764_v46  ;;  %v766_v49 = vpop.f32.mrb[39].mxu0  ;;  %v932_v50 = vmax.f32 %v866_v44, 0.0  ;;  %v869_v51 = vadd.f32 %v2285_v3, %v868_v47  ;;  %v870_v52 = vpop.f32.mrb[39].mxu1  ;;  %v906_v53 = vmax.f32 %v762_v42, 0.0 }
 0x1cb   : > { %v907_v54 = vmax.f32 %v765_v48, 0.0  ;;  %v933_v55 = vmax.f32 %v869_v51, 0.0 }
 0x1cd   : > { %v1525_v56 = vpack.c.bf16 %v907_v54, %v906_v53  ;;  %v1590_v57 = vpack.c.bf16 %v933_v55, %v932_v50 }
 0x1ce   : > { %v769_v58 = vpop.f32.mrb[40].mxu0  ;;  %v873_v59 = vpop.f32.mrb[40].mxu1 }
 0x1cf   : > { %1611 = vst [vmem:[%s2292_s20 + $0x48] sm:$0xff] %v1525_v56   ;;  %1624 = vst [vmem:[%s2292_s20 + $0xb0] sm:$0xff] %v1590_v57   ;;  %v770_v60 = vadd.f32 %v2285_v3, %v769_v58  ;;  %v771_v61 = vpop.f32.mrb[41].mxu0  ;;  %v874_v62 = vadd.f32 %v2285_v3, %v873_v59  ;;  %v875_v63 = vpop.f32.mrb[41].mxu1 }
 0x1d0   : > { %v772_v0 = vpop.f32.mrb[42].mxu0  ;;  %v876_v1 = vpop.f32.mrb[42].mxu1 }
 0x1d1   : > { %v773_v2 = vadd.f32 %v2285_v3, %v772_v0  ;;  %v774_v4 = vpop.f32.mrb[43].mxu0  ;;  %v934_v5 = vmax.f32 %v874_v62, 0.0  ;;  %v877_v6 = vadd.f32 %v2285_v3, %v876_v1  ;;  %v878_v7 = vpop.f32.mrb[43].mxu1  ;;  %v908_v8 = vmax.f32 %v770_v60, 0.0 }
 0x1d3   : > { %v909_v9 = vmax.f32 %v773_v2, 0.0  ;;  %v935_v10 = vmax.f32 %v877_v6, 0.0 }
 0x1d5   : > { %v1530_v11 = vpack.c.bf16 %v909_v9, %v908_v8  ;;  %v1595_v12 = vpack.c.bf16 %v935_v10, %v934_v5 }
 0x1d6   : > { %v777_v13 = vpop.f32.mrb[44].mxu0  ;;  %v881_v14 = vpop.f32.mrb[44].mxu1 }
 0x1d7   : > { %1612 = vst [vmem:[%s2292_s20 + $0x50] sm:$0xff] %v1530_v11   ;;  %1625 = vst [vmem:[%s2292_s20 + $0xb8] sm:$0xff] %v1595_v12   ;;  %v778_v15 = vadd.f32 %v2285_v3, %v777_v13  ;;  %v779_v16 = vpop.f32.mrb[45].mxu0  ;;  %v882_v17 = vadd.f32 %v2285_v3, %v881_v14  ;;  %v883_v18 = vpop.f32.mrb[45].mxu1 }
 0x1d8   : > { %v780_v19 = vpop.f32.mrb[46].mxu0  ;;  %v884_v20 = vpop.f32.mrb[46].mxu1 }
 0x1d9   : > { %v781_v21 = vadd.f32 %v2285_v3, %v780_v19  ;;  %v782_v22 = vpop.f32.mrb[47].mxu0  ;;  %v936_v23 = vmax.f32 %v882_v17, 0.0  ;;  %v885_v24 = vadd.f32 %v2285_v3, %v884_v20  ;;  %v886_v25 = vpop.f32.mrb[47].mxu1  ;;  %v910_v26 = vmax.f32 %v778_v15, 0.0 }
 0x1db   : > { %v911_v27 = vmax.f32 %v781_v21, 0.0  ;;  %v937_v28 = vmax.f32 %v885_v24, 0.0 }
 0x1dd   : > { %v1535_v29 = vpack.c.bf16 %v911_v27, %v910_v26  ;;  %v1600_v30 = vpack.c.bf16 %v937_v28, %v936_v23 }
 0x1de   : > { %v785_v31 = vpop.f32.mrb[48].mxu0 }
 0x1df   : > { %1613 = vst [vmem:[%s2292_s20 + $0x58] sm:$0xff] %v1535_v29   ;;  %1626 = vst [vmem:[%s2292_s20 + $0xc0] sm:$0xff] %v1600_v30   ;;  %v786_v32 = vadd.f32 %v2285_v3, %v785_v31  ;;  %v787_v33 = vpop.f32.mrb[49].mxu0 }
 0x1e0   : > { %v788_v34 = vpop.f32.mrb[50].mxu0 }
 0x1e1   : > { %v789_v35 = vadd.f32 %v2285_v3, %v788_v34  ;;  %v790_v36 = vpop.f32.mrb[51].mxu0  ;;  %v912_v37 = vmax.f32 %v786_v32, 0.0 }
 0x1e3   : > { %v913_v38 = vmax.f32 %v789_v35, 0.0 }
 0x1e5   : > { %v1540_v39 = vpack.c.bf16 %v913_v38, %v912_v37 }
 0x1e7   : > { %1614 = vst [vmem:[%s2292_s20 + $0x60] sm:$0xff] %v1540_v39  }
 0x1e8   : > { %1926 = shalt.err (!%p1923_p2)
}
 0x1e9   : > { %s1927_s17 = scalar_lea.hbm %s2369_s23, 3200  ;;  %s1931_s29 = scalar_lea.hbm %s2419_s3, 6400 }
 0x1ea   : > { %p1928_p13 = scmp.ne.s32.totalorder %s2369_s23, %s1927_s17  ;;  %p1932_p4 = scmp.lt.u32.totalorder %s2369_s23, %s2419_s3 }
 0x1eb   : > { %p1933_p5 = scmp.lt.u32.totalorder %s1931_s29, %s1927_s17  ;;  %p1935_p11 = scmp.lt.u32.totalorder %s1927_s17, %s2369_s23 }
 0x1ec   : > { %p1929_p6 = pnand %p1928_p13, %p2433_p0 }
 0x1ed   : > { %p1934_p8 = por %p1933_p5, %p1932_p4 }
 0x1ee   : > { %p1930_p10 = pneg %p1929_p6 }
 0x1ef   : > { %p1936_p1 = por %p1935_p11, %p1934_p8 }
 0x1f1   : > { %p1937_p3 = pnand %p1936_p1, %p1930_p10 }
 0x1f3   : > { %1940 = shalt.err (!%p1937_p3)
}
 0x1f4   : > { %s1994_s18 = smov 64   ;;  %s1995_s20 = smov 4  }
 0x1f5   : > { %1672 = dma.vmem_to_hbm [thread:$0]  (%p2433_p0), %s2371_s24, 3200, %s2369_s23, %s1189_s6, %s1994_s18, %s1994_s18, %s1995_s20  }
 0x1f6 PF: > { %s1217_s11 = sand.u32 1, %s1971_s12   ;;  %p2434_p7 = scmp.ne.s32.totalorder %s2424_s19, 0 }
 0x1f7   : > { %p2435_p9 = scmp.ge.s32.totalorder %s1983_s15, 2  ;;  %s1218_s27 = scalar_lea.sflag [#allocation4], %s1217_s11 }
 0x1f9   : > { %p1686_p12 = pnand %p2435_p9, %p2434_p7 }
 0x1fb   : > { %1966 = dma.done.wait (!%p1686_p12), %s1218_s27, 3200  }
 0x1fc   : > { %1968 = vsyncadd (!%p1686_p12), %s1218_s27, 4294964096  ;;  %p17_p2 = scmp.ge.s32.totalorder %s2127_s5, 4   ;;  %s2436_s12 = smov %s1975_s13 }
 0x1fd   : > { %s2437_s13 = smov %s1979_s14  ;;  %s2438_s14 = smov %s2143_s8 }
 0x1fe   : > { %s2439_s15 = smov %s2127_s5  ;;  %19 = sbr.rel (!%p17_p2) target bundleno = 6 (0x6), region = 85 }
 0x205   :  { %1223 = vsyncpa [#allocation3], 1 }
 0x206   :  { %1225 = vsyncpa [#allocation3 + $0x1], 1 }
 0x207   :  { %1226 = vsyncpa [#allocation6], 1 }
 0x208   :  { %1227 = vsyncpa [#allocation4], 1 }
 0x209   :  { %1229 = vsyncpa [#allocation4 + $0x1], 1 }

// kernel: act.5
= control target key start
LH: loop header
LB: loop body
LE: loop exit
PB: predicated region body
PF: predicated region fallthrough
CT: control target
= control target key end

     0   :  { %8 = vsyncpa [#allocation3], 0  ;;  %s1827_s0 = inlined_call_operand.hbm [shape: bf16[162,512], index: 0, kind: input, shape index: {}]   ;;  %s1828_s1 = inlined_call_operand.hbm [shape: bf16[512,128], index: 1, kind: input, shape index: {}]   ;;  %s1829_s2 = inlined_call_operand.hbm [shape: f32[1,128], index: 2, kind: input, shape index: {}]   ;;  %s1830_s3 = inlined_call_operand.hbm [shape: bf16[162,128], index: 3, kind: output, shape index: {}]  }
   0x1   :  { %10 = vsyncpa [#allocation3 + $0x1], 0 }
   0x2   :  { %11 = vsyncpa [#allocation6], 0 }
   0x3   :  { %12 = vsyncpa [#allocation4], 0 }
   0x4   :  { %14 = vsyncpa [#allocation4 + $0x1], 0  ;;  %s1534_s12 = smov 0   ;;  %s1536_s13 = smov 0  }
   0x5   :  { %s1538_s14 = smov 0   ;;  %s1540_s15 = smov 0  }
   0x6 LB: > { %s1555_s16 = sadd.s32 4294967295, %s1502_s15   ;;  %s974_s17 = sadd.s32 4294967294, %s1502_s15   ;;  %s1502_s15 = sphi %s1540_s15, %s1850_s15   ;;  %s1498_s14 = sphi %s1538_s14, %s1849_s14   ;;  %s1494_s13 = sphi %s1536_s13, %s1848_s13   ;;  %s1490_s12 = sphi %s1534_s12, %s1847_s12  }
   0x7   : > { %s1559_s18 = sadd.s32 1, %s1502_s15   ;;  %s27_s19 = sadd.s32 1, %s1498_s14 }
   0x8   : > { %s24_s20 = ssub.s32 %s1502_s15, %s1559_s18  ;;  %p34_p0 = scmp.ne.s32.totalorder %s1498_s14, %s1494_s13 }
   0x9   : > { %p25_p1 = scmp.eq.s32.totalorder %s24_s20, 0  ;;  %p35_p2 = scmp.eq.s32.totalorder %s1502_s15, 0 }
   0xa   : > { %p40_p3 = scmp.ne.s32.totalorder %s1494_s13, %s1490_s12  ;;  %p1831_p4 = scmp.eq.s32.totalorder %s1555_s16, 0 }
   0xb   : > { %s1571_s21 = scalar_select %p25_p1, %s1498_s14, %s27_s19  }
   0xc   : > { %p1573_p5 = por %p35_p2, %p34_p0  ;;  %p1579_p6 = por %p1831_p4, %p40_p3 }
   0xd   : > { %p106_p7 = scmp.eq.s32.totalorder %s1555_s16, 1  ;;  %p112_p8 = scmp.eq.s32.totalorder %s974_s17, 1 }
   0xe   : > { %s1834_s22 = scalar_select %p1573_p5, 1, 0 }
   0xf   : > { %s1835_s23 = scalar_select %p1579_p6, 1, 0 }
  0x10   : > { %p975_p9 = scmp.ge.s32.totalorder %s1502_s15, 1  ;;  %p119_p10 = scmp.lt.s32.totalorder %s1502_s15, 3 }
  0x11   : > { %p1586_p11 = por %p106_p7, %p34_p0  ;;  %p1590_p12 = por %p112_p8, %p40_p3 }
  0x12   : > { %p1594_p13 = pnand %p975_p9, %p119_p10  ;;  %s1504_s27 = smov [#allocation5]  }
  0x13   : > { %s1836_s24 = scalar_select %p1586_p11, 1, 0 }
  0x14   : > { %s1837_s25 = scalar_select %p1590_p12, 1, 0 }
  0x15   : > { %s1838_s26 = scalar_select %p1594_p13, 1, 0 }
  0x16   : > { %p1226_p1 = pneg %p1594_p13  ;;  %s131_s28 = sshll.u32 %s1504_s27, 4  ;;  %s132_s28 = int_to_ptr.vmem [resolvable:$true] %s131_s28 }
  0x17   : > { %s1505_s30 = smov [#allocation7]   ;;  %s1348_s7 = scalar_lea.hbm %s1828_s1, 4096 }
  0x18   : > { %p1602_p2 = pnand %p1226_p1, %p1831_p4  ;;  %s145_s4 = sshll.u32 %s1505_s30, 4  ;;  %s1606_s4 = int_to_ptr.vmem [resolvable:$true] %s145_s4 }
  0x19   : > { %p1349_p0 = scmp.ne.s32.totalorder %s1828_s1, %s1348_s7  ;;  %p1355_p9 = scmp.lt.u32.totalorder %s1348_s7, %s1828_s1 }
  0x1a   : > { %p1350_p3 = pneg %p1602_p2 }
  0x1c   : > { %p1351_p7 = pnand %p1350_p3, %p1349_p0 }
  0x1e   : > { %p1352_p8 = pneg %p1351_p7 }
  0x20   : > { %p1357_p10 = pnand %p1355_p9, %p1352_p8 }
  0x22   : > { %1360 = shalt.err (!%p1357_p10)
}
  0x23   : > { %s1361_s17 = scalar_lea.vmem %s132_s28, 4096  ;;  %p1369_p11 = scmp.lt.s32.totalorder %s132_s28, %s132_s28 }
  0x24   : > { %p1362_p1 = scmp.ne.s32.totalorder %s132_s28, %s1361_s17  ;;  %p1370_p6 = scmp.lt.s32.totalorder %s1361_s17, %s1361_s17 }
  0x26   : > { %p1364_p4 = pnand %p1362_p1, %p1350_p3  ;;  %p1371_p13 = por %p1370_p6, %p1369_p11 }
  0x28   : > { %p1365_p12 = pneg %p1364_p4 }
  0x2a   : > { %p1372_p5 = pnand %p1371_p13, %p1365_p12 }
  0x2c   : > { %1375 = shalt.err (!%p1372_p5)
}
  0x2d   : > { %s1506_s19 = smov 64   ;;  %s1507_s20 = smov 4  }
  0x2e   : > { %1229 = dma.hbm_to_vmem [thread:$0]  (!%p1602_p2), %s1828_s1, 4096, %s132_s28, [#allocation6], %s1506_s19, %s1506_s19, %s1507_s20  }
  0x2f   : > { %s1376_s7 = scalar_lea.hbm %s1829_s2, 16 }
  0x30   : > { %p1377_p4 = scmp.ne.s32.totalorder %s1829_s2, %s1376_s7  ;;  %p1383_p11 = scmp.lt.u32.totalorder %s1376_s7, %s1829_s2 }
  0x32   : > { %p1379_p5 = pnand %p1377_p4, %p1350_p3 }
  0x34   : > { %p1380_p6 = pneg %p1379_p5 }
  0x36   : > { %p1385_p12 = pnand %p1383_p11, %p1380_p6 }
  0x38   : > { %1388 = shalt.err (!%p1385_p12)
}
  0x39   : > { %s1389_s28 = scalar_lea.vmem %s1606_s4, 16  ;;  %s1396_s17 = scalar_lea.vmem %s1606_s4, 32 }
  0x3a   : > { %p1390_p13 = scmp.ne.s32.totalorder %s1606_s4, %s1389_s28  ;;  %p1397_p8 = scmp.lt.s32.totalorder %s1606_s4, %s1606_s4 }
  0x3b   : > { %p1398_p9 = scmp.lt.s32.totalorder %s1396_s17, %s1389_s28 }
  0x3c   : > { %p1392_p0 = pnand %p1390_p13, %p1350_p3 }
  0x3d   : > { %p1399_p10 = por %p1398_p9, %p1397_p8 }
  0x3e   : > { %p1393_p7 = pneg %p1392_p0 }
  0x40   : > { %p1400_p1 = pnand %p1399_p10, %p1393_p7 }
  0x42   : > { %1403 = shalt.err (!%p1400_p1)
}
  0x43   : > { %1232 = dma.hbm_to_vmem [thread:$0]  (!%p1602_p2), %s1829_s2, 16, %s1606_s4, [#allocation6]  }
  0x44   : > { %p978_p4 = scmp.ge.s32.totalorder %s1502_s15, 2 }
  0x45   : > { %p1840_p3 = scmp.ne.s32.totalorder (!%p978_p4), %s1834_s22, 0 }
  0x46   : > { %152 = sbr.rel (%p978_p4) target bundleno = 112 (0x70), region = 24 }
  0x4d   : > { %155 = sbr.rel (!%p1840_p3) target bundleno = 112 (0x70), region = 28  ;;  %s156_s27 = sand.u32 (%p1840_p3), 1, %s1498_s14  }
  0x4e   : > { %s161_s30 = smul.u32 (%p1840_p3), 11, %s1502_s15  ;;  %s1666_s7 = scalar_lea.sflag (%p1840_p3), [#allocation3], %s156_s27 }
  0x4f   : > { %s1213_s5 = smul.u32 (%p1840_p3), 176, %s156_s27 }
  0x50   : > { %s162_s6 = ssub.s32 (%p1840_p3), 21, %s161_s30 }
  0x51   : > { %p163_p5 = scmp.lt.s32.totalorder (%p1840_p3), %s162_s6, 11  ;;  %s160_s8 = scalar_lea.vmem (%p1840_p3), [#allocation2], %s1213_s5 }
  0x54   : > { %s1852_s6 = smov (!%p163_p5, %s162_s6), 11 }
  0x55   : > { %s1663_s29 = sshll.u32 %s1852_s6, 8 }
  0x56   : > { %s168_s4 = ssub.s32 2816, %s1663_s29 }
  0x57   : > { %169 = vsyncadd %s1666_s7, %s168_s4  ;;  %p981_p2 = scmp.ne.s32.totalorder %s1663_s29, 0  ;;  %s1104_s22 = smul.u32 2816, %s1502_s15 }
  0x58   : > { %s175_s9 = sshll.u32 %s160_s8, 4  ;;  %s1408_s27 = scalar_lea.hbm %s1827_s0, 5376  ;;  %s1676_s9 = int_to_ptr.vmem [resolvable:$true] %s175_s9 }
  0x59   : > { %s1674_s28 = scalar_lea.hbm %s1827_s0, %s1104_s22 }
  0x5a   : > { %s1404_s17 = scalar_lea.hbm %s1674_s28, %s1663_s29  ;;  %p1409_p13 = scmp.lt.u32.totalorder %s1674_s28, %s1827_s0 }
  0x5b   : > { %p1405_p6 = scmp.ne.s32.totalorder %s1674_s28, %s1404_s17  ;;  %p1410_p0 = scmp.lt.u32.totalorder %s1408_s27, %s1404_s17 }
  0x5c   : > { %p1412_p8 = scmp.lt.u32.totalorder %s1404_s17, %s1674_s28 }
  0x5d   : > { %p1406_p11 = pnand %p1405_p6, %p981_p2  ;;  %p1411_p7 = por %p1410_p0, %p1409_p13 }
  0x5f   : > { %p1407_p12 = pneg %p1406_p11  ;;  %p1413_p9 = por %p1412_p8, %p1411_p7 }
  0x61   : > { %p1414_p10 = pnand %p1413_p9, %p1407_p12 }
  0x63   : > { %1417 = shalt.err (!%p1414_p10)
}
  0x64   : > { %s1418_s6 = scalar_lea.vmem %s1676_s9, %s1663_s29  ;;  %s1508_s4 = smov [#allocation2]  }
  0x65   : > { %p1419_p1 = scmp.ne.s32.totalorder %s1676_s9, %s1418_s6  ;;  %s1422_s8 = sshll.u32 %s1508_s4, 4  ;;  %s1423_s8 = int_to_ptr.vmem [resolvable:$false] %s1422_s8 }
  0x66   : > { %s1424_s22 = scalar_lea.vmem %s1423_s8, 5632  ;;  %p1425_p6 = scmp.lt.s32.totalorder %s1676_s9, %s1423_s8 }
  0x67   : > { %p1420_p3 = pnand %p1419_p1, %p981_p2  ;;  %p1426_p11 = scmp.lt.s32.totalorder %s1424_s22, %s1418_s6 }
  0x69   : > { %p1421_p5 = pneg %p1420_p3  ;;  %p1427_p13 = por %p1426_p11, %p1425_p6 }
  0x6b   : > { %p1428_p0 = pnand %p1427_p13, %p1421_p5 }
  0x6d   : > { %1431 = shalt.err (!%p1428_p0)
}
  0x6e   : > { %s1509_s10 = smov 256   ;;  %s1510_s11 = smov 16  }
  0x6f   : > { %181 = dma.hbm_to_vmem [thread:$0]  (%p981_p2), %s1674_s28, %s1663_s29, %s1676_s9, %s1666_s7, %s1509_s10, %s1509_s10, %s1510_s11  }
  0x70 PF: > { %p1841_p12 = scmp.ne.s32.totalorder %s1838_s26, 0 }
  0x71   : > { %s1706_s17 = sand.u32 (!%p1841_p12), 1, %s1494_s13   ;;  %p1842_p7 = scmp.ne.s32.totalorder (!%p1841_p12), %s1835_s23, 0 }
  0x72   : > { %187 = sbr.rel (%p1841_p12) target bundleno = 451 (0x1c3), region = 32  ;;  %s190_s20 = scalar_lea.sflag (!%p1841_p12), [#allocation3], %s1706_s17 }
  0x73   : > { %s1214_s19 = smul.u32 (!%p1841_p12), 176, %s1706_s17 }
  0x75   : > { %s1710_s27 = scalar_lea.vmem (!%p1841_p12), [#allocation2], %s1214_s19 }
  0x79   : > { %1477 = dma.done.wait (%p1842_p7), %s190_s20, 2816  }
  0x7a   : > { %1479 = vsyncadd (%p1842_p7), %s190_s20, 4294964480  ;;  %p1843_p2 = scmp.eq.s32.totalorder %s1555_s16, 0 }
  0x7c   : > { %1481 = dma.done.wait (%p1843_p2), [#allocation6], 4112   ;;  %p1844_p8 = pmov %p1843_p2 }
  0x7d   : > { %v1282_v0 = vld [vmem:[#allocation5 + $0x40] sm:$0xff]   ;;  %v1286_v4 = vld [vmem:[#allocation5 + $0x48] sm:$0xff]   ;;  %v1290_v8 = vld [vmem:[#allocation5 + $0x50] sm:$0xff]   ;;  %s1215_s23 = smul.u32 44, %s1706_s17  ;;  %s863_s29 = scalar_lea.sflag [#allocation4], %s1706_s17 }
  0x7e   : > { %1483 = vsyncadd (%p1844_p8), [#allocation6], 4294963184  ;;  %v1283_v1 = vld [vmem:[#allocation5 + $0xc0] sm:$0xff]   ;;  %1109 = vmatprep.subr.bf16.mxu0 %v1282_v0  ;;  %v1287_v5 = vld [vmem:[#allocation5 + $0xc8] sm:$0xff]   ;;  %p1845_p9 = scmp.ne.s32.totalorder %s1836_s24, 0 }
  0x7f   : > { %v1284_v2 = vld [vmem:[#allocation5] sm:$0xff]   ;;  %1161 = vmatprep.subr.bf16.mxu1 %v1283_v1  ;;  %v1288_v6 = vld [vmem:[#allocation5 + $0x8] sm:$0xff]   ;;  %v1291_v9 = vld [vmem:[#allocation5 + $0xd0] sm:$0xff]   ;;  %s1748_s26 = scalar_lea.vmem [#allocation8], %s1215_s23  ;;  %s870_s7 = smul.u32 (%p1845_p9), 11, %s1555_s16 }
  0x80   : > { %v1285_v3 = vld [vmem:[#allocation5 + $0x80] sm:$0xff]   ;;  %1110 = vmatpush3.bf16.msra.mxu0 %v1284_v2  ;;  %v1289_v7 = vld [vmem:[#allocation5 + $0x88] sm:$0xff]   ;;  %v1292_v10 = vld [vmem:[#allocation5 + $0x10] sm:$0xff]  }
  0x81   : > { %1162 = vmatpush3.bf16.msra.mxu1 %v1285_v3  ;;  %1111 = vmatprep.subr.bf16.mxu0 %v1286_v4  ;;  %v1293_v11 = vld [vmem:[#allocation5 + $0x90] sm:$0xff]   ;;  %v1294_v12 = vld [vmem:[#allocation5 + $0x58] sm:$0xff]   ;;  %v1298_v16 = vld [vmem:[#allocation5 + $0x60] sm:$0xff]   ;;  %s871_s9 = ssub.s32 (%p1845_p9), 21, %s870_s7 }
  0x82   : > { %1163 = vmatprep.subr.bf16.mxu1 %v1287_v5  ;;  %v1295_v13 = vld [vmem:[#allocation5 + $0xd8] sm:$0xff]   ;;  %v1299_v17 = vld [vmem:[#allocation5 + $0xe0] sm:$0xff]   ;;  %v1302_v20 = vld [vmem:[#allocation5 + $0x68] sm:$0xff]   ;;  %p872_p10 = scmp.lt.s32.totalorder (%p1845_p9), %s871_s9, 11 }
  0x83   : > { %v1296_v14 = vld [vmem:[#allocation5 + $0x18] sm:$0xff]   ;;  %v1300_v18 = vld [vmem:[#allocation5 + $0x20] sm:$0xff]   ;;  %v1303_v21 = vld [vmem:[#allocation5 + $0xe8] sm:$0xff]  }
  0x84   : > { %1112 = vmatpush3.bf16.msra.mxu0 %v1288_v6  ;;  %v1297_v15 = vld [vmem:[#allocation5 + $0x98] sm:$0xff]   ;;  %v1301_v19 = vld [vmem:[#allocation5 + $0xa0] sm:$0xff]   ;;  %v1304_v22 = vld [vmem:[#allocation5 + $0x28] sm:$0xff]  }
  0x85   : > { %1164 = vmatpush3.bf16.msra.mxu1 %v1289_v7  ;;  %1113 = vmatprep.subr.bf16.mxu0 %v1290_v8  ;;  %v1305_v23 = vld [vmem:[#allocation5 + $0xa8] sm:$0xff]   ;;  %v1306_v24 = vld [vmem:[#allocation5 + $0x70] sm:$0xff]   ;;  %v1310_v28 = vld [vmem:[#allocation5 + $0x78] sm:$0xff]  }
  0x86   : > { %1165 = vmatprep.subr.bf16.mxu1 %v1291_v9  ;;  %v1307_v25 = vld [vmem:[#allocation5 + $0xf0] sm:$0xff]   ;;  %v1311_v29 = vld [vmem:[#allocation5 + $0xf8] sm:$0xff]   ;;  %v1742_v60 = vld [vmem:[#allocation7] ss:$0 sm:$0xff] }
  0x87   : > { %v1308_v26 = vld [vmem:[#allocation5 + $0x30] sm:$0xff]   ;;  %v1312_v30 = vld [vmem:[#allocation5 + $0x38] sm:$0xff]  }
  0x88   : > { %1114 = vmatpush3.bf16.msra.mxu0 %v1292_v10  ;;  %v1309_v27 = vld [vmem:[#allocation5 + $0xb0] sm:$0xff]   ;;  %v1313_v31 = vld [vmem:[#allocation5 + $0xb8] sm:$0xff]  }
  0x89   : > { %1166 = vmatpush3.bf16.msra.mxu1 %v1293_v11  ;;  %1115 = vmatprep.subr.bf16.mxu0 %v1294_v12  ;;  %v1314_v32 = vld [vmem:[%s1710_s27] ss:$16 sps:$4 sm:$0xff]   ;;  %v1316_v33 = vld [vmem:[%s1710_s27 + $0x4] ss:$16 sps:$4 sm:$0xff]   ;;  %v1317_v34 = vld [vmem:[%s1710_s27 + $0x8] ss:$16 sps:$4 sm:$0xff]  }
  0x8a   : > { %1167 = vmatprep.subr.bf16.mxu1 %v1295_v13  ;;  %v1319_v35 = vld [vmem:[%s1710_s27 + $0xc] ss:$16 sps:$4 sm:$0xff]   ;;  %667 = vmatprep.mubr.bf16.mxu0 %v1316_v33  ;;  %v1320_v36 = vld [vmem:[%s1710_s27 + $0x24] ss:$16 sps:$4 sm:$0xff]   ;;  %v1324_v38 = vld [vmem:[%s1710_s27 + $0x20] ss:$16 sps:$4 sm:$0xff]  }
  0x8b   : > { %747 = vmatprep.mubr.bf16.mxu1 %v1319_v35  ;;  %v1322_v37 = vld [vmem:[%s1710_s27 + $0x2c] ss:$16 sps:$4 sm:$0xff]   ;;  %v1325_v39 = vld [vmem:[%s1710_s27 + $0x28] ss:$16 sps:$4 sm:$0xff]   ;;  %v1326_v40 = vld [vmem:[%s1710_s27 + $0x44] ss:$16 sps:$4 sm:$0xff]  }
  0x8c   : > { %1116 = vmatpush3.bf16.msra.mxu0 %v1296_v14  ;;  %v1328_v41 = vld [vmem:[%s1710_s27 + $0x4c] ss:$16 sps:$4 sm:$0xff]   ;;  %v1330_v42 = vld [vmem:[%s1710_s27 + $0x40] ss:$16 sps:$4 sm:$0xff]   ;;  %v1331_v43 = vld [vmem:[%s1710_s27 + $0x48] ss:$16 sps:$4 sm:$0xff]  }
  0x8d   : > { %1168 = vmatpush3.bf16.msra.mxu1 %v1297_v15  ;;  %1117 = vmatprep.subr.bf16.mxu0 %v1298_v16  ;;  %v1332_v44 = vld [vmem:[%s1710_s27 + $0x64] ss:$16 sps:$4 sm:$0xff]   ;;  %v1334_v45 = vld [vmem:[%s1710_s27 + $0x6c] ss:$16 sps:$4 sm:$0xff]   ;;  %v1336_v46 = vld [vmem:[%s1710_s27 + $0x60] ss:$16 sps:$4 sm:$0xff]  }
  0x8e   : > { %1169 = vmatprep.subr.bf16.mxu1 %v1299_v17  ;;  %v1337_v47 = vld [vmem:[%s1710_s27 + $0x68] ss:$16 sps:$4 sm:$0xff]   ;;  %v1338_v48 = vld [vmem:[%s1710_s27 + $0x84] ss:$16 sps:$4 sm:$0xff]   ;;  %v1340_v49 = vld [vmem:[%s1710_s27 + $0x8c] ss:$16 sps:$4 sm:$0xff]  }
  0x8f   : > { %v256_v50 = vld [vmem:[%s1710_s27 + $0xa0] sm:$0xff]  ;;  %v257_v51 = vld [vmem:[%s1710_s27 + $0xa8] sm:$0xff] }
  0x90   : > { %1118 = vmatpush3.bf16.msra.mxu0 %v1300_v18  ;;  %v1342_v52 = vld [vmem:[%s1710_s27 + $0x80] ss:$16 sps:$4 sm:$0xff]   ;;  %v1343_v53 = vld [vmem:[%s1710_s27 + $0x88] ss:$16 sps:$4 sm:$0xff]   ;;  %v1011_v54 = vcombine.high %v256_v50, %v256_v50  ;;  %v1013_v55 = vcombine.high %v257_v51, %v257_v51  ;;  %v1010_v56 = vcombine.low %v256_v50, %v256_v50  ;;  %v1012_v57 = vcombine.low %v257_v51, %v257_v51 }
  0x91   : > { %1170 = vmatpush3.bf16.msra.mxu1 %v1301_v19  ;;  %1119 = vmatprep.subr.bf16.mxu0 %v1302_v20 }
  0x92   : > { %1171 = vmatprep.subr.bf16.mxu1 %v1303_v21 }
  0x94   : > { %1120 = vmatpush3.bf16.msra.mxu0 %v1304_v22 }
  0x95   : > { %1172 = vmatpush3.bf16.msra.mxu1 %v1305_v23  ;;  %1121 = vmatprep.subr.bf16.mxu0 %v1306_v24 }
  0x96   : > { %1173 = vmatprep.subr.bf16.mxu1 %v1307_v25 }
  0x98   : > { %1122 = vmatpush3.bf16.msra.mxu0 %v1308_v26 }
  0x99   : > { %1174 = vmatpush3.bf16.msra.mxu1 %v1309_v27  ;;  %1123 = vmatprep.subr.bf16.mxu0 %v1310_v28 }
  0x9a   : > { %1175 = vmatprep.subr.bf16.mxu1 %v1311_v29 }
  0x9c   : > { %1124 = vmatpush3.bf16.msra.mxu0 %v1312_v30 }
  0x9d   : > { %1176 = vmatpush3.bf16.msra.mxu1 %v1313_v31 }
  0x9f   : > { %668 = vmatmul.mubr.bf16.vlgmr.msra.gmra.mrb[0].mxu0 %v1314_v32 }
  0xa0   : > { %748 = vmatmul.mubr.bf16.vlgmr.msra.gmra.mrb[0].mxu1 %v1317_v34  ;;  %675 = vmatprep.mubr.bf16.mxu0 %v1320_v36 }
  0xa1   : > { %755 = vmatprep.mubr.bf16.mxu1 %v1322_v37 }
  0xa7   : > { %676 = vmatmul.mubr.bf16.gmra.mrb[4].mxu0 %v1324_v38 }
  0xa8   : > { %756 = vmatmul.mubr.bf16.gmra.mrb[4].mxu1 %v1325_v39  ;;  %683 = vmatprep.mubr.bf16.mxu0 %v1326_v40 }
  0xa9   : > { %763 = vmatprep.mubr.bf16.mxu1 %v1328_v41 }
  0xaf   : > { %684 = vmatmul.mubr.bf16.gmra.mrb[8].mxu0 %v1330_v42 }
  0xb0   : > { %764 = vmatmul.mubr.bf16.gmra.mrb[8].mxu1 %v1331_v43  ;;  %691 = vmatprep.mubr.bf16.mxu0 %v1332_v44 }
  0xb1   : > { %771 = vmatprep.mubr.bf16.mxu1 %v1334_v45 }
  0xb7   : > { %692 = vmatmul.mubr.bf16.gmra.mrb[12].mxu0 %v1336_v46 }
  0xb8   : > { %772 = vmatmul.mubr.bf16.gmra.mrb[12].mxu1 %v1337_v47  ;;  %699 = vmatprep.mubr.bf16.mxu0 %v1338_v48 }
  0xb9   : > { %779 = vmatprep.mubr.bf16.mxu1 %v1340_v49 }
  0xbf   : > { %700 = vmatmul.mubr.bf16.gmra.mrb[16].mxu0 %v1342_v52 }
  0xc0   : > { %780 = vmatmul.mubr.bf16.gmra.mrb[16].mxu1 %v1343_v53  ;;  %707 = vmatprep.mubr.bf16.mxu0 %v1011_v54 }
  0xc1   : > { %787 = vmatprep.mubr.bf16.mxu1 %v1013_v55 }
  0xc7   : > { %708 = vmatmul.mubr.bf16.gmra.mrb[20].mxu0 %v1010_v56 }
  0xc8   : > { %788 = vmatmul.mubr.bf16.gmra.mrb[20].mxu1 %v1012_v57 }
 0x172   : > { %v1125_v58 = vpop.f32.mrb[0].mxu0 }
 0x173   : > { %v1177_v59 = vpop.f32.mrb[0].mxu1  ;;  %v1126_v61 = vpop.f32.mrb[1].mxu0 }
 0x174   : > { %v1127_v62 = vadd.f32 %v1126_v61, %v1125_v58  ;;  %v1178_v63 = vpop.f32.mrb[1].mxu1  ;;  %v1128_v0 = vpop.f32.mrb[2].mxu0 }
 0x175   : > { %v1179_v1 = vadd.f32 %v1178_v63, %v1177_v59  ;;  %v1180_v2 = vpop.f32.mrb[2].mxu1  ;;  %v1129_v3 = vpop.f32.mrb[3].mxu0 }
 0x176   : > { %v670_v4 = vadd.f32 %v1127_v62, %v1742_v60  ;;  %v1130_v5 = vadd.f32 %v1129_v3, %v1128_v0  ;;  %v1181_v6 = vpop.f32.mrb[3].mxu1 }
 0x177   : > { %v1182_v7 = vadd.f32 %v1181_v6, %v1180_v2 }
 0x178   : > { %v750_v8 = vadd.f32 %v1179_v1, %v670_v4  ;;  %v673_v9 = vadd.f32 %v1130_v5, %v1742_v60 }
 0x17a   : > { %v753_v10 = vadd.f32 %v1182_v7, %v673_v9  ;;  %v1131_v11 = vpop.f32.mrb[4].mxu0  ;;  %v795_v14 = vmax.f32 %v750_v8, 0.0 }
 0x17b   : > { %v1183_v12 = vpop.f32.mrb[4].mxu1  ;;  %v1132_v13 = vpop.f32.mrb[5].mxu0 }
 0x17c   : > { %v796_v15 = vmax.f32 %v753_v10, 0.0  ;;  %v1133_v16 = vadd.f32 %v1132_v13, %v1131_v11  ;;  %v1184_v17 = vpop.f32.mrb[5].mxu1  ;;  %v1134_v18 = vpop.f32.mrb[6].mxu0 }
 0x17d   : > { %v1185_v19 = vadd.f32 %v1184_v17, %v1183_v12  ;;  %v1186_v20 = vpop.f32.mrb[6].mxu1  ;;  %v1135_v21 = vpop.f32.mrb[7].mxu0 }
 0x17e   : > { %v1082_v22 = vpack.c.bf16 %v796_v15, %v795_v14  ;;  %v678_v23 = vadd.f32 %v1133_v16, %v1742_v60  ;;  %v1136_v24 = vadd.f32 %v1135_v21, %v1134_v18  ;;  %v1187_v25 = vpop.f32.mrb[7].mxu1 }
 0x17f   : > { %v1188_v26 = vadd.f32 %v1187_v25, %v1186_v20 }
 0x180   : > { %1083 = vst [vmem:[%s1748_s26] sm:$0xff] %v1082_v22   ;;  %v758_v27 = vadd.f32 %v1185_v19, %v678_v23  ;;  %v681_v28 = vadd.f32 %v1136_v24, %v1742_v60 }
 0x182   : > { %v761_v29 = vadd.f32 %v1188_v26, %v681_v28  ;;  %v1137_v30 = vpop.f32.mrb[8].mxu0  ;;  %v797_v33 = vmax.f32 %v758_v27, 0.0 }
 0x183   : > { %v1189_v31 = vpop.f32.mrb[8].mxu1  ;;  %v1138_v32 = vpop.f32.mrb[9].mxu0 }
 0x184   : > { %v798_v34 = vmax.f32 %v761_v29, 0.0  ;;  %v1139_v35 = vadd.f32 %v1138_v32, %v1137_v30  ;;  %v1190_v36 = vpop.f32.mrb[9].mxu1  ;;  %v1140_v37 = vpop.f32.mrb[10].mxu0 }
 0x185   : > { %v1191_v38 = vadd.f32 %v1190_v36, %v1189_v31  ;;  %v1192_v39 = vpop.f32.mrb[10].mxu1  ;;  %v1141_v40 = vpop.f32.mrb[11].mxu0 }
 0x186   : > { %v1087_v41 = vpack.c.bf16 %v798_v34, %v797_v33  ;;  %v686_v42 = vadd.f32 %v1139_v35, %v1742_v60  ;;  %v1142_v43 = vadd.f32 %v1141_v40, %v1140_v37  ;;  %v1193_v44 = vpop.f32.mrb[11].mxu1 }
 0x187   : > { %v1194_v45 = vadd.f32 %v1193_v44, %v1192_v39 }
 0x188   : > { %1105 = vst [vmem:[%s1748_s26 + $0x8] sm:$0xff] %v1087_v41   ;;  %v766_v46 = vadd.f32 %v1191_v38, %v686_v42  ;;  %v689_v47 = vadd.f32 %v1142_v43, %v1742_v60 }
 0x18a   : > { %v769_v48 = vadd.f32 %v1194_v45, %v689_v47  ;;  %v1143_v49 = vpop.f32.mrb[12].mxu0  ;;  %v799_v52 = vmax.f32 %v766_v46, 0.0 }
 0x18b   : > { %v1195_v50 = vpop.f32.mrb[12].mxu1  ;;  %v1144_v51 = vpop.f32.mrb[13].mxu0 }
 0x18c   : > { %v800_v53 = vmax.f32 %v769_v48, 0.0  ;;  %v1145_v54 = vadd.f32 %v1144_v51, %v1143_v49  ;;  %v1196_v55 = vpop.f32.mrb[13].mxu1  ;;  %v1146_v56 = vpop.f32.mrb[14].mxu0 }
 0x18d   : > { %v1197_v57 = vadd.f32 %v1196_v55, %v1195_v50  ;;  %v1198_v58 = vpop.f32.mrb[14].mxu1  ;;  %v1147_v59 = vpop.f32.mrb[15].mxu0 }
 0x18e   : > { %v1092_v61 = vpack.c.bf16 %v800_v53, %v799_v52  ;;  %v694_v62 = vadd.f32 %v1145_v54, %v1742_v60  ;;  %v1148_v63 = vadd.f32 %v1147_v59, %v1146_v56  ;;  %v1199_v0 = vpop.f32.mrb[15].mxu1 }
 0x18f   : > { %v1200_v1 = vadd.f32 %v1199_v0, %v1198_v58 }
 0x190   : > { %1106 = vst [vmem:[%s1748_s26 + $0x10] sm:$0xff] %v1092_v61   ;;  %v774_v2 = vadd.f32 %v1197_v57, %v694_v62  ;;  %v697_v3 = vadd.f32 %v1148_v63, %v1742_v60 }
 0x192   : > { %v777_v4 = vadd.f32 %v1200_v1, %v697_v3  ;;  %v1149_v5 = vpop.f32.mrb[16].mxu0  ;;  %v801_v8 = vmax.f32 %v774_v2, 0.0 }
 0x193   : > { %v1201_v6 = vpop.f32.mrb[16].mxu1  ;;  %v1150_v7 = vpop.f32.mrb[17].mxu0 }
 0x194   : > { %v802_v9 = vmax.f32 %v777_v4, 0.0  ;;  %v1151_v10 = vadd.f32 %v1150_v7, %v1149_v5  ;;  %v1202_v11 = vpop.f32.mrb[17].mxu1  ;;  %v1152_v12 = vpop.f32.mrb[18].mxu0 }
 0x195   : > { %v1203_v13 = vadd.f32 %v1202_v11, %v1201_v6  ;;  %v1204_v14 = vpop.f32.mrb[18].mxu1  ;;  %v1153_v15 = vpop.f32.mrb[19].mxu0 }
 0x196   : > { %v1097_v16 = vpack.c.bf16 %v802_v9, %v801_v8  ;;  %v702_v17 = vadd.f32 %v1151_v10, %v1742_v60  ;;  %v1154_v18 = vadd.f32 %v1153_v15, %v1152_v12  ;;  %v1205_v19 = vpop.f32.mrb[19].mxu1 }
 0x197   : > { %v1206_v20 = vadd.f32 %v1205_v19, %v1204_v14 }
 0x198   : > { %1107 = vst [vmem:[%s1748_s26 + $0x18] sm:$0xff] %v1097_v16   ;;  %v782_v21 = vadd.f32 %v1203_v13, %v702_v17  ;;  %v705_v22 = vadd.f32 %v1154_v18, %v1742_v60 }
 0x19a   : > { %v785_v23 = vadd.f32 %v1206_v20, %v705_v22  ;;  %v1155_v24 = vpop.f32.mrb[20].mxu0  ;;  %v803_v27 = vmax.f32 %v782_v21, 0.0 }
 0x19b   : > { %v1207_v25 = vpop.f32.mrb[20].mxu1  ;;  %v1156_v26 = vpop.f32.mrb[21].mxu0 }
 0x19c   : > { %v804_v28 = vmax.f32 %v785_v23, 0.0  ;;  %v1157_v29 = vadd.f32 %v1156_v26, %v1155_v24  ;;  %v1208_v30 = vpop.f32.mrb[21].mxu1  ;;  %v1158_v31 = vpop.f32.mrb[22].mxu0 }
 0x19d   : > { %v1209_v32 = vadd.f32 %v1208_v30, %v1207_v25  ;;  %v1210_v33 = vpop.f32.mrb[22].mxu1  ;;  %v1159_v34 = vpop.f32.mrb[23].mxu0 }
 0x19e   : > { %v1102_v35 = vpack.c.bf16 %v804_v28, %v803_v27  ;;  %v710_v36 = vadd.f32 %v1157_v29, %v1742_v60  ;;  %v1211_v37 = vpop.f32.mrb[23].mxu1 }
 0x1a0   : > { %1108 = vst [vmem:[%s1748_s26 + $0x20] sm:$0xff] %v1102_v35   ;;  %v790_v38 = vadd.f32 %v1209_v32, %v710_v36  ;;  %869 = sbr.rel (!%p1845_p9) target bundleno = 451 (0x1c3), region = 48 }
 0x1a2   : > { %v805_v39 = vmax.f32 %v790_v38, 0.0 }
 0x1a4   : > { %v1077_v40 = vpack.c.bf16 %v805_v39, %v805_v39 }
 0x1a6   : > { %861 = vst [vmem:[%s1748_s26 + $0x28] sm:$0xf] %v1077_v40 }
 0x1a7   : > { %s1854_s9 = smov (!%p872_p10, %s871_s9), 11 }
 0x1a8   : > { %s1768_s28 = sshll.u32 %s1854_s9, 6 }
 0x1a9   : > { %s876_s30 = ssub.s32 704, %s1768_s28 }
 0x1aa   : > { %877 = vsyncadd %s863_s29, %s876_s30  ;;  %p1058_p1 = scmp.ne.s32.totalorder %s1768_s28, 0  ;;  %s1078_s24 = smul.u32 704, %s1555_s16 }
 0x1ab   : > { %s882_s5 = sshll.u32 %s1748_s26, 4  ;;  %s1511_s10 = smov [#allocation8]   ;;  %s1781_s5 = int_to_ptr.vmem [resolvable:$true] %s882_s5 }
 0x1ac   : > { %s1779_s8 = scalar_lea.hbm %s1830_s3, %s1078_s24  ;;  %s1432_s22 = scalar_lea.vmem %s1781_s5, %s1768_s28 }
 0x1ad   : > { %p1433_p3 = scmp.ne.s32.totalorder %s1781_s5, %s1432_s22  ;;  %s1436_s11 = sshll.u32 %s1511_s10, 4  ;;  %s1437_s11 = int_to_ptr.vmem [resolvable:$false] %s1436_s11 }
 0x1ae   : > { %s1438_s16 = scalar_lea.vmem %s1437_s11, 1408  ;;  %p1439_p11 = scmp.lt.s32.totalorder %s1781_s5, %s1437_s11 }
 0x1af   : > { %p1434_p5 = pnand %p1433_p3, %p1058_p1  ;;  %p1440_p13 = scmp.lt.s32.totalorder %s1438_s16, %s1432_s22 }
 0x1b1   : > { %p1435_p6 = pneg %p1434_p5  ;;  %p1441_p0 = por %p1440_p13, %p1439_p11 }
 0x1b3   : > { %p1442_p12 = pnand %p1441_p0, %p1435_p6 }
 0x1b5   : > { %1445 = shalt.err (!%p1442_p12)
}
 0x1b6   : > { %s1446_s19 = scalar_lea.hbm %s1779_s8, %s1768_s28  ;;  %s1450_s23 = scalar_lea.hbm %s1830_s3, 1344 }
 0x1b7   : > { %p1447_p7 = scmp.ne.s32.totalorder %s1779_s8, %s1446_s19  ;;  %p1451_p9 = scmp.lt.u32.totalorder %s1779_s8, %s1830_s3 }
 0x1b8   : > { %p1452_p10 = scmp.lt.u32.totalorder %s1450_s23, %s1446_s19  ;;  %p1454_p5 = scmp.lt.u32.totalorder %s1446_s19, %s1779_s8 }
 0x1b9   : > { %p1448_p2 = pnand %p1447_p7, %p1058_p1 }
 0x1ba   : > { %p1453_p3 = por %p1452_p10, %p1451_p9 }
 0x1bb   : > { %p1449_p8 = pneg %p1448_p2 }
 0x1bc   : > { %p1455_p6 = por %p1454_p5, %p1453_p3 }
 0x1be   : > { %p1456_p11 = pnand %p1455_p6, %p1449_p8 }
 0x1c0   : > { %1459 = shalt.err (!%p1456_p11)
}
 0x1c1   : > { %s1512_s9 = smov 64   ;;  %s1513_s30 = smov 4  }
 0x1c2   : > { %888 = dma.vmem_to_hbm [thread:$0]  (%p1058_p1), %s1781_s5, %s1768_s28, %s1779_s8, %s863_s29, %s1512_s9, %s1512_s9, %s1513_s30  }
 0x1c3 PF: > { %s897_s24 = sand.u32 1, %s1490_s12   ;;  %p1846_p13 = scmp.ne.s32.totalorder %s1837_s25, 0 }
 0x1c4   : > { %s898_s6 = scalar_lea.sflag [#allocation4], %s897_s24 }
 0x1c5   : > { %p1234_p0 = pnand %p978_p4, %p1846_p13 }
 0x1c7   : > { %1485 = dma.done.wait (!%p1234_p0), %s898_s6, 704  }
 0x1c8   : > { %1487 = vsyncadd (!%p1234_p0), %s898_s6, 4294966592  ;;  %p17_p12 = scmp.ge.s32.totalorder %s1559_s18, 4   ;;  %s1847_s12 = smov %s1494_s13 }
 0x1c9   : > { %s1848_s13 = smov %s1498_s14  ;;  %s1849_s14 = smov %s1571_s21 }
 0x1ca   : > { %s1850_s15 = smov %s1559_s18  ;;  %19 = sbr.rel (!%p17_p12) target bundleno = 6 (0x6), region = 85 }
 0x1d1   :  { %903 = vsyncpa [#allocation3], 1 }
 0x1d2   :  { %905 = vsyncpa [#allocation3 + $0x1], 1 }
 0x1d3   :  { %906 = vsyncpa [#allocation6], 1 }
 0x1d4   :  { %907 = vsyncpa [#allocation4], 1 }
 0x1d5   :  { %909 = vsyncpa [#allocation4 + $0x1], 1 }

// kernel: act.6
= control target key start
LH: loop header
LB: loop body
LE: loop exit
PB: predicated region body
PF: predicated region fallthrough
CT: control target
= control target key end

     0   :  { %8 = vsyncpa [#allocation3], 0  ;;  %s1815_s0 = inlined_call_operand.hbm [shape: bf16[98,576], index: 0, kind: input, shape index: {}]   ;;  %s1816_s1 = inlined_call_operand.hbm [shape: bf16[576,128], index: 1, kind: input, shape index: {}]   ;;  %s1817_s2 = inlined_call_operand.hbm [shape: f32[1,128], index: 2, kind: input, shape index: {}]   ;;  %s1818_s3 = inlined_call_operand.hbm [shape: bf16[98,128], index: 3, kind: output, shape index: {}]  }
   0x1   :  { %10 = vsyncpa [#allocation3 + $0x1], 0 }
   0x2   :  { %11 = vsyncpa [#allocation6], 0 }
   0x3   :  { %12 = vsyncpa [#allocation4], 0 }
   0x4   :  { %14 = vsyncpa [#allocation4 + $0x1], 0  ;;  %s1548_s12 = smov 0   ;;  %s1550_s13 = smov 0  }
   0x5   :  { %s1552_s14 = smov 0   ;;  %s1554_s15 = smov 0  }
   0x6 LB: > { %s1569_s16 = sadd.s32 4294967295, %s1516_s15   ;;  %s1004_s17 = sadd.s32 4294967294, %s1516_s15   ;;  %s1516_s15 = sphi %s1554_s15, %s1838_s15   ;;  %s1512_s14 = sphi %s1552_s14, %s1837_s14   ;;  %s1508_s13 = sphi %s1550_s13, %s1836_s13   ;;  %s1504_s12 = sphi %s1548_s12, %s1835_s12  }
   0x7   : > { %s1573_s18 = sadd.s32 1, %s1516_s15   ;;  %s27_s19 = sadd.s32 1, %s1512_s14 }
   0x8   : > { %s24_s20 = ssub.s32 %s1516_s15, %s1573_s18  ;;  %p34_p0 = scmp.ne.s32.totalorder %s1512_s14, %s1508_s13 }
   0x9   : > { %p25_p1 = scmp.eq.s32.totalorder %s24_s20, 0  ;;  %p35_p2 = scmp.eq.s32.totalorder %s1516_s15, 0 }
   0xa   : > { %p40_p3 = scmp.ne.s32.totalorder %s1508_s13, %s1504_s12  ;;  %p1819_p4 = scmp.eq.s32.totalorder %s1569_s16, 0 }
   0xb   : > { %s1585_s21 = scalar_select %p25_p1, %s1512_s14, %s27_s19  }
   0xc   : > { %p1587_p5 = por %p35_p2, %p34_p0  ;;  %p1593_p6 = por %p1819_p4, %p40_p3 }
   0xd   : > { %p106_p7 = scmp.eq.s32.totalorder %s1569_s16, 1  ;;  %p112_p8 = scmp.eq.s32.totalorder %s1004_s17, 1 }
   0xe   : > { %s1822_s22 = scalar_select %p1587_p5, 1, 0 }
   0xf   : > { %s1823_s23 = scalar_select %p1593_p6, 1, 0 }
  0x10   : > { %p1005_p9 = scmp.ge.s32.totalorder %s1516_s15, 1  ;;  %p119_p10 = scmp.lt.s32.totalorder %s1516_s15, 3 }
  0x11   : > { %p1600_p11 = por %p106_p7, %p34_p0  ;;  %p1604_p12 = por %p112_p8, %p40_p3 }
  0x12   : > { %p1608_p13 = pnand %p1005_p9, %p119_p10  ;;  %s1518_s27 = smov [#allocation5]  }
  0x13   : > { %s1824_s24 = scalar_select %p1600_p11, 1, 0 }
  0x14   : > { %s1825_s25 = scalar_select %p1604_p12, 1, 0 }
  0x15   : > { %s1826_s26 = scalar_select %p1608_p13, 1, 0 }
  0x16   : > { %p1243_p1 = pneg %p1608_p13  ;;  %s131_s28 = sshll.u32 %s1518_s27, 4  ;;  %s132_s28 = int_to_ptr.vmem [resolvable:$true] %s131_s28 }
  0x17   : > { %s1519_s30 = smov [#allocation7]   ;;  %s1362_s7 = scalar_lea.hbm %s1816_s1, 4608 }
  0x18   : > { %p1616_p2 = pnand %p1243_p1, %p1819_p4  ;;  %s145_s4 = sshll.u32 %s1519_s30, 4  ;;  %s1620_s4 = int_to_ptr.vmem [resolvable:$true] %s145_s4 }
  0x19   : > { %p1363_p0 = scmp.ne.s32.totalorder %s1816_s1, %s1362_s7  ;;  %p1369_p9 = scmp.lt.u32.totalorder %s1362_s7, %s1816_s1 }
  0x1a   : > { %p1364_p3 = pneg %p1616_p2 }
  0x1c   : > { %p1365_p7 = pnand %p1364_p3, %p1363_p0 }
  0x1e   : > { %p1366_p8 = pneg %p1365_p7 }
  0x20   : > { %p1371_p10 = pnand %p1369_p9, %p1366_p8 }
  0x22   : > { %1374 = shalt.err (!%p1371_p10)
}
  0x23   : > { %s1375_s17 = scalar_lea.vmem %s132_s28, 4608  ;;  %p1383_p11 = scmp.lt.s32.totalorder %s132_s28, %s132_s28 }
  0x24   : > { %p1376_p1 = scmp.ne.s32.totalorder %s132_s28, %s1375_s17  ;;  %p1384_p6 = scmp.lt.s32.totalorder %s1375_s17, %s1375_s17 }
  0x26   : > { %p1378_p4 = pnand %p1376_p1, %p1364_p3  ;;  %p1385_p13 = por %p1384_p6, %p1383_p11 }
  0x28   : > { %p1379_p12 = pneg %p1378_p4 }
  0x2a   : > { %p1386_p5 = pnand %p1385_p13, %p1379_p12 }
  0x2c   : > { %1389 = shalt.err (!%p1386_p5)
}
  0x2d   : > { %s1520_s19 = smov 64   ;;  %s1521_s20 = smov 4  }
  0x2e   : > { %1246 = dma.hbm_to_vmem [thread:$0]  (!%p1616_p2), %s1816_s1, 4608, %s132_s28, [#allocation6], %s1520_s19, %s1520_s19, %s1521_s20  }
  0x2f   : > { %s1390_s7 = scalar_lea.hbm %s1817_s2, 16 }
  0x30   : > { %p1391_p4 = scmp.ne.s32.totalorder %s1817_s2, %s1390_s7  ;;  %p1397_p11 = scmp.lt.u32.totalorder %s1390_s7, %s1817_s2 }
  0x32   : > { %p1393_p5 = pnand %p1391_p4, %p1364_p3 }
  0x34   : > { %p1394_p6 = pneg %p1393_p5 }
  0x36   : > { %p1399_p12 = pnand %p1397_p11, %p1394_p6 }
  0x38   : > { %1402 = shalt.err (!%p1399_p12)
}
  0x39   : > { %s1403_s28 = scalar_lea.vmem %s1620_s4, 16  ;;  %s1410_s17 = scalar_lea.vmem %s1620_s4, 32 }
  0x3a   : > { %p1404_p13 = scmp.ne.s32.totalorder %s1620_s4, %s1403_s28  ;;  %p1411_p8 = scmp.lt.s32.totalorder %s1620_s4, %s1620_s4 }
  0x3b   : > { %p1412_p9 = scmp.lt.s32.totalorder %s1410_s17, %s1403_s28 }
  0x3c   : > { %p1406_p0 = pnand %p1404_p13, %p1364_p3 }
  0x3d   : > { %p1413_p10 = por %p1412_p9, %p1411_p8 }
  0x3e   : > { %p1407_p7 = pneg %p1406_p0 }
  0x40   : > { %p1414_p1 = pnand %p1413_p10, %p1407_p7 }
  0x42   : > { %1417 = shalt.err (!%p1414_p1)
}
  0x43   : > { %1249 = dma.hbm_to_vmem [thread:$0]  (!%p1616_p2), %s1817_s2, 16, %s1620_s4, [#allocation6]  }
  0x44   : > { %p1008_p4 = scmp.ge.s32.totalorder %s1516_s15, 2 }
  0x45   : > { %p1828_p3 = scmp.ne.s32.totalorder (!%p1008_p4), %s1822_s22, 0 }
  0x46   : > { %152 = sbr.rel (%p1008_p4) target bundleno = 113 (0x71), region = 24 }
  0x4d   : > { %155 = sbr.rel (!%p1828_p3) target bundleno = 113 (0x71), region = 28  ;;  %s156_s27 = sand.u32 (%p1828_p3), 1, %s1512_s14  }
  0x4e   : > { %s161_s30 = smul.u32 (%p1828_p3), 7, %s1516_s15  ;;  %s1680_s7 = scalar_lea.sflag (%p1828_p3), [#allocation3], %s156_s27 }
  0x4f   : > { %s1229_s5 = smul.u32 (%p1828_p3), 140, %s156_s27 }
  0x50   : > { %s162_s6 = ssub.s32 (%p1828_p3), 13, %s161_s30 }
  0x51   : > { %p163_p5 = scmp.lt.s32.totalorder (%p1828_p3), %s162_s6, 7  ;;  %s160_s8 = scalar_lea.vmem (%p1828_p3), [#allocation2], %s1229_s5 }
  0x54   : > { %s1840_s6 = smov (!%p163_p5, %s162_s6), 7 }
  0x55   : > { %s1677_s29 = smul.u32 320, %s1840_s6 }
  0x57   : > { %s168_s4 = ssub.s32 2240, %s1677_s29 }
  0x58   : > { %169 = vsyncadd %s1680_s7, %s168_s4  ;;  %p1011_p2 = scmp.ne.s32.totalorder %s1677_s29, 0  ;;  %s1256_s22 = smul.u32 2240, %s1516_s15 }
  0x59   : > { %s175_s9 = sshll.u32 %s160_s8, 4  ;;  %s1422_s27 = scalar_lea.hbm %s1815_s0, 4160  ;;  %s1690_s9 = int_to_ptr.vmem [resolvable:$true] %s175_s9 }
  0x5a   : > { %s1688_s28 = scalar_lea.hbm %s1815_s0, %s1256_s22 }
  0x5b   : > { %s1418_s17 = scalar_lea.hbm %s1688_s28, %s1677_s29  ;;  %p1423_p13 = scmp.lt.u32.totalorder %s1688_s28, %s1815_s0 }
  0x5c   : > { %p1419_p6 = scmp.ne.s32.totalorder %s1688_s28, %s1418_s17  ;;  %p1424_p0 = scmp.lt.u32.totalorder %s1422_s27, %s1418_s17 }
  0x5d   : > { %p1426_p8 = scmp.lt.u32.totalorder %s1418_s17, %s1688_s28 }
  0x5e   : > { %p1420_p11 = pnand %p1419_p6, %p1011_p2  ;;  %p1425_p7 = por %p1424_p0, %p1423_p13 }
  0x60   : > { %p1421_p12 = pneg %p1420_p11  ;;  %p1427_p9 = por %p1426_p8, %p1425_p7 }
  0x62   : > { %p1428_p10 = pnand %p1427_p9, %p1421_p12 }
  0x64   : > { %1431 = shalt.err (!%p1428_p10)
}
  0x65   : > { %s1432_s6 = scalar_lea.vmem %s1690_s9, %s1677_s29  ;;  %s1522_s4 = smov [#allocation2]  }
  0x66   : > { %p1433_p1 = scmp.ne.s32.totalorder %s1690_s9, %s1432_s6  ;;  %s1436_s8 = sshll.u32 %s1522_s4, 4  ;;  %s1437_s8 = int_to_ptr.vmem [resolvable:$false] %s1436_s8 }
  0x67   : > { %s1438_s22 = scalar_lea.vmem %s1437_s8, 4480  ;;  %p1439_p6 = scmp.lt.s32.totalorder %s1690_s9, %s1437_s8 }
  0x68   : > { %p1434_p3 = pnand %p1433_p1, %p1011_p2  ;;  %p1440_p11 = scmp.lt.s32.totalorder %s1438_s22, %s1432_s6 }
  0x6a   : > { %p1435_p5 = pneg %p1434_p3  ;;  %p1441_p13 = por %p1440_p11, %p1439_p6 }
  0x6c   : > { %p1442_p0 = pnand %p1441_p13, %p1435_p5 }
  0x6e   : > { %1445 = shalt.err (!%p1442_p0)
}
  0x6f   : > { %s1523_s10 = smov 320   ;;  %s1524_s11 = smov 20  }
  0x70   : > { %181 = dma.hbm_to_vmem [thread:$0]  (%p1011_p2), %s1688_s28, %s1677_s29, %s1690_s9, %s1680_s7, %s1523_s10, %s1523_s10, %s1524_s11  }
  0x71 PF: > { %p1829_p12 = scmp.ne.s32.totalorder %s1826_s26, 0 }
  0x72   : > { %s1720_s17 = sand.u32 (!%p1829_p12), 1, %s1508_s13   ;;  %p1830_p7 = scmp.ne.s32.totalorder (!%p1829_p12), %s1823_s23, 0 }
  0x73   : > { %187 = sbr.rel (%p1829_p12) target bundleno = 443 (0x1bb), region = 32  ;;  %s190_s20 = scalar_lea.sflag (!%p1829_p12), [#allocation3], %s1720_s17 }
  0x74   : > { %s1231_s19 = smul.u32 (!%p1829_p12), 140, %s1720_s17 }
  0x76   : > { %s1724_s27 = scalar_lea.vmem (!%p1829_p12), [#allocation2], %s1231_s19 }
  0x7a   : > { %1491 = dma.done.wait (%p1830_p7), %s190_s20, 2240  }
  0x7b   : > { %1493 = vsyncadd (%p1830_p7), %s190_s20, 4294965056  ;;  %p1831_p2 = scmp.eq.s32.totalorder %s1569_s16, 0 }
  0x7d   : > { %1495 = dma.done.wait (%p1831_p2), [#allocation6], 4624   ;;  %p1832_p8 = pmov %p1831_p2 }
  0x7e   : > { %v1300_v0 = vld [vmem:[#allocation5 + $0x40] sm:$0xff]   ;;  %v1304_v4 = vld [vmem:[#allocation5 + $0x48] sm:$0xff]   ;;  %v1308_v8 = vld [vmem:[#allocation5 + $0x50] sm:$0xff]   ;;  %vm644_vm0 = vcmask 523264   ;;  %s1232_s23 = smul.u32 28, %s1720_s17  ;;  %s893_s29 = scalar_lea.sflag [#allocation4], %s1720_s17 }
  0x7f   : > { %1497 = vsyncadd (%p1832_p8), [#allocation6], 4294962672  ;;  %v1301_v1 = vld [vmem:[#allocation5 + $0xc0] sm:$0xff]   ;;  %1117 = vmatprep.subr.bf16.mxu0 %v1300_v0  ;;  %v1305_v5 = vld [vmem:[#allocation5 + $0xc8] sm:$0xff]   ;;  %p1833_p9 = scmp.ne.s32.totalorder %s1824_s24, 0 }
  0x80   : > { %v1302_v2 = vld [vmem:[#allocation5] sm:$0xff]   ;;  %1157 = vmatprep.subr.bf16.mxu1 %v1301_v1  ;;  %v1306_v6 = vld [vmem:[#allocation5 + $0x8] sm:$0xff]   ;;  %v1309_v9 = vld [vmem:[#allocation5 + $0xd0] sm:$0xff]   ;;  %s223_s26 = scalar_lea.vmem [#allocation8], %s1232_s23  ;;  %s900_s7 = smul.u32 (%p1833_p9), 7, %s1569_s16 }
  0x81   : > { %v1303_v3 = vld [vmem:[#allocation5 + $0x80] sm:$0xff]   ;;  %1118 = vmatpush3.bf16.msra.mxu0 %v1302_v2  ;;  %v1307_v7 = vld [vmem:[#allocation5 + $0x88] sm:$0xff]   ;;  %v1310_v10 = vld [vmem:[#allocation5 + $0x10] sm:$0xff]  }
  0x82   : > { %1158 = vmatpush3.bf16.msra.mxu1 %v1303_v3  ;;  %1119 = vmatprep.subr.bf16.mxu0 %v1304_v4  ;;  %v1311_v11 = vld [vmem:[#allocation5 + $0x90] sm:$0xff]   ;;  %v1312_v12 = vld [vmem:[#allocation5 + $0x58] sm:$0xff]   ;;  %v1316_v16 = vld [vmem:[#allocation5 + $0x60] sm:$0xff]   ;;  %s901_s9 = ssub.s32 (%p1833_p9), 13, %s900_s7 }
  0x83   : > { %1159 = vmatprep.subr.bf16.mxu1 %v1305_v5  ;;  %v1313_v13 = vld [vmem:[#allocation5 + $0xd8] sm:$0xff]   ;;  %v1317_v17 = vld [vmem:[#allocation5 + $0xe0] sm:$0xff]   ;;  %v1320_v20 = vld [vmem:[#allocation5 + $0x68] sm:$0xff]   ;;  %p902_p10 = scmp.lt.s32.totalorder (%p1833_p9), %s901_s9, 7 }
  0x84   : > { %v1314_v14 = vld [vmem:[#allocation5 + $0x18] sm:$0xff]   ;;  %v1318_v18 = vld [vmem:[#allocation5 + $0x20] sm:$0xff]   ;;  %v1321_v21 = vld [vmem:[#allocation5 + $0xe8] sm:$0xff]  }
  0x85   : > { %1120 = vmatpush3.bf16.msra.mxu0 %v1306_v6  ;;  %v1315_v15 = vld [vmem:[#allocation5 + $0x98] sm:$0xff]   ;;  %v1319_v19 = vld [vmem:[#allocation5 + $0xa0] sm:$0xff]   ;;  %v1322_v22 = vld [vmem:[#allocation5 + $0x28] sm:$0xff]  }
  0x86   : > { %1160 = vmatpush3.bf16.msra.mxu1 %v1307_v7  ;;  %1121 = vmatprep.subr.bf16.mxu0 %v1308_v8  ;;  %v1323_v23 = vld [vmem:[#allocation5 + $0xa8] sm:$0xff]   ;;  %v1324_v24 = vld [vmem:[#allocation5 + $0x70] sm:$0xff]   ;;  %v1328_v28 = vld [vmem:[#allocation5 + $0x78] sm:$0xff]  }
  0x87   : > { %1161 = vmatprep.subr.bf16.mxu1 %v1309_v9  ;;  %v1325_v25 = vld [vmem:[#allocation5 + $0xf0] sm:$0xff]   ;;  %v1329_v29 = vld [vmem:[#allocation5 + $0xf8] sm:$0xff]   ;;  %v1338_v36 = vld [vmem:[#allocation5 + $0x100] sm:$0xff]  }
  0x88   : > { %v1326_v26 = vld [vmem:[#allocation5 + $0x30] sm:$0xff]   ;;  %v1330_v30 = vld [vmem:[#allocation5 + $0x38] sm:$0xff]   ;;  %v1345_v39 = vld [vmem:[#allocation5 + $0x108] sm:$0xff]  }
  0x89   : > { %1122 = vmatpush3.bf16.msra.mxu0 %v1310_v10  ;;  %v1327_v27 = vld [vmem:[#allocation5 + $0xb0] sm:$0xff]   ;;  %v1331_v31 = vld [vmem:[#allocation5 + $0xb8] sm:$0xff]   ;;  %v1017_v60 = vld [vmem:[#allocation7] ss:$0 sm:$0xff] }
  0x8a   : > { %1162 = vmatpush3.bf16.msra.mxu1 %v1311_v11  ;;  %1123 = vmatprep.subr.bf16.mxu0 %v1312_v12  ;;  %v1332_v32 = vld [vmem:[%s1724_s27] ss:$20 sps:$4 sm:$0xff]   ;;  %v1334_v33 = vld [vmem:[%s1724_s27 + $0x4] ss:$20 sps:$4 sm:$0xff]   ;;  %v1335_v34 = vld [vmem:[%s1724_s27 + $0x8] ss:$20 sps:$4 sm:$0xff]  }
  0x8b   : > { %1163 = vmatprep.subr.bf16.mxu1 %v1313_v13  ;;  %v1337_v35 = vld [vmem:[%s1724_s27 + $0xc] ss:$20 sps:$4 sm:$0xff]   ;;  %689 = vmatprep.mubr.bf16.mxu0 %v1334_v33  ;;  %v1341_v38 = vld [vmem:[%s1724_s27 + $0x34] ss:$20 sps:$4 sm:$0xff]   ;;  %v1344_v41 = vld [vmem:[%s1724_s27 + $0x30] ss:$20 sps:$4 sm:$0xff]  }
  0x8c   : > { %753 = vmatprep.mubr.bf16.mxu1 %v1337_v35  ;;  %v1339_v37 = vld [vmem:[%s1724_s27 + $0x2c] ss:$20 sps:$4 sm:$0xff]   ;;  %v1343_v40 = vld [vmem:[%s1724_s27 + $0x28] ss:$20 sps:$4 sm:$0xff]   ;;  %v1350_v48 = vld [vmem:[%s1724_s27 + $0x50] ss:$20 sps:$4 sm:$0xff]  }
  0x8d   : > { %1124 = vmatpush3.bf16.msra.mxu0 %v1314_v14  ;;  %v1346_v42 = vld [vmem:[%s1724_s27 + $0x54] ss:$20 sps:$4 sm:$0xff]   ;;  %v1348_v43 = vld [vmem:[%s1724_s27 + $0x5c] ss:$20 sps:$4 sm:$0xff]   ;;  %v255_v47 = vld [vmem:[%s1724_s27 + $0x80] sm:$0xff] }
  0x8e   : > { %1164 = vmatpush3.bf16.msra.mxu1 %v1315_v15  ;;  %1125 = vmatprep.subr.bf16.mxu0 %v1316_v16  ;;  %v1352_v44 = vld [vmem:[#allocation5 + $0x110] sm:$0xff]   ;;  %v1357_v45 = vld [vmem:[#allocation5 + $0x118] sm:$0xff]   ;;  %v1036_v51 = vcombine.high %v255_v47, %v255_v47  ;;  %v1035_v53 = vcombine.low %v255_v47, %v255_v47 }
  0x8f   : > { %1165 = vmatprep.subr.bf16.mxu1 %v1317_v17  ;;  %v254_v46 = vld [vmem:[%s1724_s27 + $0x78] sm:$0xff]  ;;  %v1358_v54 = vld [vmem:[%s1724_s27 + $0x10] ss:$20 sps:$4 sm:$0xff]   ;;  %v1359_v55 = vld [vmem:[%s1724_s27 + $0x60] ss:$20 sps:$4 sm:$0xff]  }
  0x90   : > { %v1351_v49 = vld [vmem:[%s1724_s27 + $0x58] ss:$20 sps:$4 sm:$0xff]   ;;  %v1034_v50 = vcombine.high %v254_v46, %v254_v46  ;;  %v1033_v52 = vcombine.low %v254_v46, %v254_v46  ;;  %v1361_v57 = vld [vmem:[%s1724_s27 + $0x88] ss:$0 sps:$4 sm:$0xff]  }
  0x91   : > { %1126 = vmatpush3.bf16.msra.mxu0 %v1318_v18  ;;  %v1360_v56 = vld [vmem:[%s1724_s27 + $0x38] ss:$20 sps:$4 sm:$0xff]  }
  0x92   : > { %1166 = vmatpush3.bf16.msra.mxu1 %v1319_v19  ;;  %1127 = vmatprep.subr.bf16.mxu0 %v1320_v20 }
  0x93   : > { %1167 = vmatprep.subr.bf16.mxu1 %v1321_v21 }
  0x95   : > { %1128 = vmatpush3.bf16.msra.mxu0 %v1322_v22 }
  0x96   : > { %1168 = vmatpush3.bf16.msra.mxu1 %v1323_v23  ;;  %1129 = vmatprep.subr.bf16.mxu0 %v1324_v24 }
  0x97   : > { %1169 = vmatprep.subr.bf16.mxu1 %v1325_v25 }
  0x99   : > { %1130 = vmatpush3.bf16.msra.mxu0 %v1326_v26 }
  0x9a   : > { %1170 = vmatpush3.bf16.msra.mxu1 %v1327_v27  ;;  %1131 = vmatprep.subr.bf16.mxu0 %v1328_v28 }
  0x9b   : > { %1171 = vmatprep.subr.bf16.mxu1 %v1329_v29 }
  0x9d   : > { %1132 = vmatpush3.bf16.msra.mxu0 %v1330_v30 }
  0x9e   : > { %1172 = vmatpush3.bf16.msra.mxu1 %v1331_v31  ;;  %1205 = vmatprep.subr.bf16.mxu0 %v1338_v36 }
  0x9f   : > { %1221 = vmatprep.subr.bf16.mxu1 %v1338_v36 }
  0xa0   : > { %690 = vmatmul.mubr.bf16.vlgmr.msra.gmra.mrb[0].mxu0 %v1332_v32 }
  0xa1   : > { %754 = vmatmul.mubr.bf16.vlgmr.msra.gmra.mrb[0].mxu1 %v1335_v34  ;;  %1206 = vmatpush3.bf16.msra.mxu0 %v1338_v36 }
  0xa2   : > { %1225 = vmatpush3.bf16.msra.mxu1 %v1338_v36  ;;  %697 = vmatprep.mubr.bf16.mxu0 %v1339_v37 }
  0xa3   : > { %761 = vmatprep.mubr.bf16.mxu1 %v1341_v38  ;;  %1207 = vmatprep.subr.bf16.mxu0 %v1345_v39 }
  0xa4   : > { %1222 = vmatprep.subr.bf16.mxu1 %v1345_v39 }
  0xa5   : > { %1208 = vmatpush3.bf16.msra.mxu0 %v1345_v39 }
  0xa6   : > { %1226 = vmatpush3.bf16.msra.mxu1 %v1345_v39  ;;  %1209 = vmatprep.subr.bf16.mxu0 %v1352_v44 }
  0xa7   : > { %1223 = vmatprep.subr.bf16.mxu1 %v1352_v44 }
  0xa8   : > { %698 = vmatmul.mubr.bf16.gmra.mrb[4].mxu0 %v1343_v40 }
  0xa9   : > { %762 = vmatmul.mubr.bf16.gmra.mrb[4].mxu1 %v1344_v41  ;;  %705 = vmatprep.mubr.bf16.mxu0 %v1346_v42 }
  0xaa   : > { %769 = vmatprep.mubr.bf16.mxu1 %v1348_v43  ;;  %1210 = vmatpush3.bf16.msra.mxu0 %v1352_v44 }
  0xab   : > { %1227 = vmatpush3.bf16.msra.mxu1 %v1352_v44  ;;  %1211 = vmatprep.subr.bf16.mxu0 %v1357_v45 }
  0xac   : > { %1224 = vmatprep.subr.bf16.mxu1 %v1357_v45 }
  0xae   : > { %1212 = vmatpush3.bf16.msra.mxu0 %v1357_v45 }
  0xaf   : > { %1228 = vmatpush3.bf16.msra.mxu1 %v1357_v45 }
  0xb0   : > { %706 = vmatmul.mubr.bf16.gmra.mrb[8].mxu0 %v1350_v48 }
  0xb1   : > { %770 = vmatmul.mubr.bf16.gmra.mrb[8].mxu1 %v1351_v49  ;;  %713 = vmatprep.mubr.bf16.mxu0 %v1034_v50 }
  0xb2   : > { %777 = vmatprep.mubr.bf16.mxu1 %v1036_v51 }
  0xb8   : > { %714 = vmatmul.mubr.bf16.gmra.mrb[12].mxu0 %v1033_v52 }
  0xb9   : > { %778 = vmatmul.mubr.bf16.gmra.mrb[12].mxu1 %v1035_v53  ;;  %1213 = vmatprep.mubr.msk.bf16.mxu0 %vm644_vm0, %v1358_v54 }
  0xba   : > { %1217 = vmatprep.mubr.msk.bf16.mxu1 %vm644_vm0, %v1359_v55 }
  0xc0   : > { %1214 = vmatmul.mubr.msk.bf16.vlgmr.msra.gmra.mrb[16].mxu0 %vm644_vm0, %v1360_v56 }
  0xc1   : > { %1218 = vmatmul.mubr.msk.bf16.vlgmr.msra.gmra.mrb[16].mxu1 %vm644_vm0, %v1361_v57 }
 0x173   : > { %v1133_v58 = vpop.f32.mrb[0].mxu0 }
 0x174   : > { %v1173_v59 = vpop.f32.mrb[0].mxu1  ;;  %v1134_v61 = vpop.f32.mrb[1].mxu0 }
 0x175   : > { %v1135_v62 = vadd.f32 %v1134_v61, %v1133_v58  ;;  %v1174_v63 = vpop.f32.mrb[1].mxu1  ;;  %v1136_v0 = vpop.f32.mrb[2].mxu0 }
 0x176   : > { %v1175_v1 = vadd.f32 %v1174_v63, %v1173_v59  ;;  %v1176_v2 = vpop.f32.mrb[2].mxu1  ;;  %v1137_v3 = vpop.f32.mrb[3].mxu0 }
 0x177   : > { %v692_v4 = vadd.f32 %v1135_v62, %v1017_v60  ;;  %v1138_v5 = vadd.f32 %v1137_v3, %v1136_v0  ;;  %v1177_v6 = vpop.f32.mrb[3].mxu1 }
 0x178   : > { %v1178_v7 = vadd.f32 %v1177_v6, %v1176_v2 }
 0x179   : > { %v695_v8 = vadd.f32 %v1138_v5, %v1017_v60  ;;  %v756_v9 = vadd.f32 %v1175_v1, %v692_v4 }
 0x17b   : > { %v1139_v10 = vpop.f32.mrb[4].mxu0  ;;  %v759_v11 = vadd.f32 %v1178_v7, %v695_v8 }
 0x17c   : > { %v1179_v12 = vpop.f32.mrb[4].mxu1  ;;  %v1140_v13 = vpop.f32.mrb[5].mxu0 }
 0x17d   : > { %v1141_v14 = vadd.f32 %v1140_v13, %v1139_v10  ;;  %v1180_v15 = vpop.f32.mrb[5].mxu1  ;;  %v1142_v16 = vpop.f32.mrb[6].mxu0 }
 0x17e   : > { %v1181_v17 = vadd.f32 %v1180_v15, %v1179_v12  ;;  %v1182_v18 = vpop.f32.mrb[6].mxu1  ;;  %v1143_v19 = vpop.f32.mrb[7].mxu0 }
 0x17f   : > { %v700_v20 = vadd.f32 %v1141_v14, %v1017_v60  ;;  %v1144_v21 = vadd.f32 %v1143_v19, %v1142_v16  ;;  %v1183_v22 = vpop.f32.mrb[7].mxu1 }
 0x180   : > { %v1184_v23 = vadd.f32 %v1183_v22, %v1182_v18 }
 0x181   : > { %v703_v24 = vadd.f32 %v1144_v21, %v1017_v60  ;;  %v764_v25 = vadd.f32 %v1181_v17, %v700_v20 }
 0x183   : > { %v1145_v26 = vpop.f32.mrb[8].mxu0  ;;  %v767_v27 = vadd.f32 %v1184_v23, %v703_v24 }
 0x184   : > { %v1185_v28 = vpop.f32.mrb[8].mxu1  ;;  %v1146_v29 = vpop.f32.mrb[9].mxu0 }
 0x185   : > { %v1147_v30 = vadd.f32 %v1146_v29, %v1145_v26  ;;  %v1186_v31 = vpop.f32.mrb[9].mxu1  ;;  %v1148_v32 = vpop.f32.mrb[10].mxu0 }
 0x186   : > { %v1187_v33 = vadd.f32 %v1186_v31, %v1185_v28  ;;  %v1188_v34 = vpop.f32.mrb[10].mxu1  ;;  %v1149_v35 = vpop.f32.mrb[11].mxu0 }
 0x187   : > { %v708_v36 = vadd.f32 %v1147_v30, %v1017_v60  ;;  %v1150_v37 = vadd.f32 %v1149_v35, %v1148_v32  ;;  %v1189_v38 = vpop.f32.mrb[11].mxu1 }
 0x188   : > { %v1190_v39 = vadd.f32 %v1189_v38, %v1188_v34 }
 0x189   : > { %v711_v40 = vadd.f32 %v1150_v37, %v1017_v60  ;;  %v772_v41 = vadd.f32 %v1187_v33, %v708_v36 }
 0x18b   : > { %v1151_v42 = vpop.f32.mrb[12].mxu0  ;;  %v775_v43 = vadd.f32 %v1190_v39, %v711_v40 }
 0x18c   : > { %v1191_v44 = vpop.f32.mrb[12].mxu1  ;;  %v1152_v45 = vpop.f32.mrb[13].mxu0 }
 0x18d   : > { %v1153_v46 = vadd.f32 %v1152_v45, %v1151_v42  ;;  %v1192_v47 = vpop.f32.mrb[13].mxu1  ;;  %v1154_v48 = vpop.f32.mrb[14].mxu0 }
 0x18e   : > { %v1193_v49 = vadd.f32 %v1192_v47, %v1191_v44  ;;  %v1194_v50 = vpop.f32.mrb[14].mxu1  ;;  %v1155_v51 = vpop.f32.mrb[15].mxu0 }
 0x18f   : > { %v716_v52 = vadd.f32 %v1153_v46, %v1017_v60  ;;  %v1195_v53 = vpop.f32.mrb[15].mxu1 }
 0x191   : > { %v780_v54 = vadd.f32 %v1193_v49, %v716_v52 }
 0x193   : > { %v1215_v55 = vpop.f32.mrb[16].mxu0 }
 0x194   : > { %v828_v56 = vadd.f32 %v1215_v55, %v764_v25  ;;  %v1219_v57 = vpop.f32.mrb[16].mxu1  ;;  %v819_v58 = vpop.f32.mrb[17].mxu0 }
 0x195   : > { %v844_v59 = vadd.f32 %v1219_v57, %v780_v54  ;;  %v820_v61 = vadd.f32 %v819_v58, %v756_v9  ;;  %v835_v62 = vpop.f32.mrb[17].mxu1  ;;  %v1216_v63 = vpop.f32.mrb[18].mxu0 }
 0x196   : > { %v836_v0 = vadd.f32 %v835_v62, %v772_v41  ;;  %v831_v1 = vadd.f32 %v1216_v63, %v767_v27  ;;  %v1220_v2 = vpop.f32.mrb[18].mxu1  ;;  %v822_v3 = vpop.f32.mrb[19].mxu0  ;;  %v851_v7 = vmax.f32 %v828_v56, 0.0 }
 0x197   : > { %v855_v4 = vmax.f32 %v844_v59, 0.0  ;;  %v823_v5 = vadd.f32 %v822_v3, %v759_v11  ;;  %v838_v6 = vpop.f32.mrb[19].mxu1  ;;  %v849_v12 = vmax.f32 %v820_v61, 0.0 }
 0x198   : > { %v852_v60 = vmax.f32 %v831_v1, 0.0  ;;  %v839_v8 = vadd.f32 %v838_v6, %v775_v43  ;;  %v853_v14 = vmax.f32 %v836_v0, 0.0  ;;  %899 = sbr.rel (!%p1833_p9) target bundleno = 443 (0x1bb), region = 48 }
 0x199   : > { %v1098_v10 = vpack.c.bf16 %v855_v4, %v855_v4  ;;  %v850_v13 = vmax.f32 %v823_v5, 0.0 }
 0x19a   : > { %v1108_v15 = vpack.c.bf16 %v852_v60, %v851_v7  ;;  %v854_v16 = vmax.f32 %v839_v8, 0.0 }
 0x19b   : > { %891 = vst [vmem:[%s223_s26 + $0x18] sm:$0xf] %v1098_v10  ;;  %v1103_v9 = vpack.c.bf16 %v850_v13, %v849_v12 }
 0x19c   : > { %1115 = vst [vmem:[%s223_s26 + $0x8] sm:$0xff] %v1108_v15   ;;  %v1113_v17 = vpack.c.bf16 %v854_v16, %v853_v14 }
 0x19d   : > { %1104 = vst [vmem:[%s223_s26] sm:$0xff] %v1103_v9  }
 0x19e   : > { %1116 = vst [vmem:[%s223_s26 + $0x10] sm:$0xff] %v1113_v17  }
 0x19f   : > { %s1842_s9 = smov (!%p902_p10, %s901_s9), 7 }
 0x1a0   : > { %s1757_s28 = sshll.u32 %s1842_s9, 6 }
 0x1a1   : > { %s906_s30 = ssub.s32 448, %s1757_s28 }
 0x1a2   : > { %907 = vsyncadd %s893_s29, %s906_s30  ;;  %p1086_p1 = scmp.ne.s32.totalorder %s1757_s28, 0  ;;  %s1099_s5 = smul.u32 448, %s1569_s16 }
 0x1a3   : > { %s912_s24 = sshll.u32 %s223_s26, 4  ;;  %s1525_s10 = smov [#allocation8]   ;;  %s1769_s24 = int_to_ptr.vmem [resolvable:$true] %s912_s24 }
 0x1a4   : > { %s1767_s8 = scalar_lea.hbm %s1818_s3, %s1099_s5  ;;  %s1446_s22 = scalar_lea.vmem %s1769_s24, %s1757_s28 }
 0x1a5   : > { %p1447_p3 = scmp.ne.s32.totalorder %s1769_s24, %s1446_s22  ;;  %s1450_s11 = sshll.u32 %s1525_s10, 4  ;;  %s1451_s11 = int_to_ptr.vmem [resolvable:$false] %s1450_s11 }
 0x1a6   : > { %s1452_s16 = scalar_lea.vmem %s1451_s11, 896  ;;  %p1453_p11 = scmp.lt.s32.totalorder %s1769_s24, %s1451_s11 }
 0x1a7   : > { %p1448_p5 = pnand %p1447_p3, %p1086_p1  ;;  %p1454_p13 = scmp.lt.s32.totalorder %s1452_s16, %s1446_s22 }
 0x1a9   : > { %p1449_p6 = pneg %p1448_p5  ;;  %p1455_p0 = por %p1454_p13, %p1453_p11 }
 0x1ab   : > { %p1456_p12 = pnand %p1455_p0, %p1449_p6 }
 0x1ad   : > { %1459 = shalt.err (!%p1456_p12)
}
 0x1ae   : > { %s1460_s19 = scalar_lea.hbm %s1767_s8, %s1757_s28  ;;  %s1464_s23 = scalar_lea.hbm %s1818_s3, 832 }
 0x1af   : > { %p1461_p7 = scmp.ne.s32.totalorder %s1767_s8, %s1460_s19  ;;  %p1465_p9 = scmp.lt.u32.totalorder %s1767_s8, %s1818_s3 }
 0x1b0   : > { %p1466_p10 = scmp.lt.u32.totalorder %s1464_s23, %s1460_s19  ;;  %p1468_p5 = scmp.lt.u32.totalorder %s1460_s19, %s1767_s8 }
 0x1b1   : > { %p1462_p2 = pnand %p1461_p7, %p1086_p1 }
 0x1b2   : > { %p1467_p3 = por %p1466_p10, %p1465_p9 }
 0x1b3   : > { %p1463_p8 = pneg %p1462_p2 }
 0x1b4   : > { %p1469_p6 = por %p1468_p5, %p1467_p3 }
 0x1b6   : > { %p1470_p11 = pnand %p1469_p6, %p1463_p8 }
 0x1b8   : > { %1473 = shalt.err (!%p1470_p11)
}
 0x1b9   : > { %s1526_s9 = smov 64   ;;  %s1527_s30 = smov 4  }
 0x1ba   : > { %918 = dma.vmem_to_hbm [thread:$0]  (%p1086_p1), %s1769_s24, %s1757_s28, %s1767_s8, %s893_s29, %s1526_s9, %s1526_s9, %s1527_s30  }
 0x1bb PF: > { %s927_s5 = sand.u32 1, %s1504_s12   ;;  %p1834_p13 = scmp.ne.s32.totalorder %s1825_s25, 0 }
 0x1bc   : > { %s928_s6 = scalar_lea.sflag [#allocation4], %s927_s5 }
 0x1bd   : > { %p1251_p0 = pnand %p1008_p4, %p1834_p13 }
 0x1bf   : > { %1499 = dma.done.wait (!%p1251_p0), %s928_s6, 448  }
 0x1c0   : > { %1501 = vsyncadd (!%p1251_p0), %s928_s6, 4294966848  ;;  %p17_p12 = scmp.ge.s32.totalorder %s1573_s18, 4   ;;  %s1835_s12 = smov %s1508_s13 }
 0x1c1   : > { %s1836_s13 = smov %s1512_s14  ;;  %s1837_s14 = smov %s1585_s21 }
 0x1c2   : > { %s1838_s15 = smov %s1573_s18  ;;  %19 = sbr.rel (!%p17_p12) target bundleno = 6 (0x6), region = 85 }
 0x1c9   :  { %933 = vsyncpa [#allocation3], 1 }
 0x1ca   :  { %935 = vsyncpa [#allocation3 + $0x1], 1 }
 0x1cb   :  { %936 = vsyncpa [#allocation6], 1 }
 0x1cc   :  { %937 = vsyncpa [#allocation4], 1 }
 0x1cd   :  { %939 = vsyncpa [#allocation4 + $0x1], 1 }

// kernel: act.7
= control target key start
LH: loop header
LB: loop body
LE: loop exit
PB: predicated region body
PF: predicated region fallthrough
CT: control target
= control target key end

     0   :  { %10 = vsyncpa [#allocation3], 0  ;;  %s4990_s0 = inlined_call_operand.hbm [shape: bf16[2,1568], index: 0, kind: input, shape index: {}]   ;;  %s4991_s1 = inlined_call_operand.hbm [shape: bf16[1568,512], index: 1, kind: input, shape index: {}]   ;;  %s4992_s2 = inlined_call_operand.hbm [shape: f32[1,512], index: 2, kind: input, shape index: {}]   ;;  %s4993_s3 = inlined_call_operand.hbm [shape: bf16[512,128], index: 3, kind: input, shape index: {}]   ;;  %s4994_s4 = inlined_call_operand.hbm [shape: f32[1,128], index: 4, kind: input, shape index: {}]   ;;  %s4995_s5 = inlined_call_operand.hbm [shape: f32[2,128], index: 5, kind: output, shape index: {}]  }
   0x1   :  { %11 = vsyncpa [#allocation6], 0 }
   0x2   :  { %12 = vsyncpa [#allocation9], 0 }
   0x3   :  { %13 = vsyncpa [#allocation4], 0  ;;  %s4806_s18 = smov [#allocation5]   ;;  %s4666_s22 = scalar_lea.hbm %s4991_s1, 50176 }
   0x4   :  { %s29_s19 = sshll.u32 %s4806_s18, 4  ;;  %p4667_p0 = scmp.ne.s32.totalorder %s4991_s1, %s4666_s22  ;;  %s30_s19 = int_to_ptr.vmem [resolvable:$true] %s29_s19 }
   0x5   :  { %p4670_p1 = scmp.lt.u32.totalorder %s4666_s22, %s4991_s1 }
   0x7   :  { %p4672_p2 = pnand %p4670_p1, %p4667_p0 }
   0x9   :  { %4675 = shalt.err (!%p4672_p2)
}
   0xa   :  { %s4676_s27 = scalar_lea.vmem %s30_s19, 50176  ;;  %p4681_p4 = scmp.lt.s32.totalorder %s30_s19, %s30_s19 }
   0xb   :  { %p4677_p3 = scmp.ne.s32.totalorder %s30_s19, %s4676_s27  ;;  %p4682_p5 = scmp.lt.s32.totalorder %s4676_s27, %s4676_s27 }
   0xd   :  { %p4683_p6 = por %p4682_p5, %p4681_p4 }
   0xf   :  { %p4684_p7 = pnand %p4683_p6, %p4677_p3 }
  0x11   :  { %4687 = shalt.err (!%p4684_p7)
}
  0x12   :  { %s4807_s28 = smov 256   ;;  %s4808_s29 = smov 16  }
  0x13   :  { %35 = dma.hbm_to_vmem [thread:$0]  %s4991_s1, 50176, %s30_s19, [#allocation6], %s4807_s28, %s4807_s28, %s4808_s29  }
  0x14   :  { %s4809_s7 = smov [#allocation8]   ;;  %s4688_s11 = scalar_lea.hbm %s4993_s3, 4096 }
  0x15   :  { %s51_s8 = sshll.u32 %s4809_s7, 4  ;;  %p4689_p8 = scmp.ne.s32.totalorder %s4993_s3, %s4688_s11  ;;  %s52_s8 = int_to_ptr.vmem [resolvable:$true] %s51_s8 }
  0x16   :  { %p4692_p9 = scmp.lt.u32.totalorder %s4688_s11, %s4993_s3 }
  0x18   :  { %p4694_p10 = pnand %p4692_p9, %p4689_p8 }
  0x1a   :  { %4697 = shalt.err (!%p4694_p10)
}
  0x1b   :  { %s4698_s16 = scalar_lea.vmem %s52_s8, 4096  ;;  %p4703_p12 = scmp.lt.s32.totalorder %s52_s8, %s52_s8 }
  0x1c   :  { %p4699_p11 = scmp.ne.s32.totalorder %s52_s8, %s4698_s16  ;;  %p4704_p13 = scmp.lt.s32.totalorder %s4698_s16, %s4698_s16 }
  0x1e   :  { %p4705_p0 = por %p4704_p13, %p4703_p12 }
  0x20   :  { %p4706_p1 = pnand %p4705_p0, %p4699_p11 }
  0x22   :  { %4709 = shalt.err (!%p4706_p1)
}
  0x23   :  { %s4810_s1 = smov 64   ;;  %s4811_s17 = smov 4  }
  0x24   :  { %57 = dma.hbm_to_vmem [thread:$0]  %s4993_s3, 4096, %s52_s8, [#allocation9], %s4810_s1, %s4810_s1, %s4811_s17  }
  0x25   :  { %s4812_s20 = smov [#allocation2]   ;;  %s4813_s22 = smov [#allocation7]  }
  0x26   :  { %s20_s21 = sshll.u32 %s4812_s20, 4  ;;  %s42_s23 = sshll.u32 %s4813_s22, 4  ;;  %s21_s21 = int_to_ptr.vmem [resolvable:$true] %s20_s21  ;;  %s43_s23 = int_to_ptr.vmem [resolvable:$true] %s42_s23 }
  0x27   :  { %s4710_s26 = scalar_lea.hbm %s4990_s0, 208 }
  0x28   :  { %p4711_p2 = scmp.ne.s32.totalorder %s4990_s0, %s4710_s26  ;;  %p4714_p3 = scmp.lt.u32.totalorder %s4710_s26, %s4990_s0 }
  0x2a   :  { %p4716_p4 = pnand %p4714_p3, %p4711_p2 }
  0x2c   :  { %4719 = shalt.err (!%p4716_p4)
}
  0x2d   :  { %s4720_s3 = scalar_lea.vmem %s21_s21, 208  ;;  %s4724_s6 = scalar_lea.vmem %s21_s21, 224 }
  0x2e   :  { %p4721_p5 = scmp.ne.s32.totalorder %s21_s21, %s4720_s3  ;;  %p4725_p6 = scmp.lt.s32.totalorder %s21_s21, %s21_s21 }
  0x2f   :  { %p4726_p7 = scmp.lt.s32.totalorder %s4724_s6, %s4720_s3 }
  0x31   :  { %p4727_p8 = por %p4726_p7, %p4725_p6 }
  0x33   :  { %p4728_p9 = pnand %p4727_p8, %p4721_p5 }
  0x35   :  { %4731 = shalt.err (!%p4728_p9)
}
  0x36   :  { %23 = dma.hbm_to_vmem [thread:$0]  %s4990_s0, 208, %s21_s21, [#allocation3]  }
  0x37   :  { %s4732_s11 = scalar_lea.hbm %s4992_s2, 64 }
  0x38   :  { %p4733_p10 = scmp.ne.s32.totalorder %s4992_s2, %s4732_s11  ;;  %p4736_p11 = scmp.lt.u32.totalorder %s4732_s11, %s4992_s2 }
  0x3a   :  { %p4738_p12 = pnand %p4736_p11, %p4733_p10 }
  0x3c   :  { %4741 = shalt.err (!%p4738_p12)
}
  0x3d   :  { %s4742_s16 = scalar_lea.vmem %s43_s23, 64  ;;  %p4747_p0 = scmp.lt.s32.totalorder %s43_s23, %s43_s23 }
  0x3e   :  { %p4743_p13 = scmp.ne.s32.totalorder %s43_s23, %s4742_s16  ;;  %p4748_p1 = scmp.lt.s32.totalorder %s4742_s16, %s4742_s16 }
  0x40   :  { %p4749_p2 = por %p4748_p1, %p4747_p0 }
  0x42   :  { %p4750_p3 = pnand %p4749_p2, %p4743_p13 }
  0x44   :  { %4753 = shalt.err (!%p4750_p3)
}
  0x45   :  { %45 = dma.hbm_to_vmem [thread:$0]  %s4992_s2, 64, %s43_s23, [#allocation6]  }
  0x46   :  { %s4814_s17 = smov [#allocation10]   ;;  %s4754_s21 = scalar_lea.hbm %s4994_s4, 16 }
  0x47   :  { %s64_s18 = sshll.u32 %s4814_s17, 4  ;;  %p4755_p4 = scmp.ne.s32.totalorder %s4994_s4, %s4754_s21  ;;  %s65_s18 = int_to_ptr.vmem [resolvable:$true] %s64_s18 }
  0x48   :  { %p4758_p5 = scmp.lt.u32.totalorder %s4754_s21, %s4994_s4 }
  0x4a   :  { %p4760_p6 = pnand %p4758_p5, %p4755_p4 }
  0x4c   :  { %4763 = shalt.err (!%p4760_p6)
}
  0x4d   :  { %s4764_s27 = scalar_lea.vmem %s65_s18, 16  ;;  %s4768_s2 = scalar_lea.vmem %s65_s18, 32 }
  0x4e   :  { %p4765_p7 = scmp.ne.s32.totalorder %s65_s18, %s4764_s27  ;;  %p4769_p8 = scmp.lt.s32.totalorder %s65_s18, %s65_s18 }
  0x4f   :  { %p4770_p9 = scmp.lt.s32.totalorder %s4768_s2, %s4764_s27 }
  0x51   :  { %p4771_p10 = por %p4770_p9, %p4769_p8 }
  0x53   :  { %p4772_p11 = pnand %p4771_p10, %p4765_p7 }
  0x55   :  { %4775 = shalt.err (!%p4772_p11)
}
  0x56   :  { %67 = dma.hbm_to_vmem [thread:$0]  %s4994_s4, 16, %s65_s18, [#allocation9]  }
  0x57   :  { %4798 = dma.done.wait [#allocation3], 208  }
  0x58   :  { %4799 = vsyncadd [#allocation3], 4294967088 }
  0x59   :  { %4800 = dma.done.wait [#allocation6], 50240  }
  0x5a   :  { %4801 = vsyncadd [#allocation6], 4294917056 }
  0x5b   :  { %4802 = dma.done.wait [#allocation9], 4112  }
  0x5c   :  { %4803 = vsyncadd [#allocation9], 4294963184  ;;  %v4044_v0 = vld [vmem:[#allocation5 + $0x4] ss:$16 sps:$4 sm:$0xff]   ;;  %v4046_v1 = vld [vmem:[#allocation5 + $0xc] ss:$16 sps:$4 sm:$0xff]   ;;  %v480_v36 = vlaneseq }
  0x5d   :  { %2566 = vmatprep.subr.bf16.mxu0 %v4044_v0  ;;  %v4048_v2 = vld [vmem:[#allocation5] ss:$16 sps:$4 sm:$0xff]   ;;  %v4049_v3 = vld [vmem:[#allocation5 + $0x8] ss:$16 sps:$4 sm:$0xff]   ;;  %2853 = vmatprep.subr.bf16.mxu1 %v4046_v1  ;;  %v4050_v4 = vld [vmem:[#allocation5 + $0x24] ss:$16 sps:$4 sm:$0xff]  }
  0x5e   :  { %2567 = vmatpush1.bf16.msra.mxu0 %v4048_v2  ;;  %2854 = vmatpush1.bf16.msra.mxu1 %v4049_v3  ;;  %v4052_v5 = vld [vmem:[#allocation5 + $0x2c] ss:$16 sps:$4 sm:$0xff]   ;;  %v4054_v6 = vld [vmem:[#allocation5 + $0x20] ss:$16 sps:$4 sm:$0xff]   ;;  %v4055_v7 = vld [vmem:[#allocation5 + $0x28] ss:$16 sps:$4 sm:$0xff]  }
  0x5f   :  { %2568 = vmatprep.subr.bf16.mxu0 %v4050_v4  ;;  %2855 = vmatprep.subr.bf16.mxu1 %v4052_v5  ;;  %v4056_v8 = vld [vmem:[#allocation5 + $0x44] ss:$16 sps:$4 sm:$0xff]   ;;  %v4058_v9 = vld [vmem:[#allocation5 + $0x4c] ss:$16 sps:$4 sm:$0xff]   ;;  %v4060_v10 = vld [vmem:[#allocation5 + $0x40] ss:$16 sps:$4 sm:$0xff]  }
  0x60   :  { %v4061_v11 = vld [vmem:[#allocation5 + $0x48] ss:$16 sps:$4 sm:$0xff]   ;;  %v4062_v12 = vld [vmem:[#allocation5 + $0x64] ss:$16 sps:$4 sm:$0xff]   ;;  %v4064_v13 = vld [vmem:[#allocation5 + $0x6c] ss:$16 sps:$4 sm:$0xff]  }
  0x61   :  { %v4066_v14 = vld [vmem:[#allocation5 + $0x60] ss:$16 sps:$4 sm:$0xff]   ;;  %v4067_v15 = vld [vmem:[#allocation5 + $0x68] ss:$16 sps:$4 sm:$0xff]   ;;  %v4068_v16 = vld [vmem:[#allocation5 + $0x84] ss:$16 sps:$4 sm:$0xff]  }
  0x62   :  { %2569 = vmatpush1.bf16.msra.mxu0 %v4054_v6  ;;  %2856 = vmatpush1.bf16.msra.mxu1 %v4055_v7  ;;  %v4070_v17 = vld [vmem:[#allocation5 + $0x8c] ss:$16 sps:$4 sm:$0xff]   ;;  %v4072_v18 = vld [vmem:[#allocation5 + $0x80] ss:$16 sps:$4 sm:$0xff]   ;;  %v4073_v19 = vld [vmem:[#allocation5 + $0x88] ss:$16 sps:$4 sm:$0xff]  }
  0x63   :  { %2570 = vmatprep.subr.bf16.mxu0 %v4056_v8  ;;  %2857 = vmatprep.subr.bf16.mxu1 %v4058_v9  ;;  %v4074_v20 = vld [vmem:[#allocation5 + $0xa4] ss:$16 sps:$4 sm:$0xff]   ;;  %v4076_v21 = vld [vmem:[#allocation5 + $0xac] ss:$16 sps:$4 sm:$0xff]   ;;  %v4078_v22 = vld [vmem:[#allocation5 + $0xa0] ss:$16 sps:$4 sm:$0xff]  }
  0x64   :  { %v4079_v23 = vld [vmem:[#allocation5 + $0xa8] ss:$16 sps:$4 sm:$0xff]   ;;  %v4080_v24 = vld [vmem:[#allocation5 + $0xc4] ss:$16 sps:$4 sm:$0xff]   ;;  %v4082_v25 = vld [vmem:[#allocation5 + $0xcc] ss:$16 sps:$4 sm:$0xff]  }
  0x65   :  { %v4084_v26 = vld [vmem:[#allocation5 + $0xc0] ss:$16 sps:$4 sm:$0xff]   ;;  %v4085_v27 = vld [vmem:[#allocation5 + $0xc8] ss:$16 sps:$4 sm:$0xff]   ;;  %v4086_v28 = vld [vmem:[#allocation5 + $0xe4] ss:$16 sps:$4 sm:$0xff]  }
  0x66   :  { %2571 = vmatpush1.bf16.msra.mxu0 %v4060_v10  ;;  %2858 = vmatpush1.bf16.msra.mxu1 %v4061_v11  ;;  %v4088_v29 = vld [vmem:[#allocation5 + $0xec] ss:$16 sps:$4 sm:$0xff]   ;;  %v4090_v30 = vld [vmem:[#allocation5 + $0xe0] ss:$16 sps:$4 sm:$0xff]   ;;  %v4091_v31 = vld [vmem:[#allocation5 + $0xe8] ss:$16 sps:$4 sm:$0xff]  }
  0x67   :  { %2572 = vmatprep.subr.bf16.mxu0 %v4062_v12  ;;  %2859 = vmatprep.subr.bf16.mxu1 %v4064_v13  ;;  %v4092_v32 = vld [vmem:[#allocation5 + $0x104] ss:$16 sps:$4 sm:$0xff]   ;;  %v4094_v33 = vld [vmem:[#allocation5 + $0x10c] ss:$16 sps:$4 sm:$0xff]   ;;  %v4096_v34 = vld [vmem:[#allocation5 + $0x100] ss:$16 sps:$4 sm:$0xff]  }
  0x68   :  { %v4097_v35 = vld [vmem:[#allocation5 + $0x108] ss:$16 sps:$4 sm:$0xff]   ;;  %v4815_v37 = vmov 1966171168   ;;  %v4098_v39 = vld [vmem:[#allocation5 + $0x124] ss:$16 sps:$4 sm:$0xff]  }
  0x69   :  { %v504_v38 = vunpack.c.l.s4 %v4815_v37  ;;  %v4100_v40 = vld [vmem:[#allocation5 + $0x12c] ss:$16 sps:$4 sm:$0xff]   ;;  %v4102_v41 = vld [vmem:[#allocation5 + $0x120] ss:$16 sps:$4 sm:$0xff]   ;;  %v4908_v42 = vshrl.u32 %v480_v36, 7  ;;  %vm2562_vm0 = vcmask 261120  }
  0x6a   :  { %2573 = vmatpush1.bf16.msra.mxu0 %v4066_v14  ;;  %2860 = vmatpush1.bf16.msra.mxu1 %v4067_v15  ;;  %v4103_v44 = vld [vmem:[#allocation5 + $0x128] ss:$16 sps:$4 sm:$0xff]   ;;  %v4104_v45 = vld [vmem:[#allocation5 + $0x144] ss:$16 sps:$4 sm:$0xff]   ;;  %v4106_v46 = vld [vmem:[#allocation5 + $0x14c] ss:$16 sps:$4 sm:$0xff]  }
  0x6b   :  { %2574 = vmatprep.subr.bf16.mxu0 %v4068_v16  ;;  %2861 = vmatprep.subr.bf16.mxu1 %v4070_v17  ;;  %v505_v43 = vunpack.c.0.s8 %v504_v38  ;;  %v4108_v47 = vld [vmem:[#allocation5 + $0x140] ss:$16 sps:$4 sm:$0xff]   ;;  %v4109_v48 = vld [vmem:[#allocation5 + $0x148] ss:$16 sps:$4 sm:$0xff]   ;;  %v4110_v50 = vld [vmem:[#allocation5 + $0x164] ss:$16 sps:$4 sm:$0xff]  }
  0x6c   :  { %v4112_v51 = vld [vmem:[#allocation5 + $0x16c] ss:$16 sps:$4 sm:$0xff]   ;;  %v4913_v52 = vld [vmem:[#allocation2] sm:$0xff]  ;;  %s4817_s4 = smov [#allocation11]  }
  0x6d   :  { %v4911_v49 = vsub.s32 %v505_v43, %v4908_v42  ;;  %v4114_v53 = vld [vmem:[#allocation5 + $0x160] ss:$16 sps:$4 sm:$0xff]   ;;  %v4115_v55 = vld [vmem:[#allocation5 + $0x168] ss:$16 sps:$4 sm:$0xff]   ;;  %v4116_v56 = vld [vmem:[#allocation5 + $0x184] ss:$16 sps:$4 sm:$0xff]  }
  0x6e   :  { %2575 = vmatpush1.bf16.msra.mxu0 %v4072_v18  ;;  %2862 = vmatpush1.bf16.msra.mxu1 %v4073_v19  ;;  %v4118_v57 = vld [vmem:[#allocation5 + $0x18c] ss:$16 sps:$4 sm:$0xff]   ;;  %v4120_v59 = vld [vmem:[#allocation5 + $0x180] ss:$16 sps:$4 sm:$0xff]   ;;  %v4121_v61 = vld [vmem:[#allocation5 + $0x188] ss:$16 sps:$4 sm:$0xff]  }
  0x6f   :  { %2576 = vmatprep.subr.bf16.mxu0 %v4074_v20  ;;  %2863 = vmatprep.subr.bf16.mxu1 %v4076_v21  ;;  %v509_v54 = vrot.slane %v4913_v52, %v4911_v49  ;;  %v4122_v62 = vld [vmem:[#allocation5 + $0x1a4] ss:$16 sps:$4 sm:$0xff]   ;;  %v4124_v63 = vld [vmem:[#allocation5 + $0x1ac] ss:$16 sps:$4 sm:$0xff]   ;;  %v4126_v0 = vld [vmem:[#allocation5 + $0x1a0] ss:$16 sps:$4 sm:$0xff]  }
  0x70   :  { %v4127_v1 = vld [vmem:[#allocation5 + $0x1a8] ss:$16 sps:$4 sm:$0xff]   ;;  %v4128_v2 = vld [vmem:[#allocation5 + $0x1c4] ss:$16 sps:$4 sm:$0xff]   ;;  %v4130_v3 = vld [vmem:[#allocation5 + $0x1cc] ss:$16 sps:$4 sm:$0xff]  }
  0x71   :  { %v517_v58 = vcombine.high %v509_v54, %v509_v54  ;;  %v4132_v4 = vld [vmem:[#allocation5 + $0x1c0] ss:$16 sps:$4 sm:$0xff]   ;;  %v4133_v5 = vld [vmem:[#allocation5 + $0x1c8] ss:$16 sps:$4 sm:$0xff]   ;;  %v4134_v6 = vld [vmem:[#allocation5 + $0x1e4] ss:$16 sps:$4 sm:$0xff]   ;;  %v4919_v13 = vrot.slane %v509_v54, %v4911_v49 }
  0x72   :  { %2577 = vmatpush1.bf16.msra.mxu0 %v4078_v22  ;;  %2864 = vmatpush1.bf16.msra.mxu1 %v4079_v23  ;;  %v4136_v7 = vld [vmem:[#allocation5 + $0x1ec] ss:$16 sps:$4 sm:$0xff]   ;;  %v4138_v8 = vld [vmem:[#allocation5 + $0x1e0] ss:$16 sps:$4 sm:$0xff]   ;;  %v4139_v9 = vld [vmem:[#allocation5 + $0x1e8] ss:$16 sps:$4 sm:$0xff]  }
  0x73   :  { %2578 = vmatprep.subr.bf16.mxu0 %v4080_v24  ;;  %2865 = vmatprep.subr.bf16.mxu1 %v4082_v25  ;;  %v539_v60 = vrot.slane %v517_v58, %v4911_v49  ;;  %v4142_v10 = vld [vmem:[#allocation5 + $0x204] ss:$16 sps:$4 sm:$0xff]   ;;  %v4145_v11 = vld [vmem:[#allocation5 + $0x20c] ss:$16 sps:$4 sm:$0xff]   ;;  %v4140_v12 = vld [vmem:[#allocation5 + $0x200] ss:$16 sps:$4 sm:$0xff]  }
  0x74   :  { %v4143_v14 = vld [vmem:[#allocation5 + $0x208] ss:$16 sps:$4 sm:$0xff]   ;;  %v4148_v15 = vld [vmem:[#allocation5 + $0x224] ss:$16 sps:$4 sm:$0xff]   ;;  %v4151_v16 = vld [vmem:[#allocation5 + $0x22c] ss:$16 sps:$4 sm:$0xff]  }
  0x75   :  { %2598 = vmatprep.mubr.bf16.mxu0 %v539_v60  ;;  %2885 = vmatprep.mubr.bf16.mxu1 %v539_v60  ;;  %v549_v17 = vcombine.high %v539_v60, %v539_v60  ;;  %v4146_v18 = vld [vmem:[#allocation5 + $0x220] ss:$16 sps:$4 sm:$0xff]   ;;  %v4149_v19 = vld [vmem:[#allocation5 + $0x228] ss:$16 sps:$4 sm:$0xff]   ;;  %v4154_v20 = vld [vmem:[#allocation5 + $0x244] ss:$16 sps:$4 sm:$0xff]  }
  0x76   :  { %2579 = vmatpush1.bf16.msra.mxu0 %v4084_v26  ;;  %2866 = vmatpush1.bf16.msra.mxu1 %v4085_v27  ;;  %v4157_v21 = vld [vmem:[#allocation5 + $0x24c] ss:$16 sps:$4 sm:$0xff]   ;;  %v4152_v22 = vld [vmem:[#allocation5 + $0x240] ss:$16 sps:$4 sm:$0xff]   ;;  %v4155_v23 = vld [vmem:[#allocation5 + $0x248] ss:$16 sps:$4 sm:$0xff]  }
  0x77   :  { %2580 = vmatprep.subr.bf16.mxu0 %v4086_v28  ;;  %2867 = vmatprep.subr.bf16.mxu1 %v4088_v29  ;;  %v4160_v24 = vld [vmem:[#allocation5 + $0x264] ss:$16 sps:$4 sm:$0xff]   ;;  %v4163_v25 = vld [vmem:[#allocation5 + $0x26c] ss:$16 sps:$4 sm:$0xff]   ;;  %v4158_v26 = vld [vmem:[#allocation5 + $0x260] ss:$16 sps:$4 sm:$0xff]  }
  0x78   :  { %v4161_v27 = vld [vmem:[#allocation5 + $0x268] ss:$16 sps:$4 sm:$0xff]   ;;  %v4166_v28 = vld [vmem:[#allocation5 + $0x284] ss:$16 sps:$4 sm:$0xff]   ;;  %v4169_v29 = vld [vmem:[#allocation5 + $0x28c] ss:$16 sps:$4 sm:$0xff]  }
  0x79   :  { %v4178_v36 = vld [vmem:[#allocation5 + $0x2c4] ss:$16 sps:$4 sm:$0xff]   ;;  %v4181_v37 = vld [vmem:[#allocation5 + $0x2cc] ss:$16 sps:$4 sm:$0xff]   ;;  %v4176_v38 = vld [vmem:[#allocation5 + $0x2c0] ss:$16 sps:$4 sm:$0xff]  }
  0x7a   :  { %2581 = vmatpush1.bf16.msra.mxu0 %v4090_v30  ;;  %2868 = vmatpush1.bf16.msra.mxu1 %v4091_v31  ;;  %v4164_v30 = vld [vmem:[#allocation5 + $0x280] ss:$16 sps:$4 sm:$0xff]   ;;  %v4167_v31 = vld [vmem:[#allocation5 + $0x288] ss:$16 sps:$4 sm:$0xff]   ;;  %v4211_v60 = vld [vmem:[#allocation5 + $0x36c] ss:$16 sps:$4 sm:$0xff]  }
  0x7b   :  { %2582 = vmatprep.subr.bf16.mxu0 %v4092_v32  ;;  %2869 = vmatprep.subr.bf16.mxu1 %v4094_v33  ;;  %v4172_v32 = vld [vmem:[#allocation5 + $0x2a4] ss:$16 sps:$4 sm:$0xff]   ;;  %v4175_v33 = vld [vmem:[#allocation5 + $0x2ac] ss:$16 sps:$4 sm:$0xff]   ;;  %v4182_v43 = vld [vmem:[#allocation5 + $0x2e0] ss:$16 sps:$4 sm:$0xff]  }
  0x7c   :  { %v4197_v54 = vld [vmem:[#allocation5 + $0x328] ss:$16 sps:$4 sm:$0xff]   ;;  %s3498_s29 = sshll.u32 %s4817_s4, 4  ;;  %s3499_s29 = int_to_ptr.vmem [resolvable:$true] %s3498_s29 }
  0x7d   :  { %v4203_v58 = vld [vmem:[#allocation5 + $0x348] ss:$16 sps:$4 sm:$0xff]   ;;  %s4776_s30 = scalar_lea.vmem %s3499_s29, 32  ;;  %p4781_p13 = scmp.lt.s32.totalorder %s3499_s29, %s3499_s29 }
  0x7e   :  { %2583 = vmatpush1.bf16.msra.mxu0 %v4096_v34  ;;  %2870 = vmatpush1.bf16.msra.mxu1 %v4097_v35  ;;  %v4170_v34 = vld [vmem:[#allocation5 + $0x2a0] ss:$16 sps:$4 sm:$0xff]   ;;  %v4173_v35 = vld [vmem:[#allocation5 + $0x2a8] ss:$16 sps:$4 sm:$0xff]   ;;  %p4777_p12 = scmp.ne.s32.totalorder %s3499_s29, %s4776_s30  ;;  %p4782_p0 = scmp.lt.s32.totalorder %s4776_s30, %s4776_s30 }
  0x7f   :  { %2584 = vmatprep.subr.bf16.mxu0 %v4098_v39  ;;  %2871 = vmatprep.subr.bf16.mxu1 %v4100_v40  ;;  %v4179_v39 = vld [vmem:[#allocation5 + $0x2c8] ss:$16 sps:$4 sm:$0xff]   ;;  %v4184_v40 = vld [vmem:[#allocation5 + $0x2e4] ss:$16 sps:$4 sm:$0xff]  }
  0x80   :  { %p4783_p1 = por %p4782_p0, %p4781_p13 }
  0x82   :  { %2585 = vmatpush1.bf16.msra.mxu0 %v4102_v41  ;;  %2872 = vmatpush1.bf16.msra.mxu1 %v4103_v44  ;;  %v4187_v41 = vld [vmem:[#allocation5 + $0x2ec] ss:$16 sps:$4 sm:$0xff]   ;;  %v4185_v44 = vld [vmem:[#allocation5 + $0x2e8] ss:$16 sps:$4 sm:$0xff]   ;;  %p4784_p2 = pnand %p4783_p1, %p4777_p12 }
  0x83   :  { %2586 = vmatprep.subr.bf16.mxu0 %v4104_v45  ;;  %2873 = vmatprep.subr.bf16.mxu1 %v4106_v46  ;;  %v4190_v45 = vld [vmem:[#allocation5 + $0x304] ss:$16 sps:$4 sm:$0xff]   ;;  %v4193_v46 = vld [vmem:[#allocation5 + $0x30c] ss:$16 sps:$4 sm:$0xff]  }
  0x86   :  { %2587 = vmatpush1.bf16.msra.mxu0 %v4108_v47  ;;  %2874 = vmatpush1.bf16.msra.mxu1 %v4109_v48  ;;  %v4188_v47 = vld [vmem:[#allocation5 + $0x300] ss:$16 sps:$4 sm:$0xff]   ;;  %v4191_v48 = vld [vmem:[#allocation5 + $0x308] ss:$16 sps:$4 sm:$0xff]  }
  0x87   :  { %2588 = vmatprep.subr.bf16.mxu0 %v4110_v50  ;;  %2875 = vmatprep.subr.bf16.mxu1 %v4112_v51  ;;  %v4196_v50 = vld [vmem:[#allocation5 + $0x324] ss:$16 sps:$4 sm:$0xff]   ;;  %v4199_v51 = vld [vmem:[#allocation5 + $0x32c] ss:$16 sps:$4 sm:$0xff]  }
  0x8a   :  { %2589 = vmatpush1.bf16.msra.mxu0 %v4114_v53  ;;  %2876 = vmatpush1.bf16.msra.mxu1 %v4115_v55  ;;  %v4194_v53 = vld [vmem:[#allocation5 + $0x320] ss:$16 sps:$4 sm:$0xff]   ;;  %v4202_v55 = vld [vmem:[#allocation5 + $0x344] ss:$16 sps:$4 sm:$0xff]  }
  0x8b   :  { %2590 = vmatprep.subr.bf16.mxu0 %v4116_v56  ;;  %2877 = vmatprep.subr.bf16.mxu1 %v4118_v57  ;;  %v4205_v56 = vld [vmem:[#allocation5 + $0x34c] ss:$16 sps:$4 sm:$0xff]   ;;  %v4200_v57 = vld [vmem:[#allocation5 + $0x340] ss:$16 sps:$4 sm:$0xff]  }
  0x8e   :  { %2591 = vmatpush1.bf16.msra.mxu0 %v4120_v59  ;;  %2878 = vmatpush1.bf16.msra.mxu1 %v4121_v61  ;;  %v4208_v59 = vld [vmem:[#allocation5 + $0x364] ss:$16 sps:$4 sm:$0xff]   ;;  %v4206_v61 = vld [vmem:[#allocation5 + $0x360] ss:$16 sps:$4 sm:$0xff]  }
  0x8f   :  { %2592 = vmatprep.subr.bf16.mxu0 %v4122_v62  ;;  %2879 = vmatprep.subr.bf16.mxu1 %v4124_v63  ;;  %v4209_v62 = vld [vmem:[#allocation5 + $0x368] ss:$16 sps:$4 sm:$0xff]   ;;  %v4214_v63 = vld [vmem:[#allocation5 + $0x384] ss:$16 sps:$4 sm:$0xff]  }
  0x92   :  { %2593 = vmatpush1.bf16.msra.mxu0 %v4126_v0  ;;  %2880 = vmatpush1.bf16.msra.mxu1 %v4127_v1  ;;  %v4217_v0 = vld [vmem:[#allocation5 + $0x38c] ss:$16 sps:$4 sm:$0xff]   ;;  %v4212_v1 = vld [vmem:[#allocation5 + $0x380] ss:$16 sps:$4 sm:$0xff]  }
  0x93   :  { %2594 = vmatprep.subr.bf16.mxu0 %v4128_v2  ;;  %2881 = vmatprep.subr.bf16.mxu1 %v4130_v3  ;;  %v4215_v2 = vld [vmem:[#allocation5 + $0x388] ss:$16 sps:$4 sm:$0xff]   ;;  %v4220_v3 = vld [vmem:[#allocation5 + $0x3a4] ss:$16 sps:$4 sm:$0xff]  }
  0x96   :  { %2595 = vmatpush1.bf16.msra.mxu0 %v4132_v4  ;;  %2882 = vmatpush1.bf16.msra.mxu1 %v4133_v5  ;;  %v4223_v4 = vld [vmem:[#allocation5 + $0x3ac] ss:$16 sps:$4 sm:$0xff]   ;;  %v4218_v5 = vld [vmem:[#allocation5 + $0x3a0] ss:$16 sps:$4 sm:$0xff]  }
  0x97   :  { %2596 = vmatprep.subr.bf16.mxu0 %v4134_v6  ;;  %2883 = vmatprep.subr.bf16.mxu1 %v4136_v7  ;;  %v4221_v6 = vld [vmem:[#allocation5 + $0x3a8] ss:$16 sps:$4 sm:$0xff]   ;;  %v4226_v7 = vld [vmem:[#allocation5 + $0x3c4] ss:$16 sps:$4 sm:$0xff]  }
  0x9a   :  { %2597 = vmatpush1.bf16.msra.mxu0 %v4138_v8  ;;  %2884 = vmatpush1.bf16.msra.mxu1 %v4139_v9  ;;  %v4229_v8 = vld [vmem:[#allocation5 + $0x3cc] ss:$16 sps:$4 sm:$0xff]   ;;  %v502_v9 = vcombine.high %v4913_v52, %v4913_v52 }
  0x9b   :  { %2607 = vmatprep.subr.bf16.mxu0 %v4142_v10  ;;  %2894 = vmatprep.subr.bf16.mxu1 %v4145_v11  ;;  %v4224_v10 = vld [vmem:[#allocation5 + $0x3c0] ss:$16 sps:$4 sm:$0xff]   ;;  %v4227_v11 = vld [vmem:[#allocation5 + $0x3c8] ss:$16 sps:$4 sm:$0xff]  }
  0x9d   :  { %2599 = vmatmul.mubr.bf16.vlgmr.msra.gmra.mrb[0].mxu0 %v4919_v13  ;;  %2886 = vmatmul.mubr.bf16.vlgmr.msra.gmra.mrb[0].mxu1 %v4919_v13 }
  0x9e   :  { %2608 = vmatpush1.bf16.msra.mxu0 %v4140_v12  ;;  %2895 = vmatpush1.bf16.msra.mxu1 %v4143_v14  ;;  %v4232_v12 = vld [vmem:[#allocation5 + $0x3e4] ss:$16 sps:$4 sm:$0xff]   ;;  %v4235_v14 = vld [vmem:[#allocation5 + $0x3ec] ss:$16 sps:$4 sm:$0xff]  }
  0x9f   :  { %2609 = vmatprep.subr.bf16.mxu0 %v4148_v15  ;;  %2896 = vmatprep.subr.bf16.mxu1 %v4151_v16  ;;  %v4926_v15 = vrot.slane %v502_v9, %v4911_v49  ;;  %v4230_v16 = vld [vmem:[#allocation5 + $0x3e0] ss:$16 sps:$4 sm:$0xff]   ;;  %v4311_v9 = vld [vmem:[#allocation5 + $0x588] ss:$16 sps:$4 sm:$0xff]  }
  0xa0   :  { %2639 = vmatprep.mubr.bf16.mxu0 %v549_v17  ;;  %2926 = vmatprep.mubr.bf16.mxu1 %v549_v17  ;;  %v4233_v17 = vld [vmem:[#allocation5 + $0x3e8] ss:$16 sps:$4 sm:$0xff]  }
  0xa1   :  { %v518_v52 = vcombine.high %v4926_v15, %v4926_v15 }
  0xa2   :  { %2610 = vmatpush1.bf16.msra.mxu0 %v4146_v18  ;;  %2897 = vmatpush1.bf16.msra.mxu1 %v4149_v19  ;;  %v4238_v18 = vld [vmem:[#allocation5 + $0x404] ss:$16 sps:$4 sm:$0xff]   ;;  %v4241_v19 = vld [vmem:[#allocation5 + $0x40c] ss:$16 sps:$4 sm:$0xff]  }
  0xa3   :  { %2611 = vmatprep.subr.bf16.mxu0 %v4154_v20  ;;  %2898 = vmatprep.subr.bf16.mxu1 %v4157_v21  ;;  %v4236_v20 = vld [vmem:[#allocation5 + $0x400] ss:$16 sps:$4 sm:$0xff]   ;;  %v547_v21 = vcombine.high %v4919_v13, %v4919_v13  ;;  %v4253_v13 = vld [vmem:[#allocation5 + $0x44c] ss:$16 sps:$4 sm:$0xff]  }
  0xa6   :  { %2612 = vmatpush1.bf16.msra.mxu0 %v4152_v22  ;;  %2899 = vmatpush1.bf16.msra.mxu1 %v4155_v23  ;;  %v4239_v22 = vld [vmem:[#allocation5 + $0x408] ss:$16 sps:$4 sm:$0xff]   ;;  %v4244_v23 = vld [vmem:[#allocation5 + $0x424] ss:$16 sps:$4 sm:$0xff]  }
  0xa7   :  { %2613 = vmatprep.subr.bf16.mxu0 %v4160_v24  ;;  %2900 = vmatprep.subr.bf16.mxu1 %v4163_v25  ;;  %v4247_v24 = vld [vmem:[#allocation5 + $0x42c] ss:$16 sps:$4 sm:$0xff]   ;;  %v4933_v25 = vrot.slane %v518_v52, %v4911_v49  ;;  %v4328_v52 = vld [vmem:[#allocation5 + $0x5e4] ss:$16 sps:$4 sm:$0xff]  }
  0xaa   :  { %2614 = vmatpush1.bf16.msra.mxu0 %v4158_v26  ;;  %2901 = vmatpush1.bf16.msra.mxu1 %v4161_v27  ;;  %v4242_v26 = vld [vmem:[#allocation5 + $0x420] ss:$16 sps:$4 sm:$0xff]   ;;  %v4245_v27 = vld [vmem:[#allocation5 + $0x428] ss:$16 sps:$4 sm:$0xff]  }
  0xab   :  { %2615 = vmatprep.subr.bf16.mxu0 %v4166_v28  ;;  %2902 = vmatprep.subr.bf16.mxu1 %v4169_v29  ;;  %v4250_v28 = vld [vmem:[#allocation5 + $0x444] ss:$16 sps:$4 sm:$0xff]   ;;  %v4248_v29 = vld [vmem:[#allocation5 + $0x440] ss:$16 sps:$4 sm:$0xff]  }
  0xae   :  { %2616 = vmatpush1.bf16.msra.mxu0 %v4164_v30  ;;  %2903 = vmatpush1.bf16.msra.mxu1 %v4167_v31  ;;  %v4251_v30 = vld [vmem:[#allocation5 + $0x448] ss:$16 sps:$4 sm:$0xff]   ;;  %v4256_v31 = vld [vmem:[#allocation5 + $0x464] ss:$16 sps:$4 sm:$0xff]  }
  0xaf   :  { %2617 = vmatprep.subr.bf16.mxu0 %v4172_v32  ;;  %2904 = vmatprep.subr.bf16.mxu1 %v4175_v33  ;;  %v4259_v32 = vld [vmem:[#allocation5 + $0x46c] ss:$16 sps:$4 sm:$0xff]   ;;  %v4254_v33 = vld [vmem:[#allocation5 + $0x460] ss:$16 sps:$4 sm:$0xff]  }
  0xb2   :  { %2618 = vmatpush1.bf16.msra.mxu0 %v4170_v34  ;;  %2905 = vmatpush1.bf16.msra.mxu1 %v4173_v35  ;;  %v4257_v34 = vld [vmem:[#allocation5 + $0x468] ss:$16 sps:$4 sm:$0xff]   ;;  %v4262_v35 = vld [vmem:[#allocation5 + $0x484] ss:$16 sps:$4 sm:$0xff]  }
  0xb3   :  { %2619 = vmatprep.subr.bf16.mxu0 %v4178_v36  ;;  %2906 = vmatprep.subr.bf16.mxu1 %v4181_v37  ;;  %v4265_v36 = vld [vmem:[#allocation5 + $0x48c] ss:$16 sps:$4 sm:$0xff]   ;;  %v4260_v37 = vld [vmem:[#allocation5 + $0x480] ss:$16 sps:$4 sm:$0xff]  }
  0xb6   :  { %2620 = vmatpush1.bf16.msra.mxu0 %v4176_v38  ;;  %2907 = vmatpush1.bf16.msra.mxu1 %v4179_v39  ;;  %v4263_v38 = vld [vmem:[#allocation5 + $0x488] ss:$16 sps:$4 sm:$0xff]   ;;  %v4268_v39 = vld [vmem:[#allocation5 + $0x4a4] ss:$16 sps:$4 sm:$0xff]  }
  0xb7   :  { %2621 = vmatprep.subr.bf16.mxu0 %v4184_v40  ;;  %2908 = vmatprep.subr.bf16.mxu1 %v4187_v41  ;;  %v4271_v40 = vld [vmem:[#allocation5 + $0x4ac] ss:$16 sps:$4 sm:$0xff]   ;;  %v4266_v41 = vld [vmem:[#allocation5 + $0x4a0] ss:$16 sps:$4 sm:$0xff]  }
  0xba   :  { %2622 = vmatpush1.bf16.msra.mxu0 %v4182_v43  ;;  %2909 = vmatpush1.bf16.msra.mxu1 %v4185_v44  ;;  %v4269_v43 = vld [vmem:[#allocation5 + $0x4a8] ss:$16 sps:$4 sm:$0xff]   ;;  %v4274_v44 = vld [vmem:[#allocation5 + $0x4c4] ss:$16 sps:$4 sm:$0xff]  }
  0xbb   :  { %2623 = vmatprep.subr.bf16.mxu0 %v4190_v45  ;;  %2910 = vmatprep.subr.bf16.mxu1 %v4193_v46  ;;  %v4277_v45 = vld [vmem:[#allocation5 + $0x4cc] ss:$16 sps:$4 sm:$0xff]   ;;  %v4272_v46 = vld [vmem:[#allocation5 + $0x4c0] ss:$16 sps:$4 sm:$0xff]  }
  0xbe   :  { %2624 = vmatpush1.bf16.msra.mxu0 %v4188_v47  ;;  %2911 = vmatpush1.bf16.msra.mxu1 %v4191_v48  ;;  %v4275_v47 = vld [vmem:[#allocation5 + $0x4c8] ss:$16 sps:$4 sm:$0xff]   ;;  %v4280_v48 = vld [vmem:[#allocation5 + $0x4e4] ss:$16 sps:$4 sm:$0xff]  }
  0xbf   :  { %2625 = vmatprep.subr.bf16.mxu0 %v4196_v50  ;;  %2912 = vmatprep.subr.bf16.mxu1 %v4199_v51  ;;  %v4283_v50 = vld [vmem:[#allocation5 + $0x4ec] ss:$16 sps:$4 sm:$0xff]   ;;  %v4278_v51 = vld [vmem:[#allocation5 + $0x4e0] ss:$16 sps:$4 sm:$0xff]  }
  0xc2   :  { %2626 = vmatpush1.bf16.msra.mxu0 %v4194_v53  ;;  %2913 = vmatpush1.bf16.msra.mxu1 %v4197_v54  ;;  %v4281_v53 = vld [vmem:[#allocation5 + $0x4e8] ss:$16 sps:$4 sm:$0xff]   ;;  %v4286_v54 = vld [vmem:[#allocation5 + $0x504] ss:$16 sps:$4 sm:$0xff]  }
  0xc3   :  { %2627 = vmatprep.subr.bf16.mxu0 %v4202_v55  ;;  %2914 = vmatprep.subr.bf16.mxu1 %v4205_v56  ;;  %v4289_v55 = vld [vmem:[#allocation5 + $0x50c] ss:$16 sps:$4 sm:$0xff]   ;;  %v4284_v56 = vld [vmem:[#allocation5 + $0x500] ss:$16 sps:$4 sm:$0xff]  }
  0xc6   :  { %2628 = vmatpush1.bf16.msra.mxu0 %v4200_v57  ;;  %2915 = vmatpush1.bf16.msra.mxu1 %v4203_v58  ;;  %v4287_v57 = vld [vmem:[#allocation5 + $0x508] ss:$16 sps:$4 sm:$0xff]   ;;  %v4292_v58 = vld [vmem:[#allocation5 + $0x524] ss:$16 sps:$4 sm:$0xff]  }
  0xc7   :  { %2629 = vmatprep.subr.bf16.mxu0 %v4208_v59  ;;  %2916 = vmatprep.subr.bf16.mxu1 %v4211_v60  ;;  %v4295_v59 = vld [vmem:[#allocation5 + $0x52c] ss:$16 sps:$4 sm:$0xff]   ;;  %v4290_v60 = vld [vmem:[#allocation5 + $0x520] ss:$16 sps:$4 sm:$0xff]  }
  0xca   :  { %2630 = vmatpush1.bf16.msra.mxu0 %v4206_v61  ;;  %2917 = vmatpush1.bf16.msra.mxu1 %v4209_v62  ;;  %v4293_v61 = vld [vmem:[#allocation5 + $0x528] ss:$16 sps:$4 sm:$0xff]   ;;  %v4298_v62 = vld [vmem:[#allocation5 + $0x544] ss:$16 sps:$4 sm:$0xff]  }
  0xcb   :  { %2631 = vmatprep.subr.bf16.mxu0 %v4214_v63  ;;  %2918 = vmatprep.subr.bf16.mxu1 %v4217_v0  ;;  %v4301_v63 = vld [vmem:[#allocation5 + $0x54c] ss:$16 sps:$4 sm:$0xff]   ;;  %v4296_v0 = vld [vmem:[#allocation5 + $0x540] ss:$16 sps:$4 sm:$0xff]  }
  0xce   :  { %2632 = vmatpush1.bf16.msra.mxu0 %v4212_v1  ;;  %2919 = vmatpush1.bf16.msra.mxu1 %v4215_v2  ;;  %v4299_v1 = vld [vmem:[#allocation5 + $0x548] ss:$16 sps:$4 sm:$0xff]   ;;  %v4304_v2 = vld [vmem:[#allocation5 + $0x564] ss:$16 sps:$4 sm:$0xff]  }
  0xcf   :  { %2633 = vmatprep.subr.bf16.mxu0 %v4220_v3  ;;  %2920 = vmatprep.subr.bf16.mxu1 %v4223_v4  ;;  %v4307_v3 = vld [vmem:[#allocation5 + $0x56c] ss:$16 sps:$4 sm:$0xff]   ;;  %v4302_v4 = vld [vmem:[#allocation5 + $0x560] ss:$16 sps:$4 sm:$0xff]  }
  0xd2   :  { %2634 = vmatpush1.bf16.msra.mxu0 %v4218_v5  ;;  %2921 = vmatpush1.bf16.msra.mxu1 %v4221_v6  ;;  %v4305_v5 = vld [vmem:[#allocation5 + $0x568] ss:$16 sps:$4 sm:$0xff]   ;;  %v4310_v6 = vld [vmem:[#allocation5 + $0x584] ss:$16 sps:$4 sm:$0xff]  }
  0xd3   :  { %2635 = vmatprep.subr.bf16.mxu0 %v4226_v7  ;;  %2922 = vmatprep.subr.bf16.mxu1 %v4229_v8  ;;  %v4313_v7 = vld [vmem:[#allocation5 + $0x58c] ss:$16 sps:$4 sm:$0xff]   ;;  %v4308_v8 = vld [vmem:[#allocation5 + $0x580] ss:$16 sps:$4 sm:$0xff]  }
  0xd6   :  { %2636 = vmatpush1.bf16.msra.mxu0 %v4224_v10  ;;  %2923 = vmatpush1.bf16.msra.mxu1 %v4227_v11  ;;  %v4316_v10 = vld [vmem:[#allocation5 + $0x5a4] ss:$16 sps:$4 sm:$0xff]   ;;  %v4319_v11 = vld [vmem:[#allocation5 + $0x5ac] ss:$16 sps:$4 sm:$0xff]  }
  0xd7   :  { %2637 = vmatprep.subr.bf16.mxu0 %v4232_v12  ;;  %2924 = vmatprep.subr.bf16.mxu1 %v4235_v14  ;;  %v4314_v12 = vld [vmem:[#allocation5 + $0x5a0] ss:$16 sps:$4 sm:$0xff]   ;;  %v4317_v14 = vld [vmem:[#allocation5 + $0x5a8] ss:$16 sps:$4 sm:$0xff]  }
  0xda   :  { %2638 = vmatpush1.bf16.msra.mxu0 %v4230_v16  ;;  %2925 = vmatpush1.bf16.msra.mxu1 %v4233_v17  ;;  %v4322_v16 = vld [vmem:[#allocation5 + $0x5c4] ss:$16 sps:$4 sm:$0xff]   ;;  %v4325_v17 = vld [vmem:[#allocation5 + $0x5cc] ss:$16 sps:$4 sm:$0xff]  }
  0xdb   :  { %2648 = vmatprep.subr.bf16.mxu0 %v4238_v18  ;;  %2935 = vmatprep.subr.bf16.mxu1 %v4241_v19  ;;  %v4320_v18 = vld [vmem:[#allocation5 + $0x5c0] ss:$16 sps:$4 sm:$0xff]   ;;  %v4323_v19 = vld [vmem:[#allocation5 + $0x5c8] ss:$16 sps:$4 sm:$0xff]  }
  0xdd   :  { %2640 = vmatmul.mubr.bf16.vlgmr.msra.gmra.mrb[0].mxu0 %v547_v21  ;;  %2927 = vmatmul.mubr.bf16.vlgmr.msra.gmra.mrb[0].mxu1 %v547_v21  ;;  %v4326_v21 = vld [vmem:[#allocation5 + $0x5e0] ss:$16 sps:$4 sm:$0xff]  }
  0xde   :  { %2649 = vmatpush1.bf16.msra.mxu0 %v4236_v20  ;;  %2936 = vmatpush1.bf16.msra.mxu1 %v4239_v22  ;;  %v4331_v20 = vld [vmem:[#allocation5 + $0x5ec] ss:$16 sps:$4 sm:$0xff]   ;;  %v4329_v22 = vld [vmem:[#allocation5 + $0x5e8] ss:$16 sps:$4 sm:$0xff]  }
  0xdf   :  { %2650 = vmatprep.subr.bf16.mxu0 %v4244_v23  ;;  %2937 = vmatprep.subr.bf16.mxu1 %v4247_v24  ;;  %v4335_v23 = vld [vmem:[#allocation5 + $0x604] ss:$16 sps:$4 sm:$0xff]   ;;  %v4338_v24 = vld [vmem:[#allocation5 + $0x60c] ss:$16 sps:$4 sm:$0xff]  }
  0xe0   :  { %2680 = vmatprep.mubr.bf16.mxu0 %v4933_v25  ;;  %2967 = vmatprep.mubr.bf16.mxu1 %v4933_v25 }
  0xe2   :  { %2651 = vmatpush1.bf16.msra.mxu0 %v4242_v26  ;;  %2938 = vmatpush1.bf16.msra.mxu1 %v4245_v27  ;;  %v4333_v26 = vld [vmem:[#allocation5 + $0x600] ss:$16 sps:$4 sm:$0xff]   ;;  %v4939_v27 = vrot.slane %v4926_v15, %v4911_v49  ;;  %v4347_v15 = vld [vmem:[#allocation5 + $0x644] ss:$16 sps:$4 sm:$0xff]  }
  0xe3   :  { %2652 = vmatprep.subr.bf16.mxu0 %v4250_v28  ;;  %2939 = vmatprep.subr.bf16.mxu1 %v4253_v13  ;;  %v4336_v28 = vld [vmem:[#allocation5 + $0x608] ss:$16 sps:$4 sm:$0xff]   ;;  %v4341_v13 = vld [vmem:[#allocation5 + $0x624] ss:$16 sps:$4 sm:$0xff]  }
  0xe6   :  { %2653 = vmatpush1.bf16.msra.mxu0 %v4248_v29  ;;  %2940 = vmatpush1.bf16.msra.mxu1 %v4251_v30  ;;  %v4344_v29 = vld [vmem:[#allocation5 + $0x62c] ss:$16 sps:$4 sm:$0xff]   ;;  %v550_v30 = vcombine.high %v4933_v25, %v4933_v25  ;;  %v4353_v25 = vld [vmem:[#allocation5 + $0x664] ss:$16 sps:$4 sm:$0xff]  }
  0xe7   :  { %2654 = vmatprep.subr.bf16.mxu0 %v4256_v31  ;;  %2941 = vmatprep.subr.bf16.mxu1 %v4259_v32  ;;  %v4339_v31 = vld [vmem:[#allocation5 + $0x620] ss:$16 sps:$4 sm:$0xff]   ;;  %v4342_v32 = vld [vmem:[#allocation5 + $0x628] ss:$16 sps:$4 sm:$0xff]  }
  0xea   :  { %2655 = vmatpush1.bf16.msra.mxu0 %v4254_v33  ;;  %2942 = vmatpush1.bf16.msra.mxu1 %v4257_v34  ;;  %v4350_v33 = vld [vmem:[#allocation5 + $0x64c] ss:$16 sps:$4 sm:$0xff]   ;;  %v4345_v34 = vld [vmem:[#allocation5 + $0x640] ss:$16 sps:$4 sm:$0xff]  }
  0xeb   :  { %2656 = vmatprep.subr.bf16.mxu0 %v4262_v35  ;;  %2943 = vmatprep.subr.bf16.mxu1 %v4265_v36  ;;  %v4348_v35 = vld [vmem:[#allocation5 + $0x648] ss:$16 sps:$4 sm:$0xff]   ;;  %v4356_v36 = vld [vmem:[#allocation5 + $0x66c] ss:$16 sps:$4 sm:$0xff]  }
  0xee   :  { %2657 = vmatpush1.bf16.msra.mxu0 %v4260_v37  ;;  %2944 = vmatpush1.bf16.msra.mxu1 %v4263_v38  ;;  %v4351_v37 = vld [vmem:[#allocation5 + $0x660] ss:$16 sps:$4 sm:$0xff]   ;;  %v4354_v38 = vld [vmem:[#allocation5 + $0x668] ss:$16 sps:$4 sm:$0xff]  }
  0xef   :  { %2658 = vmatprep.subr.bf16.mxu0 %v4268_v39  ;;  %2945 = vmatprep.subr.bf16.mxu1 %v4271_v40  ;;  %v4359_v39 = vld [vmem:[#allocation5 + $0x684] ss:$16 sps:$4 sm:$0xff]   ;;  %v4362_v40 = vld [vmem:[#allocation5 + $0x68c] ss:$16 sps:$4 sm:$0xff]  }
  0xf2   :  { %2659 = vmatpush1.bf16.msra.mxu0 %v4266_v41  ;;  %2946 = vmatpush1.bf16.msra.mxu1 %v4269_v43  ;;  %v4357_v41 = vld [vmem:[#allocation5 + $0x680] ss:$16 sps:$4 sm:$0xff]   ;;  %v4360_v43 = vld [vmem:[#allocation5 + $0x688] ss:$16 sps:$4 sm:$0xff]  }
  0xf3   :  { %2660 = vmatprep.subr.bf16.mxu0 %v4274_v44  ;;  %2947 = vmatprep.subr.bf16.mxu1 %v4277_v45  ;;  %v4365_v44 = vld [vmem:[#allocation5 + $0x6a4] ss:$16 sps:$4 sm:$0xff]   ;;  %v4368_v45 = vld [vmem:[#allocation5 + $0x6ac] ss:$16 sps:$4 sm:$0xff]  }
  0xf6   :  { %2661 = vmatpush1.bf16.msra.mxu0 %v4272_v46  ;;  %2948 = vmatpush1.bf16.msra.mxu1 %v4275_v47  ;;  %v4363_v46 = vld [vmem:[#allocation5 + $0x6a0] ss:$16 sps:$4 sm:$0xff]   ;;  %v4366_v47 = vld [vmem:[#allocation5 + $0x6a8] ss:$16 sps:$4 sm:$0xff]  }
  0xf7   :  { %2662 = vmatprep.subr.bf16.mxu0 %v4280_v48  ;;  %2949 = vmatprep.subr.bf16.mxu1 %v4283_v50  ;;  %v4371_v48 = vld [vmem:[#allocation5 + $0x6c4] ss:$16 sps:$4 sm:$0xff]   ;;  %v4374_v50 = vld [vmem:[#allocation5 + $0x6cc] ss:$16 sps:$4 sm:$0xff]  }
  0xfa   :  { %2663 = vmatpush1.bf16.msra.mxu0 %v4278_v51  ;;  %2950 = vmatpush1.bf16.msra.mxu1 %v4281_v53  ;;  %v4369_v51 = vld [vmem:[#allocation5 + $0x6c0] ss:$16 sps:$4 sm:$0xff]   ;;  %v4372_v53 = vld [vmem:[#allocation5 + $0x6c8] ss:$16 sps:$4 sm:$0xff]  }
  0xfb   :  { %2664 = vmatprep.subr.bf16.mxu0 %v4286_v54  ;;  %2951 = vmatprep.subr.bf16.mxu1 %v4289_v55  ;;  %v4377_v54 = vld [vmem:[#allocation5 + $0x6e4] ss:$16 sps:$4 sm:$0xff]   ;;  %v4380_v55 = vld [vmem:[#allocation5 + $0x6ec] ss:$16 sps:$4 sm:$0xff]  }
  0xfe   :  { %2665 = vmatpush1.bf16.msra.mxu0 %v4284_v56  ;;  %2952 = vmatpush1.bf16.msra.mxu1 %v4287_v57  ;;  %v4375_v56 = vld [vmem:[#allocation5 + $0x6e0] ss:$16 sps:$4 sm:$0xff]   ;;  %v4378_v57 = vld [vmem:[#allocation5 + $0x6e8] ss:$16 sps:$4 sm:$0xff]  }
  0xff   :  { %2666 = vmatprep.subr.bf16.mxu0 %v4292_v58  ;;  %2953 = vmatprep.subr.bf16.mxu1 %v4295_v59  ;;  %v4383_v58 = vld [vmem:[#allocation5 + $0x704] ss:$16 sps:$4 sm:$0xff]   ;;  %v4386_v59 = vld [vmem:[#allocation5 + $0x70c] ss:$16 sps:$4 sm:$0xff]  }
 0x102   :  { %2667 = vmatpush1.bf16.msra.mxu0 %v4290_v60  ;;  %2954 = vmatpush1.bf16.msra.mxu1 %v4293_v61  ;;  %v4381_v60 = vld [vmem:[#allocation5 + $0x700] ss:$16 sps:$4 sm:$0xff]   ;;  %v4384_v61 = vld [vmem:[#allocation5 + $0x708] ss:$16 sps:$4 sm:$0xff]  }
 0x103   :  { %2668 = vmatprep.subr.bf16.mxu0 %v4298_v62  ;;  %2955 = vmatprep.subr.bf16.mxu1 %v4301_v63  ;;  %v4389_v62 = vld [vmem:[#allocation5 + $0x724] ss:$16 sps:$4 sm:$0xff]   ;;  %v4392_v63 = vld [vmem:[#allocation5 + $0x72c] ss:$16 sps:$4 sm:$0xff]  }
 0x106   :  { %2669 = vmatpush1.bf16.msra.mxu0 %v4296_v0  ;;  %2956 = vmatpush1.bf16.msra.mxu1 %v4299_v1  ;;  %v4387_v0 = vld [vmem:[#allocation5 + $0x720] ss:$16 sps:$4 sm:$0xff]   ;;  %v4390_v1 = vld [vmem:[#allocation5 + $0x728] ss:$16 sps:$4 sm:$0xff]  }
 0x107   :  { %2670 = vmatprep.subr.bf16.mxu0 %v4304_v2  ;;  %2957 = vmatprep.subr.bf16.mxu1 %v4307_v3  ;;  %v4395_v2 = vld [vmem:[#allocation5 + $0x744] ss:$16 sps:$4 sm:$0xff]   ;;  %v4398_v3 = vld [vmem:[#allocation5 + $0x74c] ss:$16 sps:$4 sm:$0xff]  }
 0x10a   :  { %2671 = vmatpush1.bf16.msra.mxu0 %v4302_v4  ;;  %2958 = vmatpush1.bf16.msra.mxu1 %v4305_v5  ;;  %v4393_v4 = vld [vmem:[#allocation5 + $0x740] ss:$16 sps:$4 sm:$0xff]   ;;  %v4396_v5 = vld [vmem:[#allocation5 + $0x748] ss:$16 sps:$4 sm:$0xff]  }
 0x10b   :  { %2672 = vmatprep.subr.bf16.mxu0 %v4310_v6  ;;  %2959 = vmatprep.subr.bf16.mxu1 %v4313_v7  ;;  %v4401_v6 = vld [vmem:[#allocation5 + $0x764] ss:$16 sps:$4 sm:$0xff]   ;;  %v4404_v7 = vld [vmem:[#allocation5 + $0x76c] ss:$16 sps:$4 sm:$0xff]  }
 0x10e   :  { %2673 = vmatpush1.bf16.msra.mxu0 %v4308_v8  ;;  %2960 = vmatpush1.bf16.msra.mxu1 %v4311_v9  ;;  %v4399_v8 = vld [vmem:[#allocation5 + $0x760] ss:$16 sps:$4 sm:$0xff]   ;;  %v4402_v9 = vld [vmem:[#allocation5 + $0x768] ss:$16 sps:$4 sm:$0xff]  }
 0x10f   :  { %2674 = vmatprep.subr.bf16.mxu0 %v4316_v10  ;;  %2961 = vmatprep.subr.bf16.mxu1 %v4319_v11  ;;  %v4407_v10 = vld [vmem:[#allocation5 + $0x784] ss:$16 sps:$4 sm:$0xff]   ;;  %v4410_v11 = vld [vmem:[#allocation5 + $0x78c] ss:$16 sps:$4 sm:$0xff]  }
 0x112   :  { %2675 = vmatpush1.bf16.msra.mxu0 %v4314_v12  ;;  %2962 = vmatpush1.bf16.msra.mxu1 %v4317_v14  ;;  %v4405_v12 = vld [vmem:[#allocation5 + $0x780] ss:$16 sps:$4 sm:$0xff]   ;;  %v4408_v14 = vld [vmem:[#allocation5 + $0x788] ss:$16 sps:$4 sm:$0xff]  }
 0x113   :  { %2676 = vmatprep.subr.bf16.mxu0 %v4322_v16  ;;  %2963 = vmatprep.subr.bf16.mxu1 %v4325_v17  ;;  %v4413_v16 = vld [vmem:[#allocation5 + $0x7a4] ss:$16 sps:$4 sm:$0xff]   ;;  %v4416_v17 = vld [vmem:[#allocation5 + $0x7ac] ss:$16 sps:$4 sm:$0xff]  }
 0x116   :  { %2677 = vmatpush1.bf16.msra.mxu0 %v4320_v18  ;;  %2964 = vmatpush1.bf16.msra.mxu1 %v4323_v19  ;;  %v4411_v18 = vld [vmem:[#allocation5 + $0x7a0] ss:$16 sps:$4 sm:$0xff]   ;;  %v4414_v19 = vld [vmem:[#allocation5 + $0x7a8] ss:$16 sps:$4 sm:$0xff]  }
 0x117   :  { %2678 = vmatprep.subr.bf16.mxu0 %v4328_v52  ;;  %2965 = vmatprep.subr.bf16.mxu1 %v4331_v20  ;;  %v4419_v52 = vld [vmem:[#allocation5 + $0x7c4] ss:$16 sps:$4 sm:$0xff]   ;;  %v4422_v20 = vld [vmem:[#allocation5 + $0x7cc] ss:$16 sps:$4 sm:$0xff]  }
 0x11a   :  { %2679 = vmatpush1.bf16.msra.mxu0 %v4326_v21  ;;  %2966 = vmatpush1.bf16.msra.mxu1 %v4329_v22  ;;  %v4945_v21 = vld [vmem:[#allocation2 + $0x8] sm:$0x1f]  ;;  %v4417_v22 = vld [vmem:[#allocation5 + $0x7c0] ss:$16 sps:$4 sm:$0xff]  }
 0x11b   :  { %2689 = vmatprep.subr.bf16.mxu0 %v4335_v23  ;;  %2976 = vmatprep.subr.bf16.mxu1 %v4338_v24  ;;  %v4420_v23 = vld [vmem:[#allocation5 + $0x7c8] ss:$16 sps:$4 sm:$0xff]   ;;  %v4425_v24 = vld [vmem:[#allocation5 + $0x7e4] ss:$16 sps:$4 sm:$0xff]  }
 0x11d   :  { %2681 = vmatmul.mubr.bf16.vlgmr.msra.gmra.mrb[0].mxu0 %v4939_v27  ;;  %2968 = vmatmul.mubr.bf16.vlgmr.msra.gmra.mrb[0].mxu1 %v4939_v27 }
 0x11e   :  { %2690 = vmatpush1.bf16.msra.mxu0 %v4333_v26  ;;  %2977 = vmatpush1.bf16.msra.mxu1 %v4336_v28  ;;  %v4428_v26 = vld [vmem:[#allocation5 + $0x7ec] ss:$16 sps:$4 sm:$0xff]   ;;  %v4949_v28 = vrot.slane %v4945_v21, %v4911_v49 }
 0x11f   :  { %2691 = vmatprep.subr.bf16.mxu0 %v4341_v13  ;;  %2978 = vmatprep.subr.bf16.mxu1 %v4344_v29  ;;  %v4423_v13 = vld [vmem:[#allocation5 + $0x7e0] ss:$16 sps:$4 sm:$0xff]   ;;  %v4426_v29 = vld [vmem:[#allocation5 + $0x7e8] ss:$16 sps:$4 sm:$0xff]  }
 0x120   :  { %2721 = vmatprep.mubr.bf16.mxu0 %v550_v30  ;;  %3008 = vmatprep.mubr.bf16.mxu1 %v550_v30  ;;  %v4431_v30 = vld [vmem:[#allocation5 + $0x804] ss:$16 sps:$4 sm:$0xff]  }
 0x122   :  { %2692 = vmatpush1.bf16.msra.mxu0 %v4339_v31  ;;  %2979 = vmatpush1.bf16.msra.mxu1 %v4342_v32  ;;  %v4434_v31 = vld [vmem:[#allocation5 + $0x80c] ss:$16 sps:$4 sm:$0xff]   ;;  %v4429_v32 = vld [vmem:[#allocation5 + $0x800] ss:$16 sps:$4 sm:$0xff]  }
 0x123   :  { %2693 = vmatprep.subr.bf16.mxu0 %v4347_v15  ;;  %2980 = vmatprep.subr.bf16.mxu1 %v4350_v33  ;;  %v566_v15 = vcombine.high %v4949_v28, %v4949_v28  ;;  %v4432_v33 = vld [vmem:[#allocation5 + $0x808] ss:$16 sps:$4 sm:$0xff]  }
 0x126   :  { %2694 = vmatpush1.bf16.msra.mxu0 %v4345_v34  ;;  %2981 = vmatpush1.bf16.msra.mxu1 %v4348_v35  ;;  %v548_v34 = vcombine.high %v4939_v27, %v4939_v27  ;;  %v4437_v35 = vld [vmem:[#allocation5 + $0x824] ss:$16 sps:$4 sm:$0xff]   ;;  %v4441_v27 = vld [vmem:[#allocation5 + $0x840] ss:$16 sps:$4 sm:$0xff]  }
 0x127   :  { %2695 = vmatprep.subr.bf16.mxu0 %v4353_v25  ;;  %2982 = vmatprep.subr.bf16.mxu1 %v4356_v36  ;;  %v4440_v25 = vld [vmem:[#allocation5 + $0x82c] ss:$16 sps:$4 sm:$0xff]   ;;  %v4956_v36 = vrot.slane %v566_v15, %v4911_v49  ;;  %v4521_v15 = vld [vmem:[#allocation5 + $0x9e4] ss:$16 sps:$4 sm:$0xff]  }
 0x12a   :  { %2696 = vmatpush1.bf16.msra.mxu0 %v4351_v37  ;;  %2983 = vmatpush1.bf16.msra.mxu1 %v4354_v38  ;;  %v4435_v37 = vld [vmem:[#allocation5 + $0x820] ss:$16 sps:$4 sm:$0xff]   ;;  %v4438_v38 = vld [vmem:[#allocation5 + $0x828] ss:$16 sps:$4 sm:$0xff]  }
 0x12b   :  { %2697 = vmatprep.subr.bf16.mxu0 %v4359_v39  ;;  %2984 = vmatprep.subr.bf16.mxu1 %v4362_v40  ;;  %v4443_v39 = vld [vmem:[#allocation5 + $0x844] ss:$16 sps:$4 sm:$0xff]   ;;  %v4446_v40 = vld [vmem:[#allocation5 + $0x84c] ss:$16 sps:$4 sm:$0xff]  }
 0x12e   :  { %2698 = vmatpush1.bf16.msra.mxu0 %v4357_v41  ;;  %2985 = vmatpush1.bf16.msra.mxu1 %v4360_v43  ;;  %v4444_v41 = vld [vmem:[#allocation5 + $0x848] ss:$16 sps:$4 sm:$0xff]   ;;  %v4449_v43 = vld [vmem:[#allocation5 + $0x864] ss:$16 sps:$4 sm:$0xff]  }
 0x12f   :  { %2699 = vmatprep.subr.bf16.mxu0 %v4365_v44  ;;  %2986 = vmatprep.subr.bf16.mxu1 %v4368_v45  ;;  %v4452_v44 = vld [vmem:[#allocation5 + $0x86c] ss:$16 sps:$4 sm:$0xff]   ;;  %v4447_v45 = vld [vmem:[#allocation5 + $0x860] ss:$16 sps:$4 sm:$0xff]  }
 0x132   :  { %2700 = vmatpush1.bf16.msra.mxu0 %v4363_v46  ;;  %2987 = vmatpush1.bf16.msra.mxu1 %v4366_v47  ;;  %v4450_v46 = vld [vmem:[#allocation5 + $0x868] ss:$16 sps:$4 sm:$0xff]   ;;  %v4455_v47 = vld [vmem:[#allocation5 + $0x884] ss:$16 sps:$4 sm:$0xff]  }
 0x133   :  { %2701 = vmatprep.subr.bf16.mxu0 %v4371_v48  ;;  %2988 = vmatprep.subr.bf16.mxu1 %v4374_v50  ;;  %v4458_v48 = vld [vmem:[#allocation5 + $0x88c] ss:$16 sps:$4 sm:$0xff]   ;;  %v4453_v50 = vld [vmem:[#allocation5 + $0x880] ss:$16 sps:$4 sm:$0xff]  }
 0x136   :  { %2702 = vmatpush1.bf16.msra.mxu0 %v4369_v51  ;;  %2989 = vmatpush1.bf16.msra.mxu1 %v4372_v53  ;;  %v4456_v51 = vld [vmem:[#allocation5 + $0x888] ss:$16 sps:$4 sm:$0xff]   ;;  %v4461_v53 = vld [vmem:[#allocation5 + $0x8a4] ss:$16 sps:$4 sm:$0xff]  }
 0x137   :  { %2703 = vmatprep.subr.bf16.mxu0 %v4377_v54  ;;  %2990 = vmatprep.subr.bf16.mxu1 %v4380_v55  ;;  %v4464_v54 = vld [vmem:[#allocation5 + $0x8ac] ss:$16 sps:$4 sm:$0xff]   ;;  %v4459_v55 = vld [vmem:[#allocation5 + $0x8a0] ss:$16 sps:$4 sm:$0xff]  }
 0x13a   :  { %2704 = vmatpush1.bf16.msra.mxu0 %v4375_v56  ;;  %2991 = vmatpush1.bf16.msra.mxu1 %v4378_v57  ;;  %v4462_v56 = vld [vmem:[#allocation5 + $0x8a8] ss:$16 sps:$4 sm:$0xff]   ;;  %v4467_v57 = vld [vmem:[#allocation5 + $0x8c4] ss:$16 sps:$4 sm:$0xff]  }
 0x13b   :  { %2705 = vmatprep.subr.bf16.mxu0 %v4383_v58  ;;  %2992 = vmatprep.subr.bf16.mxu1 %v4386_v59  ;;  %v4470_v58 = vld [vmem:[#allocation5 + $0x8cc] ss:$16 sps:$4 sm:$0xff]   ;;  %v4465_v59 = vld [vmem:[#allocation5 + $0x8c0] ss:$16 sps:$4 sm:$0xff]  }
 0x13e   :  { %2706 = vmatpush1.bf16.msra.mxu0 %v4381_v60  ;;  %2993 = vmatpush1.bf16.msra.mxu1 %v4384_v61  ;;  %v4468_v60 = vld [vmem:[#allocation5 + $0x8c8] ss:$16 sps:$4 sm:$0xff]   ;;  %v4473_v61 = vld [vmem:[#allocation5 + $0x8e4] ss:$16 sps:$4 sm:$0xff]  }
 0x13f   :  { %2707 = vmatprep.subr.bf16.mxu0 %v4389_v62  ;;  %2994 = vmatprep.subr.bf16.mxu1 %v4392_v63  ;;  %v4476_v62 = vld [vmem:[#allocation5 + $0x8ec] ss:$16 sps:$4 sm:$0xff]   ;;  %v4471_v63 = vld [vmem:[#allocation5 + $0x8e0] ss:$16 sps:$4 sm:$0xff]  }
 0x142   :  { %2708 = vmatpush1.bf16.msra.mxu0 %v4387_v0  ;;  %2995 = vmatpush1.bf16.msra.mxu1 %v4390_v1  ;;  %v4474_v0 = vld [vmem:[#allocation5 + $0x8e8] ss:$16 sps:$4 sm:$0xff]   ;;  %v4479_v1 = vld [vmem:[#allocation5 + $0x904] ss:$16 sps:$4 sm:$0xff]  }
 0x143   :  { %2709 = vmatprep.subr.bf16.mxu0 %v4395_v2  ;;  %2996 = vmatprep.subr.bf16.mxu1 %v4398_v3  ;;  %v4482_v2 = vld [vmem:[#allocation5 + $0x90c] ss:$16 sps:$4 sm:$0xff]   ;;  %v4477_v3 = vld [vmem:[#allocation5 + $0x900] ss:$16 sps:$4 sm:$0xff]  }
 0x146   :  { %2710 = vmatpush1.bf16.msra.mxu0 %v4393_v4  ;;  %2997 = vmatpush1.bf16.msra.mxu1 %v4396_v5  ;;  %v4480_v4 = vld [vmem:[#allocation5 + $0x908] ss:$16 sps:$4 sm:$0xff]   ;;  %v4485_v5 = vld [vmem:[#allocation5 + $0x924] ss:$16 sps:$4 sm:$0xff]  }
 0x147   :  { %2711 = vmatprep.subr.bf16.mxu0 %v4401_v6  ;;  %2998 = vmatprep.subr.bf16.mxu1 %v4404_v7  ;;  %v4488_v6 = vld [vmem:[#allocation5 + $0x92c] ss:$16 sps:$4 sm:$0xff]   ;;  %v4483_v7 = vld [vmem:[#allocation5 + $0x920] ss:$16 sps:$4 sm:$0xff]  }
 0x14a   :  { %2712 = vmatpush1.bf16.msra.mxu0 %v4399_v8  ;;  %2999 = vmatpush1.bf16.msra.mxu1 %v4402_v9  ;;  %v4486_v8 = vld [vmem:[#allocation5 + $0x928] ss:$16 sps:$4 sm:$0xff]   ;;  %v4491_v9 = vld [vmem:[#allocation5 + $0x944] ss:$16 sps:$4 sm:$0xff]  }
 0x14b   :  { %2713 = vmatprep.subr.bf16.mxu0 %v4407_v10  ;;  %3000 = vmatprep.subr.bf16.mxu1 %v4410_v11  ;;  %v4494_v10 = vld [vmem:[#allocation5 + $0x94c] ss:$16 sps:$4 sm:$0xff]   ;;  %v4489_v11 = vld [vmem:[#allocation5 + $0x940] ss:$16 sps:$4 sm:$0xff]  }
 0x14e   :  { %2714 = vmatpush1.bf16.msra.mxu0 %v4405_v12  ;;  %3001 = vmatpush1.bf16.msra.mxu1 %v4408_v14  ;;  %v4492_v12 = vld [vmem:[#allocation5 + $0x948] ss:$16 sps:$4 sm:$0xff]   ;;  %v4497_v14 = vld [vmem:[#allocation5 + $0x964] ss:$16 sps:$4 sm:$0xff]  }
 0x14f   :  { %2715 = vmatprep.subr.bf16.mxu0 %v4413_v16  ;;  %3002 = vmatprep.subr.bf16.mxu1 %v4416_v17  ;;  %v4500_v16 = vld [vmem:[#allocation5 + $0x96c] ss:$16 sps:$4 sm:$0xff]   ;;  %v4495_v17 = vld [vmem:[#allocation5 + $0x960] ss:$16 sps:$4 sm:$0xff]  }
 0x152   :  { %2716 = vmatpush1.bf16.msra.mxu0 %v4411_v18  ;;  %3003 = vmatpush1.bf16.msra.mxu1 %v4414_v19  ;;  %v4498_v18 = vld [vmem:[#allocation5 + $0x968] ss:$16 sps:$4 sm:$0xff]   ;;  %v4503_v19 = vld [vmem:[#allocation5 + $0x984] ss:$16 sps:$4 sm:$0xff]  }
 0x153   :  { %2717 = vmatprep.subr.bf16.mxu0 %v4419_v52  ;;  %3004 = vmatprep.subr.bf16.mxu1 %v4422_v20  ;;  %v4506_v52 = vld [vmem:[#allocation5 + $0x98c] ss:$16 sps:$4 sm:$0xff]   ;;  %v4501_v20 = vld [vmem:[#allocation5 + $0x980] ss:$16 sps:$4 sm:$0xff]  }
 0x156   :  { %2718 = vmatpush1.bf16.msra.mxu0 %v4417_v22  ;;  %3005 = vmatpush1.bf16.msra.mxu1 %v4420_v23  ;;  %v4504_v22 = vld [vmem:[#allocation5 + $0x988] ss:$16 sps:$4 sm:$0xff]   ;;  %v4509_v23 = vld [vmem:[#allocation5 + $0x9a4] ss:$16 sps:$4 sm:$0xff]  }
 0x157   :  { %2719 = vmatprep.subr.bf16.mxu0 %v4425_v24  ;;  %3006 = vmatprep.subr.bf16.mxu1 %v4428_v26  ;;  %v4512_v24 = vld [vmem:[#allocation5 + $0x9ac] ss:$16 sps:$4 sm:$0xff]   ;;  %v4507_v26 = vld [vmem:[#allocation5 + $0x9a0] ss:$16 sps:$4 sm:$0xff]  }
 0x15a   :  { %2720 = vmatpush1.bf16.msra.mxu0 %v4423_v13  ;;  %3007 = vmatpush1.bf16.msra.mxu1 %v4426_v29  ;;  %v4510_v13 = vld [vmem:[#allocation5 + $0x9a8] ss:$16 sps:$4 sm:$0xff]   ;;  %v4515_v29 = vld [vmem:[#allocation5 + $0x9c4] ss:$16 sps:$4 sm:$0xff]  }
 0x15b   :  { %2730 = vmatprep.subr.bf16.mxu0 %v4431_v30  ;;  %3017 = vmatprep.subr.bf16.mxu1 %v4434_v31  ;;  %v4518_v30 = vld [vmem:[#allocation5 + $0x9cc] ss:$16 sps:$4 sm:$0xff]   ;;  %v4513_v31 = vld [vmem:[#allocation5 + $0x9c0] ss:$16 sps:$4 sm:$0xff]  }
 0x15d   :  { %2722 = vmatmul.mubr.bf16.vlgmr.msra.gmra.mrb[0].mxu0 %v548_v34  ;;  %3009 = vmatmul.mubr.bf16.vlgmr.msra.gmra.mrb[0].mxu1 %v548_v34  ;;  %v4519_v34 = vld [vmem:[#allocation5 + $0x9e0] ss:$16 sps:$4 sm:$0xff]  }
 0x15e   :  { %2731 = vmatpush1.bf16.msra.mxu0 %v4429_v32  ;;  %3018 = vmatpush1.bf16.msra.mxu1 %v4432_v33  ;;  %v4516_v32 = vld [vmem:[#allocation5 + $0x9c8] ss:$16 sps:$4 sm:$0xff]   ;;  %v4524_v33 = vld [vmem:[#allocation5 + $0x9ec] ss:$16 sps:$4 sm:$0xff]  }
 0x15f   :  { %2732 = vmatprep.subr.bf16.mxu0 %v4437_v35  ;;  %3019 = vmatprep.subr.bf16.mxu1 %v4440_v25  ;;  %v4522_v35 = vld [vmem:[#allocation5 + $0x9e8] ss:$16 sps:$4 sm:$0xff]   ;;  %v4528_v25 = vld [vmem:[#allocation5 + $0xa04] ss:$16 sps:$4 sm:$0xff]  }
 0x160   :  { %2762 = vmatprep.mubr.bf16.mxu0 %v4956_v36  ;;  %3049 = vmatprep.mubr.bf16.mxu1 %v4956_v36 }
 0x162   :  { %2733 = vmatpush1.bf16.msra.mxu0 %v4435_v37  ;;  %3020 = vmatpush1.bf16.msra.mxu1 %v4438_v38  ;;  %v4531_v37 = vld [vmem:[#allocation5 + $0xa0c] ss:$16 sps:$4 sm:$0xff]   ;;  %v4962_v38 = vrot.slane %v4949_v28, %v4911_v49  ;;  %v4535_v28 = vld [vmem:[#allocation5 + $0xa28] ss:$16 sps:$4 sm:$0xff]  }
 0x163   :  { %2734 = vmatprep.subr.bf16.mxu0 %v4443_v39  ;;  %3021 = vmatprep.subr.bf16.mxu1 %v4446_v40  ;;  %v4526_v39 = vld [vmem:[#allocation5 + $0xa00] ss:$16 sps:$4 sm:$0xff]   ;;  %v4529_v40 = vld [vmem:[#allocation5 + $0xa08] ss:$16 sps:$4 sm:$0xff]  }
 0x166   :  { %2735 = vmatpush1.bf16.msra.mxu0 %v4441_v27  ;;  %3022 = vmatpush1.bf16.msra.mxu1 %v4444_v41  ;;  %v4534_v27 = vld [vmem:[#allocation5 + $0xa24] ss:$16 sps:$4 sm:$0xff]   ;;  %v4537_v41 = vld [vmem:[#allocation5 + $0xa2c] ss:$16 sps:$4 sm:$0xff]  }
 0x167   :  { %2736 = vmatprep.subr.bf16.mxu0 %v4449_v43  ;;  %3023 = vmatprep.subr.bf16.mxu1 %v4452_v44  ;;  %v589_v43 = vcombine.high %v4956_v36, %v4956_v36  ;;  %v4532_v44 = vld [vmem:[#allocation5 + $0xa20] ss:$16 sps:$4 sm:$0xff]   ;;  %v4546_v36 = vld [vmem:[#allocation5 + $0xa64] ss:$16 sps:$4 sm:$0xff]  }
 0x16a   :  { %2737 = vmatpush1.bf16.msra.mxu0 %v4447_v45  ;;  %3024 = vmatpush1.bf16.msra.mxu1 %v4450_v46  ;;  %v4540_v45 = vld [vmem:[#allocation5 + $0xa44] ss:$16 sps:$4 sm:$0xff]   ;;  %v4543_v46 = vld [vmem:[#allocation5 + $0xa4c] ss:$16 sps:$4 sm:$0xff]  }
 0x16b   :  { %2738 = vmatprep.subr.bf16.mxu0 %v4455_v47  ;;  %3025 = vmatprep.subr.bf16.mxu1 %v4458_v48  ;;  %v4538_v47 = vld [vmem:[#allocation5 + $0xa40] ss:$16 sps:$4 sm:$0xff]   ;;  %v4541_v48 = vld [vmem:[#allocation5 + $0xa48] ss:$16 sps:$4 sm:$0xff]  }
 0x16e   :  { %2739 = vmatpush1.bf16.msra.mxu0 %v4453_v50  ;;  %3026 = vmatpush1.bf16.msra.mxu1 %v4456_v51  ;;  %v4549_v50 = vld [vmem:[#allocation5 + $0xa6c] ss:$16 sps:$4 sm:$0xff]   ;;  %v4544_v51 = vld [vmem:[#allocation5 + $0xa60] ss:$16 sps:$4 sm:$0xff]  }
 0x16f   :  { %2740 = vmatprep.subr.bf16.mxu0 %v4461_v53  ;;  %3027 = vmatprep.subr.bf16.mxu1 %v4464_v54  ;;  %v4547_v53 = vld [vmem:[#allocation5 + $0xa68] ss:$16 sps:$4 sm:$0xff]   ;;  %v4552_v54 = vld [vmem:[#allocation5 + $0xa84] ss:$16 sps:$4 sm:$0xff]  }
 0x172   :  { %2741 = vmatpush1.bf16.msra.mxu0 %v4459_v55  ;;  %3028 = vmatpush1.bf16.msra.mxu1 %v4462_v56  ;;  %v4555_v55 = vld [vmem:[#allocation5 + $0xa8c] ss:$16 sps:$4 sm:$0xff]   ;;  %v4550_v56 = vld [vmem:[#allocation5 + $0xa80] ss:$16 sps:$4 sm:$0xff]  }
 0x173   :  { %2742 = vmatprep.subr.bf16.mxu0 %v4467_v57  ;;  %3029 = vmatprep.subr.bf16.mxu1 %v4470_v58  ;;  %v4553_v57 = vld [vmem:[#allocation5 + $0xa88] ss:$16 sps:$4 sm:$0xff]   ;;  %v4558_v58 = vld [vmem:[#allocation5 + $0xaa4] ss:$16 sps:$4 sm:$0xff]  }
 0x176   :  { %2743 = vmatpush1.bf16.msra.mxu0 %v4465_v59  ;;  %3030 = vmatpush1.bf16.msra.mxu1 %v4468_v60  ;;  %v4561_v59 = vld [vmem:[#allocation5 + $0xaac] ss:$16 sps:$4 sm:$0xff]   ;;  %v4556_v60 = vld [vmem:[#allocation5 + $0xaa0] ss:$16 sps:$4 sm:$0xff]  }
 0x177   :  { %2744 = vmatprep.subr.bf16.mxu0 %v4473_v61  ;;  %3031 = vmatprep.subr.bf16.mxu1 %v4476_v62  ;;  %v4559_v61 = vld [vmem:[#allocation5 + $0xaa8] ss:$16 sps:$4 sm:$0xff]   ;;  %v4564_v62 = vld [vmem:[#allocation5 + $0xac4] ss:$16 sps:$4 sm:$0xff]  }
 0x17a   :  { %2745 = vmatpush1.bf16.msra.mxu0 %v4471_v63  ;;  %3032 = vmatpush1.bf16.msra.mxu1 %v4474_v0  ;;  %v4567_v63 = vld [vmem:[#allocation5 + $0xacc] ss:$16 sps:$4 sm:$0xff]   ;;  %v4562_v0 = vld [vmem:[#allocation5 + $0xac0] ss:$16 sps:$4 sm:$0xff]  }
 0x17b   :  { %2746 = vmatprep.subr.bf16.mxu0 %v4479_v1  ;;  %3033 = vmatprep.subr.bf16.mxu1 %v4482_v2  ;;  %v4565_v1 = vld [vmem:[#allocation5 + $0xac8] ss:$16 sps:$4 sm:$0xff]   ;;  %v4570_v2 = vld [vmem:[#allocation5 + $0xae4] ss:$16 sps:$4 sm:$0xff]  }
 0x17e   :  { %2747 = vmatpush1.bf16.msra.mxu0 %v4477_v3  ;;  %3034 = vmatpush1.bf16.msra.mxu1 %v4480_v4  ;;  %v4573_v3 = vld [vmem:[#allocation5 + $0xaec] ss:$16 sps:$4 sm:$0xff]   ;;  %v4568_v4 = vld [vmem:[#allocation5 + $0xae0] ss:$16 sps:$4 sm:$0xff]  }
 0x17f   :  { %2748 = vmatprep.subr.bf16.mxu0 %v4485_v5  ;;  %3035 = vmatprep.subr.bf16.mxu1 %v4488_v6  ;;  %v4571_v5 = vld [vmem:[#allocation5 + $0xae8] ss:$16 sps:$4 sm:$0xff]   ;;  %v4576_v6 = vld [vmem:[#allocation5 + $0xb04] ss:$16 sps:$4 sm:$0xff]  }
 0x182   :  { %2749 = vmatpush1.bf16.msra.mxu0 %v4483_v7  ;;  %3036 = vmatpush1.bf16.msra.mxu1 %v4486_v8  ;;  %v4579_v7 = vld [vmem:[#allocation5 + $0xb0c] ss:$16 sps:$4 sm:$0xff]   ;;  %v4574_v8 = vld [vmem:[#allocation5 + $0xb00] ss:$16 sps:$4 sm:$0xff]  }
 0x183   :  { %2750 = vmatprep.subr.bf16.mxu0 %v4491_v9  ;;  %3037 = vmatprep.subr.bf16.mxu1 %v4494_v10  ;;  %v4577_v9 = vld [vmem:[#allocation5 + $0xb08] ss:$16 sps:$4 sm:$0xff]   ;;  %v4582_v10 = vld [vmem:[#allocation5 + $0xb24] ss:$16 sps:$4 sm:$0xff]  }
 0x186   :  { %2751 = vmatpush1.bf16.msra.mxu0 %v4489_v11  ;;  %3038 = vmatpush1.bf16.msra.mxu1 %v4492_v12  ;;  %v4585_v11 = vld [vmem:[#allocation5 + $0xb2c] ss:$16 sps:$4 sm:$0xff]   ;;  %v4580_v12 = vld [vmem:[#allocation5 + $0xb20] ss:$16 sps:$4 sm:$0xff]  }
 0x187   :  { %2752 = vmatprep.subr.bf16.mxu0 %v4497_v14  ;;  %3039 = vmatprep.subr.bf16.mxu1 %v4500_v16  ;;  %v4583_v14 = vld [vmem:[#allocation5 + $0xb28] ss:$16 sps:$4 sm:$0xff]   ;;  %v4588_v16 = vld [vmem:[#allocation5 + $0xb44] ss:$16 sps:$4 sm:$0xff]  }
 0x18a   :  { %2753 = vmatpush1.bf16.msra.mxu0 %v4495_v17  ;;  %3040 = vmatpush1.bf16.msra.mxu1 %v4498_v18  ;;  %v4591_v17 = vld [vmem:[#allocation5 + $0xb4c] ss:$16 sps:$4 sm:$0xff]   ;;  %v4586_v18 = vld [vmem:[#allocation5 + $0xb40] ss:$16 sps:$4 sm:$0xff]  }
 0x18b   :  { %2754 = vmatprep.subr.bf16.mxu0 %v4503_v19  ;;  %3041 = vmatprep.subr.bf16.mxu1 %v4506_v52  ;;  %v4589_v19 = vld [vmem:[#allocation5 + $0xb48] ss:$16 sps:$4 sm:$0xff]   ;;  %v4594_v52 = vld [vmem:[#allocation5 + $0xb64] ss:$16 sps:$4 sm:$0xff]  }
 0x18e   :  { %2755 = vmatpush1.bf16.msra.mxu0 %v4501_v20  ;;  %3042 = vmatpush1.bf16.msra.mxu1 %v4504_v22  ;;  %v4597_v20 = vld [vmem:[#allocation5 + $0xb6c] ss:$16 sps:$4 sm:$0xff]   ;;  %v4592_v22 = vld [vmem:[#allocation5 + $0xb60] ss:$16 sps:$4 sm:$0xff]  }
 0x18f   :  { %2756 = vmatprep.subr.bf16.mxu0 %v4509_v23  ;;  %3043 = vmatprep.subr.bf16.mxu1 %v4512_v24  ;;  %v4595_v23 = vld [vmem:[#allocation5 + $0xb68] ss:$16 sps:$4 sm:$0xff]   ;;  %v4600_v24 = vld [vmem:[#allocation5 + $0xb84] ss:$16 sps:$4 sm:$0xff]  }
 0x192   :  { %2757 = vmatpush1.bf16.msra.mxu0 %v4507_v26  ;;  %3044 = vmatpush1.bf16.msra.mxu1 %v4510_v13  ;;  %v4603_v26 = vld [vmem:[#allocation5 + $0xb8c] ss:$16 sps:$4 sm:$0xff]   ;;  %v4598_v13 = vld [vmem:[#allocation5 + $0xb80] ss:$16 sps:$4 sm:$0xff]  }
 0x193   :  { %2758 = vmatprep.subr.bf16.mxu0 %v4515_v29  ;;  %3045 = vmatprep.subr.bf16.mxu1 %v4518_v30  ;;  %v4601_v29 = vld [vmem:[#allocation5 + $0xb88] ss:$16 sps:$4 sm:$0xff]   ;;  %v4606_v30 = vld [vmem:[#allocation5 + $0xba4] ss:$16 sps:$4 sm:$0xff]  }
 0x196   :  { %2759 = vmatpush1.bf16.msra.mxu0 %v4513_v31  ;;  %3046 = vmatpush1.bf16.msra.mxu1 %v4516_v32  ;;  %v4609_v31 = vld [vmem:[#allocation5 + $0xbac] ss:$16 sps:$4 sm:$0xff]   ;;  %v4604_v32 = vld [vmem:[#allocation5 + $0xba0] ss:$16 sps:$4 sm:$0xff]  }
 0x197   :  { %2760 = vmatprep.subr.bf16.mxu0 %v4521_v15  ;;  %3047 = vmatprep.subr.bf16.mxu1 %v4524_v33  ;;  %v4607_v15 = vld [vmem:[#allocation5 + $0xba8] ss:$16 sps:$4 sm:$0xff]   ;;  %v4612_v33 = vld [vmem:[#allocation5 + $0xbc4] ss:$16 sps:$4 sm:$0xff]  }
 0x19a   :  { %2761 = vmatpush1.bf16.msra.mxu0 %v4519_v34  ;;  %3048 = vmatpush1.bf16.msra.mxu1 %v4522_v35  ;;  %v4615_v34 = vld [vmem:[#allocation5 + $0xbcc] ss:$16 sps:$4 sm:$0xff]   ;;  %v4610_v35 = vld [vmem:[#allocation5 + $0xbc0] ss:$16 sps:$4 sm:$0xff]  }
 0x19b   :  { %2771 = vmatprep.subr.bf16.mxu0 %v4528_v25  ;;  %3058 = vmatprep.subr.bf16.mxu1 %v4531_v37  ;;  %v4613_v25 = vld [vmem:[#allocation5 + $0xbc8] ss:$16 sps:$4 sm:$0xff]   ;;  %v4618_v37 = vld [vmem:[#allocation5 + $0xbe4] ss:$16 sps:$4 sm:$0xff]  }
 0x19d   :  { %2763 = vmatmul.mubr.bf16.vlgmr.msra.gmra.mrb[0].mxu0 %v4962_v38  ;;  %3050 = vmatmul.mubr.bf16.vlgmr.msra.gmra.mrb[0].mxu1 %v4962_v38 }
 0x19e   :  { %2772 = vmatpush1.bf16.msra.mxu0 %v4526_v39  ;;  %3059 = vmatpush1.bf16.msra.mxu1 %v4529_v40  ;;  %v4621_v39 = vld [vmem:[#allocation5 + $0xbec] ss:$16 sps:$4 sm:$0xff]   ;;  %v4616_v40 = vld [vmem:[#allocation5 + $0xbe0] ss:$16 sps:$4 sm:$0xff]  }
 0x19f   :  { %2773 = vmatprep.subr.bf16.mxu0 %v4534_v27  ;;  %3060 = vmatprep.subr.bf16.mxu1 %v4537_v41  ;;  %v4619_v27 = vld [vmem:[#allocation5 + $0xbe8] ss:$16 sps:$4 sm:$0xff]   ;;  %v4624_v41 = vld [vmem:[#allocation5 + $0xc04] ss:$16 sps:$4 sm:$0xff]  }
 0x1a0   :  { %2803 = vmatprep.mubr.bf16.mxu0 %v589_v43  ;;  %3090 = vmatprep.mubr.bf16.mxu1 %v589_v43  ;;  %v4627_v43 = vld [vmem:[#allocation5 + $0xc0c] ss:$16 sps:$4 sm:$0xff]  }
 0x1a2   :  { %2774 = vmatpush1.bf16.msra.mxu0 %v4532_v44  ;;  %3061 = vmatpush1.bf16.msra.mxu1 %v4535_v28  ;;  %v588_v44 = vcombine.high %v4962_v38, %v4962_v38  ;;  %v4622_v28 = vld [vmem:[#allocation5 + $0xc00] ss:$16 sps:$4 sm:$0xff]   ;;  %v4634_v38 = vld [vmem:[#allocation8 + $0x40] sm:$0xff]  }
 0x1a3   :  { %2775 = vmatprep.subr.bf16.mxu0 %v4540_v45  ;;  %3062 = vmatprep.subr.bf16.mxu1 %v4543_v46  ;;  %v4625_v45 = vld [vmem:[#allocation5 + $0xc08] ss:$16 sps:$4 sm:$0xff]   ;;  %v4630_v46 = vld [vmem:[#allocation5 + $0xc24] ss:$16 sps:$4 sm:$0xff]  }
 0x1a6   :  { %2776 = vmatpush1.bf16.msra.mxu0 %v4538_v47  ;;  %3063 = vmatpush1.bf16.msra.mxu1 %v4541_v48  ;;  %v4633_v47 = vld [vmem:[#allocation5 + $0xc2c] ss:$16 sps:$4 sm:$0xff]   ;;  %v551_v48 = vcombine.high %v4945_v21, %v4945_v21 }
 0x1a7   :  { %2777 = vmatprep.subr.bf16.mxu0 %v4546_v36  ;;  %3064 = vmatprep.subr.bf16.mxu1 %v4549_v50  ;;  %v4628_v36 = vld [vmem:[#allocation5 + $0xc20] ss:$16 sps:$4 sm:$0xff]   ;;  %v4631_v50 = vld [vmem:[#allocation5 + $0xc28] ss:$16 sps:$4 sm:$0xff]  }
 0x1aa   :  { %2778 = vmatpush1.bf16.msra.mxu0 %v4544_v51  ;;  %3065 = vmatpush1.bf16.msra.mxu1 %v4547_v53  ;;  %v4635_v51 = vld [vmem:[#allocation8 + $0xc0] sm:$0xff]   ;;  %v4816_v53 = vmov 0  }
 0x1ab   :  { %2779 = vmatprep.subr.bf16.mxu0 %v4552_v54  ;;  %3066 = vmatprep.subr.bf16.mxu1 %v4555_v55  ;;  %v565_v54 = vrot.slane %v551_v48, %v4911_v49  ;;  %v4636_v55 = vld [vmem:[#allocation8] sm:$0xff]  }
 0x1ad   :  { %v580_v21 = vrot.slane %v565_v54, %v4911_v49  ;;  %v4646_v49 = vld [vmem:[#allocation8 + $0x58] sm:$0xff]  }
 0x1ae   :  { %2780 = vmatpush1.bf16.msra.mxu0 %v4550_v56  ;;  %3067 = vmatpush1.bf16.msra.mxu1 %v4553_v57  ;;  %v4637_v56 = vld [vmem:[#allocation8 + $0x80] sm:$0xff]   ;;  %v4638_v57 = vld [vmem:[#allocation8 + $0x48] sm:$0xff]  }
 0x1af   :  { %2781 = vmatprep.subr.bf16.mxu0 %v4558_v58  ;;  %3068 = vmatprep.subr.bf16.mxu1 %v4561_v59  ;;  %v4639_v58 = vld [vmem:[#allocation8 + $0xc8] sm:$0xff]  }
 0x1b0   :  { %v4640_v59 = vld [vmem:[#allocation8 + $0x8] sm:$0xff]  }
 0x1b2   :  { %2782 = vmatpush1.bf16.msra.mxu0 %v4556_v60  ;;  %3069 = vmatpush1.bf16.msra.mxu1 %v4559_v61  ;;  %v4641_v60 = vld [vmem:[#allocation8 + $0x88] sm:$0xff]   ;;  %v4642_v61 = vld [vmem:[#allocation8 + $0x50] sm:$0xff]  }
 0x1b3   :  { %2783 = vmatprep.subr.bf16.mxu0 %v4564_v62  ;;  %3070 = vmatprep.subr.bf16.mxu1 %v4567_v63  ;;  %v4643_v62 = vld [vmem:[#allocation8 + $0xd0] sm:$0xff]  }
 0x1b4   :  { %v4644_v63 = vld [vmem:[#allocation8 + $0x10] sm:$0xff]  }
 0x1b6   :  { %2784 = vmatpush1.bf16.msra.mxu0 %v4562_v0  ;;  %3071 = vmatpush1.bf16.msra.mxu1 %v4565_v1  ;;  %v4645_v0 = vld [vmem:[#allocation8 + $0x90] sm:$0xff]   ;;  %v4647_v1 = vld [vmem:[#allocation8 + $0xd8] sm:$0xff]  }
 0x1b7   :  { %2785 = vmatprep.subr.bf16.mxu0 %v4570_v2  ;;  %3072 = vmatprep.subr.bf16.mxu1 %v4573_v3  ;;  %v4648_v2 = vld [vmem:[#allocation8 + $0x18] sm:$0xff]  }
 0x1b8   :  { %v4649_v3 = vld [vmem:[#allocation8 + $0x98] sm:$0xff]  }
 0x1ba   :  { %2786 = vmatpush1.bf16.msra.mxu0 %v4568_v4  ;;  %3073 = vmatpush1.bf16.msra.mxu1 %v4571_v5  ;;  %v4650_v4 = vld [vmem:[#allocation8 + $0x60] sm:$0xff]  }
 0x1bb   :  { %2787 = vmatprep.subr.bf16.mxu0 %v4576_v6  ;;  %3074 = vmatprep.subr.bf16.mxu1 %v4579_v7  ;;  %v4651_v5 = vld [vmem:[#allocation8 + $0xe0] sm:$0xff]  }
 0x1bc   :  { %v4652_v6 = vld [vmem:[#allocation8 + $0x20] sm:$0xff]  }
 0x1bd   :  { %v4653_v7 = vld [vmem:[#allocation8 + $0xa0] sm:$0xff]  }
 0x1be   :  { %2788 = vmatpush1.bf16.msra.mxu0 %v4574_v8  ;;  %3075 = vmatpush1.bf16.msra.mxu1 %v4577_v9  ;;  %v4654_v8 = vld [vmem:[#allocation8 + $0x68] sm:$0xff]  }
 0x1bf   :  { %2789 = vmatprep.subr.bf16.mxu0 %v4582_v10  ;;  %3076 = vmatprep.subr.bf16.mxu1 %v4585_v11  ;;  %v4655_v9 = vld [vmem:[#allocation8 + $0xe8] sm:$0xff]  }
 0x1c0   :  { %v4656_v10 = vld [vmem:[#allocation8 + $0x28] sm:$0xff]  }
 0x1c1   :  { %v4657_v11 = vld [vmem:[#allocation8 + $0xa8] sm:$0xff]  }
 0x1c2   :  { %2790 = vmatpush1.bf16.msra.mxu0 %v4580_v12  ;;  %3077 = vmatpush1.bf16.msra.mxu1 %v4583_v14  ;;  %v4658_v12 = vld [vmem:[#allocation8 + $0x70] sm:$0xff]  }
 0x1c3   :  { %2791 = vmatprep.subr.bf16.mxu0 %v4588_v16  ;;  %3078 = vmatprep.subr.bf16.mxu1 %v4591_v17  ;;  %v4659_v14 = vld [vmem:[#allocation8 + $0xf0] sm:$0xff]  }
 0x1c4   :  { %v4660_v16 = vld [vmem:[#allocation8 + $0x30] sm:$0xff]  }
 0x1c5   :  { %v4661_v17 = vld [vmem:[#allocation8 + $0xb0] sm:$0xff]  }
 0x1c6   :  { %2792 = vmatpush1.bf16.msra.mxu0 %v4586_v18  ;;  %3079 = vmatpush1.bf16.msra.mxu1 %v4589_v19  ;;  %v4662_v18 = vld [vmem:[#allocation8 + $0x78] sm:$0xff]  }
 0x1c7   :  { %2793 = vmatprep.subr.bf16.mxu0 %v4594_v52  ;;  %3080 = vmatprep.subr.bf16.mxu1 %v4597_v20  ;;  %v4663_v19 = vld [vmem:[#allocation8 + $0xf8] sm:$0xff]  }
 0x1c8   :  { %v4664_v52 = vld [vmem:[#allocation8 + $0x38] sm:$0xff]  }
 0x1c9   :  { %v4665_v20 = vld [vmem:[#allocation8 + $0xb8] sm:$0xff]  }
 0x1ca   :  { %2794 = vmatpush1.bf16.msra.mxu0 %v4592_v22  ;;  %3081 = vmatpush1.bf16.msra.mxu1 %v4595_v23  ;;  %v482_v22 = vsub.s32 0, %v4908_v42  ;;  %v490_v23 = vsub.s32 2, %v4908_v42 }
 0x1cb   :  { %2795 = vmatprep.subr.bf16.mxu0 %v4600_v24  ;;  %3082 = vmatprep.subr.bf16.mxu1 %v4603_v26  ;;  %v478_v24 = vld [vmem:[#allocation7] sm:$0xf]  ;;  %v486_v26 = vsub.s32 1, %v4908_v42 }
 0x1ce   :  { %2796 = vmatpush1.bf16.msra.mxu0 %v4598_v13  ;;  %3083 = vmatpush1.bf16.msra.mxu1 %v4601_v29  ;;  %v494_v13 = vsub.s32 3, %v4908_v42  ;;  %v483_v29 = vrot.slane %v478_v24, %v482_v22 }
 0x1cf   :  { %2797 = vmatprep.subr.bf16.mxu0 %v4606_v30  ;;  %3084 = vmatprep.subr.bf16.mxu1 %v4609_v31  ;;  %v491_v30 = vrot.slane %v478_v24, %v490_v23  ;;  %v487_v31 = vrot.slane %v478_v24, %v486_v26 }
 0x1d2   :  { %2798 = vmatpush1.bf16.msra.mxu0 %v4604_v32  ;;  %3085 = vmatpush1.bf16.msra.mxu1 %v4607_v15  ;;  %v495_v32 = vrot.slane %v478_v24, %v494_v13 }
 0x1d3   :  { %2799 = vmatprep.subr.bf16.mxu0 %v4612_v33  ;;  %3086 = vmatprep.subr.bf16.mxu1 %v4615_v34 }
 0x1d6   :  { %2800 = vmatpush1.bf16.msra.mxu0 %v4610_v35  ;;  %3087 = vmatpush1.bf16.msra.mxu1 %v4613_v25 }
 0x1d7   :  { %2801 = vmatprep.subr.bf16.mxu0 %v4618_v37  ;;  %3088 = vmatprep.subr.bf16.mxu1 %v4621_v39 }
 0x1da   :  { %2802 = vmatpush1.bf16.msra.mxu0 %v4616_v40  ;;  %3089 = vmatpush1.bf16.msra.mxu1 %v4619_v27 }
 0x1db   :  { %2812 = vmatprep.subr.bf16.mxu0 %v4624_v41  ;;  %3099 = vmatprep.subr.bf16.mxu1 %v4627_v43 }
 0x1dd   :  { %2804 = vmatmul.mubr.bf16.vlgmr.msra.gmra.mrb[0].mxu0 %v588_v44  ;;  %3091 = vmatmul.mubr.bf16.vlgmr.msra.gmra.mrb[0].mxu1 %v588_v44 }
 0x1de   :  { %2813 = vmatpush1.bf16.msra.mxu0 %v4622_v28  ;;  %3100 = vmatpush1.bf16.msra.mxu1 %v4625_v45 }
 0x1df   :  { %2814 = vmatprep.subr.bf16.mxu0 %v4630_v46  ;;  %3101 = vmatprep.subr.bf16.mxu1 %v4633_v47 }
 0x1e0   :  { %2844 = vmatprep.mubr.bf16.mxu0 %v4816_v53  ;;  %3131 = vmatprep.mubr.bf16.mxu1 %v4816_v53  ;;  %v3903_v53 = vld [vmem:[#allocation10] ss:$0 sm:$0xff] }
 0x1e2   :  { %2815 = vmatpush1.bf16.msra.mxu0 %v4628_v36  ;;  %3102 = vmatpush1.bf16.msra.mxu1 %v4631_v50 }
 0x1e3   :  { %3936 = vmatprep.subr.bf16.mxu0 %v4634_v38  ;;  %3958 = vmatprep.subr.bf16.mxu1 %v4635_v51 }
 0x1e9   :  { %3901 = vmatmul.mubr.msk.bf16.vlgmr.msra.gmra.mrb[0].mxu0 %vm2562_vm0, %v580_v21  ;;  %3902 = vmatmul.mubr.msk.bf16.vlgmr.msra.gmra.mrb[0].mxu1 %vm2562_vm0, %v580_v21 }
 0x1ea   :  { %3937 = vmatpush3.bf16.msra.mxu0 %v4636_v55  ;;  %3959 = vmatpush3.bf16.msra.mxu1 %v4637_v56 }
 0x1eb   :  { %3938 = vmatprep.subr.bf16.mxu0 %v4638_v57  ;;  %3960 = vmatprep.subr.bf16.mxu1 %v4639_v58 }
 0x1ee   :  { %3939 = vmatpush3.bf16.msra.mxu0 %v4640_v59  ;;  %3961 = vmatpush3.bf16.msra.mxu1 %v4641_v60 }
 0x1ef   :  { %3940 = vmatprep.subr.bf16.mxu0 %v4642_v61  ;;  %3962 = vmatprep.subr.bf16.mxu1 %v4643_v62 }
 0x1f2   :  { %3941 = vmatpush3.bf16.msra.mxu0 %v4644_v63  ;;  %3963 = vmatpush3.bf16.msra.mxu1 %v4645_v0 }
 0x1f3   :  { %3942 = vmatprep.subr.bf16.mxu0 %v4646_v49  ;;  %3964 = vmatprep.subr.bf16.mxu1 %v4647_v1 }
 0x1f6   :  { %3943 = vmatpush3.bf16.msra.mxu0 %v4648_v2  ;;  %3965 = vmatpush3.bf16.msra.mxu1 %v4649_v3 }
 0x1f7   :  { %3944 = vmatprep.subr.bf16.mxu0 %v4650_v4  ;;  %3966 = vmatprep.subr.bf16.mxu1 %v4651_v5 }
 0x1fa   :  { %3945 = vmatpush3.bf16.msra.mxu0 %v4652_v6  ;;  %3967 = vmatpush3.bf16.msra.mxu1 %v4653_v7 }
 0x1fb   :  { %3946 = vmatprep.subr.bf16.mxu0 %v4654_v8  ;;  %3968 = vmatprep.subr.bf16.mxu1 %v4655_v9 }
 0x1fe   :  { %3947 = vmatpush3.bf16.msra.mxu0 %v4656_v10  ;;  %3969 = vmatpush3.bf16.msra.mxu1 %v4657_v11 }
 0x1ff   :  { %3948 = vmatprep.subr.bf16.mxu0 %v4658_v12  ;;  %3970 = vmatprep.subr.bf16.mxu1 %v4659_v14 }
 0x202   :  { %3949 = vmatpush3.bf16.msra.mxu0 %v4660_v16  ;;  %3971 = vmatpush3.bf16.msra.mxu1 %v4661_v17 }
 0x203   :  { %3950 = vmatprep.subr.bf16.mxu0 %v4662_v18  ;;  %3972 = vmatprep.subr.bf16.mxu1 %v4663_v19 }
 0x206   :  { %3951 = vmatpush3.bf16.msra.mxu0 %v4664_v52  ;;  %3973 = vmatpush3.bf16.msra.mxu1 %v4665_v20 }
 0x2bc   :  { %v2846_v15 = vpop.f32.mrb[0].mxu0  ;;  %v3133_v33 = vpop.f32.mrb[0].mxu1 }
 0x2bd   :  { %v3980_v34 = vadd.f32 %v2846_v15, %v483_v29  ;;  %v3982_v35 = vadd.f32 %v3133_v33, %v491_v30  ;;  %v2848_v25 = vpop.f32.mrb[1].mxu0  ;;  %v3135_v37 = vpop.f32.mrb[1].mxu1 }
 0x2be   :  { %v3981_v39 = vadd.f32 %v2848_v25, %v487_v31  ;;  %v3983_v40 = vadd.f32 %v3135_v37, %v495_v32  ;;  %v2850_v27 = vpop.f32.mrb[2].mxu0  ;;  %v3137_v41 = vpop.f32.mrb[2].mxu1 }
 0x2bf   :  { %v3140_v43 = vmax.f32 %v3980_v34, 0.0  ;;  %v3142_v44 = vmax.f32 %v3982_v35, 0.0  ;;  %v2851_v28 = vpop.f32.mrb[3].mxu0  ;;  %v3138_v45 = vpop.f32.mrb[3].mxu1 }
 0x2c0   :  { %v3141_v46 = vmax.f32 %v3981_v39, 0.0  ;;  %v3143_v42 = vmax.f32 %v3983_v40, 0.0 }
 0x2c1   :  { %v3144_v36 = vpack.c.bf16 %v3140_v43, %v3140_v43  ;;  %v3146_v50 = vpack.c.bf16 %v3142_v44, %v3142_v44 }
 0x2c2   :  { %v3145_v47 = vpack.c.bf16 %v3141_v46, %v3141_v46  ;;  %v3147_v48 = vpack.c.bf16 %v3143_v42, %v3143_v42 }
 0x2c4   :  { %3443 = vmatprep.mubr.bf16.mxu0 %v3145_v47  ;;  %3483 = vmatprep.mubr.bf16.mxu1 %v3147_v48 }
 0x2c5   :  { %3444 = vmatmul.mubr.bf16.vlgmr.msra.gmra.mrb[4].mxu0 %v3144_v36  ;;  %3484 = vmatmul.mubr.bf16.vlgmr.msra.gmra.mrb[4].mxu1 %v3146_v50 }
 0x398   :  { %v3952_v38 = vpop.f32.mrb[4].mxu0  ;;  %v3974_v51 = vpop.f32.mrb[4].mxu1 }
 0x399   :  { %v3953_v54 = vpop.f32.mrb[5].mxu0  ;;  %v3975_v21 = vpop.f32.mrb[5].mxu1 }
 0x39a   :  { %v3954_v55 = vadd.f32 %v3953_v54, %v3952_v38  ;;  %v3976_v56 = vadd.f32 %v3975_v21, %v3974_v51  ;;  %v3955_v57 = vpop.f32.mrb[6].mxu0  ;;  %v3977_v58 = vpop.f32.mrb[6].mxu1 }
 0x39b   :  { %v3956_v59 = vpop.f32.mrb[7].mxu0  ;;  %v3978_v60 = vpop.f32.mrb[7].mxu1 }
 0x39c   :  { %v3446_v61 = vadd.f32 %v3954_v55, %v3903_v53 }
 0x39e   :  { %v3486_v62 = vadd.f32 %v3976_v56, %v3446_v61 }
 0x3a0   :  { %3491 = vst [vmem:[#allocation11] sm:$0x3] %v3486_v62 }
 0x3a1   :  { %4787 = shalt.err (!%p4784_p2)
}
 0x3a2   :  { %s4788_s7 = scalar_lea.hbm %s4995_s5, 32 }
 0x3a3   :  { %p4789_p3 = scmp.ne.s32.totalorder %s4995_s5, %s4788_s7  ;;  %p4792_p4 = scmp.lt.u32.totalorder %s4788_s7, %s4995_s5 }
 0x3a5   :  { %p4794_p5 = pnand %p4792_p4, %p4789_p3 }
 0x3a7   :  { %4797 = shalt.err (!%p4794_p5)
}
 0x3a8   :  { %3501 = dma.vmem_to_hbm [thread:$0]  %s3499_s29, 32, %s4995_s5, [#allocation4]  }
 0x3a9   :  { %4804 = dma.done.wait [#allocation4], 32  }
 0x3aa   :  { %4805 = vsyncadd [#allocation4], 4294967264 }
 0x3ab   :  { %3505 = vsyncpa [#allocation3], 1 }
 0x3ac   :  { %3506 = vsyncpa [#allocation6], 1 }
 0x3ad   :  { %3507 = vsyncpa [#allocation9], 1 }
 0x3ae   :  { %3508 = vsyncpa [#allocation4], 1 }

</bundles_post_ra>
